<compile_context>
chip_gen: v5e
topology: v5e:2x2
jax: 0.10.0
libtpu: 0.0.40
codegen_flags: <defaults>
</compile_context>

<pallas_src>
import math

import jax
import jax.numpy as jnp
import numpy as np
from jax.experimental import pallas as pl
from jax.experimental.pallas import tpu as pltpu

NUM_HEADS = 4  # fixed by the PyTorch module (nn.MultiheadAttention(..., num_heads=4))
LN_EPS = 1e-5


def _make_fusion_kernel(M, F):
    MF = M * F
    MMF = M * M * F
    inv_F = 1.0 / F

    def kernel(feats_ref, wbd_ref, bproj_ref, sseg_ref, elnw_ref, lnb_ref,
               wbig_ref, bbig_ref, shead_ref, dsum_ref, ehead_ref,
               rred_ref, edh_ref, wout_ref, bout_ref, out_ref):
        f32 = jnp.float32

        # ---- all per-modality input projections: one block-diagonal matmul ----
        x = jnp.dot(feats_ref[...], wbd_ref[...],
                    preferred_element_type=f32) + bproj_ref[...]              # [TB, M*F]

        # ---- LayerNorm over each modality's F lanes (one-pass stats via indicator matmuls) ----
        ssum = jnp.dot(x, sseg_ref[...], preferred_element_type=f32)          # [TB, M]
        ssq = jnp.dot(x * x, sseg_ref[...], preferred_element_type=f32)       # [TB, M]
        mu = ssum * inv_F
        var = ssq * inv_F - mu * mu
        istd = jax.lax.rsqrt(var + LN_EPS)                                    # [TB, M]
        a_f = jnp.dot(istd, elnw_ref[...], preferred_element_type=f32)        # istd*ln_w per lane
        b_f = jnp.dot(mu * istd, elnw_ref[...], preferred_element_type=f32)   # mu*istd*ln_w
        xn = x * a_f - b_f + lnb_ref[...]                                     # [TB, M*F]

        # ---- fused q/k/v projection, already replicated over all (query m, key n) pairs ----
        qkv = jnp.dot(xn, wbig_ref[...], preferred_element_type=f32) + bbig_ref[...]  # [TB, 3*M*M*F]
        q_rep = qkv[:, :MMF]            # pair p = m*M+n holds q_m (pre-scaled by 1/sqrt(hd))
        k_rep = qkv[:, MMF:2 * MMF]     # pair p holds k_n
        v_rep = qkv[:, 2 * MMF:]        # pair p holds v_n

        # ---- all M*M*H attention scores with one indicator matmul ----
        s_all = jnp.dot(q_rep * k_rep, shead_ref[...],
                        preferred_element_type=f32)                           # [TB, M*M*H]

        # softmax over the key index n; shift by the per-row global max (shift-invariant)
        e = jnp.exp(s_all - jnp.max(s_all, axis=-1, keepdims=True))           # [TB, M*M*H]
        denom = jnp.dot(e, dsum_ref[...], preferred_element_type=f32)         # [TB, M*H]

        # numerator: expand exp-scores over their head lanes, weight V, reduce over keys n
        pe = jnp.dot(e, ehead_ref[...], preferred_element_type=f32)           # [TB, M*M*F]
        num = jnp.dot(pe * v_rep, rred_ref[...], preferred_element_type=f32)  # [TB, M*F]
        invd = jnp.dot(1.0 / denom, edh_ref[...], preferred_element_type=f32) # [TB, M*F]
        attn = num * invd                                                     # per-modality attn

        # ---- out-projection with the modality mean (1/M) folded into the stacked weight ----
        out_ref[...] = jnp.dot(attn, wout_ref[...],
                               preferred_element_type=f32) + bout_ref[...]

    return kernel


def multimodal_fusion_block(feats, wp, bp, lnw, lnb, win_t, bin_, wout_t, bout,
                            *, block_b=128):
    """feats [B, M, Din]; wp [M, Din, F] (pre-transposed Linear weights); bp [M, F];
    lnw/lnb [1, F]; win_t [F, 3F] (in_proj_weight.T); bin_ [1, 3F];
    wout_t [F, F] (out_proj.weight.T); bout [1, F]. Returns [B, F]."""
    B, M, Din = feats.shape
    F = wp.shape[2]
    H = NUM_HEADS
    assert F % H == 0, "fusion_dim must be divisible by num_heads"
    assert win_t.shape == (F, 3 * F) and wout_t.shape == (F, F)
    hd = F // H
    MF, MMF, MMH, MH = M * F, M * M * F, M * M * H, M * H
    scale = 1.0 / math.sqrt(hd)

    # ---------- one-time, host-side (numpy) weight packing; in a real model do this at init ----------
    wp_np = np.asarray(wp, dtype=np.float32)
    bp_np = np.asarray(bp, dtype=np.float32)
    lnw_np = np.asarray(lnw, dtype=np.float32).reshape(F)
    lnb_np = np.asarray(lnb, dtype=np.float32).reshape(F)
    win_np = np.asarray(win_t, dtype=np.float32)
    bin_np = np.asarray(bin_, dtype=np.float32).reshape(3 * F)
    wout_np = np.asarray(wout_t, dtype=np.float32)
    bout_np = np.asarray(bout, dtype=np.float32).reshape(F)

    # block-diagonal per-modality input projection
    wbd = np.zeros((M * Din, MF), np.float32)
    for m in range(M):
        wbd[m * Din:(m + 1) * Din, m * F:(m + 1) * F] = wp_np[m]
    bproj = bp_np.reshape(1, MF)

    # LayerNorm: modality-segment sum indicator + ln_weight-folded expansion
    sseg = np.zeros((MF, M), np.float32)
    elnw = np.zeros((M, MF), np.float32)
    for m in range(M):
        sseg[m * F:(m + 1) * F, m] = 1.0
        elnw[m, m * F:(m + 1) * F] = lnw_np
    lnb_t = np.tile(lnb_np, M).reshape(1, MF)

    # fused qkv weight producing the replicated (query m, key n) pair layout:
    #   lanes [0, MMF)        pair p = m*M+n -> q_m   (pre-scaled by 1/sqrt(hd))
    #   lanes [MMF, 2*MMF)    pair p         -> k_n
    #   lanes [2*MMF, 3*MMF)  pair p         -> v_n
    wq = win_np[:, 0 * F:1 * F] * scale
    wk = win_np[:, 1 * F:2 * F]
    wv = win_np[:, 2 * F:3 * F]
    bq = bin_np[0 * F:1 * F] * scale
    bk = bin_np[1 * F:2 * F]
    bv = bin_np[2 * F:3 * F]
    wbig = np.zeros((MF, 3 * MMF), np.float32)
    bbig = np.zeros((1, 3 * MMF), np.float32)
    for m in range(M):
        for n in range(M):
            p = m * M + n
            wbig[m * F:(m + 1) * F, p * F:(p + 1) * F] = wq
            wbig[n * F:(n + 1) * F, MMF + p * F:MMF + (p + 1) * F] = wk
            wbig[n * F:(n + 1) * F, 2 * MMF + p * F:2 * MMF + (p + 1) * F] = wv
            bbig[0, p * F:(p + 1) * F] = bq
            bbig[0, MMF + p * F:MMF + (p + 1) * F] = bk
            bbig[0, 2 * MMF + p * F:2 * MMF + (p + 1) * F] = bv

    # attention indicator matrices
    shead = np.zeros((MMF, MMH), np.float32)      # sum over head lanes per (pair, head)
    for p in range(M * M):
        for h in range(H):
            shead[p * F + h * hd:p * F + (h + 1) * hd, p * H + h] = 1.0
    ehead = np.ascontiguousarray(shead.T)         # expand per-(pair, head) scalar over its lanes

    dsum = np.zeros((MMH, MH), np.float32)        # sum over key n per (query m, head h)
    for m in range(M):
        for n in range(M):
            for h in range(H):
                dsum[(m * M + n) * H + h, m * H + h] = 1.0

    rred = np.zeros((MMF, MF), np.float32)        # sum over key n per (query m, lane)
    eyeF = np.eye(F, dtype=np.float32)
    for m in range(M):
        for n in range(M):
            rred[(m * M + n) * F:(m * M + n + 1) * F, m * F:(m + 1) * F] = eyeF

    edh = np.zeros((MH, MF), np.float32)          # expand per-(m, h) 1/denominator over lanes
    for m in range(M):
        for h in range(H):
            edh[m * H + h, m * F + h * hd:m * F + (h + 1) * hd] = 1.0

    # out-projection with the modality mean folded in: mean_m(attn_m @ Wout) = attn_flat @ stack(Wout/M)
    wout_fold = np.tile(wout_np * (1.0 / M), (M, 1))          # [M*F, F]
    bout_r = bout_np.reshape(1, F)

    # ---------- batch tiling ----------
    TB = block_b
    grid_b = pl.cdiv(B, TB)
    Bp = grid_b * TB
    feats_flat = jnp.asarray(feats, jnp.float32).reshape(B, M * Din)
    if Bp != B:
        feats_flat = jnp.pad(feats_flat, ((0, Bp - B), (0, 0)))

    # ---------- advisory cost estimate ----------
    matmul_macs = ((M * Din) * MF + 2 * MF * M + 2 * M * MF + MF * (3 * MMF)
                   + MMF * MMH + MMH * MH + MMH * MMF + MMF * MF + MH * MF + MF * F)
    flops = Bp * (2 * matmul_macs + 8 * MF + 3 * MMF + 2 * MMH)
    transcendentals = Bp * (MMH + MH + M)          # exp, 1/denom, rsqrt
    weight_bytes = 4 * (wbd.size + bproj.size + sseg.size + elnw.size + lnb_t.size
                        + wbig.size + bbig.size + shead.size + dsum.size + ehead.size
                        + rred.size + edh.size + wout_fold.size + bout_r.size)
    bytes_accessed = 4 * Bp * (M * Din + F) + weight_bytes
    ce = pl.CostEstimate(flops=flops, transcendentals=transcendentals,
                         bytes_accessed=bytes_accessed)

    # NOTE(v7x): weights total <2 MiB; if Din/F scale up, re-check the constant-index
    # whole-weight BlockSpecs against the 64 MiB/TC VMEM budget and set vmem_limit_bytes.
    out = pl.pallas_call(
        _make_fusion_kernel(M, F),
        out_shape=jax.ShapeDtypeStruct((Bp, F), jnp.float32),
        grid=(grid_b,),
        in_specs=[
            pl.BlockSpec((TB, M * Din), lambda b: (b, 0)),      # feats tile
            pl.BlockSpec((M * Din, MF), lambda b: (0, 0)),      # wbd
            pl.BlockSpec((1, MF), lambda b: (0, 0)),            # bproj
            pl.BlockSpec((MF, M), lambda b: (0, 0)),            # sseg
            pl.BlockSpec((M, MF), lambda b: (0, 0)),            # elnw
            pl.BlockSpec((1, MF), lambda b: (0, 0)),            # lnb tiled
            pl.BlockSpec((MF, 3 * MMF), lambda b: (0, 0)),      # wbig (fused qkv)
            pl.BlockSpec((1, 3 * MMF), lambda b: (0, 0)),       # bbig
            pl.BlockSpec((MMF, MMH), lambda b: (0, 0)),         # shead
            pl.BlockSpec((MMH, MH), lambda b: (0, 0)),          # dsum
            pl.BlockSpec((MMH, MMF), lambda b: (0, 0)),         # ehead
            pl.BlockSpec((MMF, MF), lambda b: (0, 0)),          # rred
            pl.BlockSpec((MH, MF), lambda b: (0, 0)),           # edh
            pl.BlockSpec((MF, F), lambda b: (0, 0)),            # wout (mean folded)
            pl.BlockSpec((1, F), lambda b: (0, 0)),             # bout
        ],
        out_specs=pl.BlockSpec((TB, F), lambda b: (b, 0)),
        compiler_params=pltpu.CompilerParams(dimension_semantics=("parallel",)),
        cost_estimate=ce,
    )(feats_flat, jnp.asarray(wbd), jnp.asarray(bproj), jnp.asarray(sseg),
      jnp.asarray(elnw), jnp.asarray(lnb_t), jnp.asarray(wbig), jnp.asarray(bbig),
      jnp.asarray(shead), jnp.asarray(dsum), jnp.asarray(ehead), jnp.asarray(rred),
      jnp.asarray(edh), jnp.asarray(wout_fold), jnp.asarray(bout_r))
    return out[:B]


def reference(feats, wp, bp, lnw, lnb, win_t, bin_, wout_t, bout):
    """Plain-JAX reference mirroring the PyTorch forward pass."""
    proj = jnp.einsum('bmd,mdf->bmf', feats, wp) + bp[None]            # [B, M, F]
    mu = proj.mean(-1, keepdims=True)
    var = ((proj - mu) ** 2).mean(-1, keepdims=True)
    xn = (proj - mu) / jnp.sqrt(var + LN_EPS)
    xn = xn * lnw.reshape(1, 1, -1) + lnb.reshape(1, 1, -1)
    qkv = jnp.einsum('bmf,fg->bmg', xn, win_t) + bin_.reshape(1, 1, -1)
    q, k, v = jnp.split(qkv, 3, axis=-1)
    B, M, F = q.shape
    H, hd = NUM_HEADS, F // NUM_HEADS
    q = q.reshape(B, M, H, hd)
    k = k.reshape(B, M, H, hd)
    v = v.reshape(B, M, H, hd)
    s = jnp.einsum('bmhd,bnhd->bhmn', q, k) / math.sqrt(hd)
    p = jax.nn.softmax(s, axis=-1)
    o = jnp.einsum('bhmn,bnhd->bmhd', p, v).reshape(B, M, F)
    o = jnp.einsum('bmf,fg->bmg', o, wout_t) + bout.reshape(1, 1, -1)
    return o.mean(axis=1)


if __name__ == "__main__":
    B = 256        # batch (2 batch tiles of 128 -> both TensorCores busy on v7x)
    M = 4          # num_modalities
    IN_DIM = 16    # in_dim
    F = 32         # fusion_dim (embed_dim of the attention), head_dim = 8

    key = jax.random.PRNGKey(0)
    ks = jax.random.split(key, 10)

    feats = jax.random.normal(ks[0], (B, M, IN_DIM), dtype=jnp.float32)

    # per-modality Linear(in_dim, fusion_dim): weights stored transposed [M, IN_DIM, F]
    wp = jax.random.normal(ks[1], (M, IN_DIM, F), dtype=jnp.float32) * 0.1
    bp = jax.random.normal(ks[2], (M, F), dtype=jnp.float32) * 0.1

    # LayerNorm(fusion_dim)
    lnw = jnp.ones((1, F), dtype=jnp.float32) + 0.05 * jax.random.normal(ks[3], (1, F))
    lnb = 0.05 * jax.random.normal(ks[4], (1, F), dtype=jnp.float32)

    # MultiheadAttention(fusion_dim, num_heads=4): in_proj [3F,F] stored as [F,3F]
    win_t = jax.random.normal(ks[5], (F, 3 * F), dtype=jnp.float32) * 0.1
    bin_ = jax.random.normal(ks[6], (1, 3 * F), dtype=jnp.float32) * 0.1
    wout_t = jax.random.normal(ks[7], (F, F), dtype=jnp.float32) * 0.1
    bout = jax.random.normal(ks[8], (1, F), dtype=jnp.float32) * 0.1

    fused = multimodal_fusion_block(feats, wp, bp, lnw, lnb, win_t, bin_, wout_t, bout)
    fused = jax.block_until_ready(fused)

    ref = reference(feats, wp, bp, lnw, lnb, win_t, bin_, wout_t, bout)
    np.testing.assert_allclose(np.asarray(fused), np.asarray(ref), rtol=1e-4, atol=1e-4)

    print("KERNEL_OK")
</pallas_src>

<mosaic_0001>
module attributes {stable_mosaic.version = 11 : i64} {
  func.func @kernel(%arg0: i32, %arg1: memref<128x64xf32, #tpu.memory_space<vmem>>, %arg2: memref<64x128xf32, #tpu.memory_space<vmem>>, %arg3: memref<1x128xf32, #tpu.memory_space<vmem>>, %arg4: memref<128x4xf32, #tpu.memory_space<vmem>>, %arg5: memref<4x128xf32, #tpu.memory_space<vmem>>, %arg6: memref<1x128xf32, #tpu.memory_space<vmem>>, %arg7: memref<128x1536xf32, #tpu.memory_space<vmem>>, %arg8: memref<1x1536xf32, #tpu.memory_space<vmem>>, %arg9: memref<512x64xf32, #tpu.memory_space<vmem>>, %arg10: memref<64x16xf32, #tpu.memory_space<vmem>>, %arg11: memref<64x512xf32, #tpu.memory_space<vmem>>, %arg12: memref<512x128xf32, #tpu.memory_space<vmem>>, %arg13: memref<16x128xf32, #tpu.memory_space<vmem>>, %arg14: memref<128x32xf32, #tpu.memory_space<vmem>>, %arg15: memref<1x32xf32, #tpu.memory_space<vmem>>, %arg16: memref<128x32xf32, #tpu.memory_space<vmem>>) attributes {dimension_semantics = [#tpu.dimension_semantics<parallel>], iteration_bounds = array<i64: 2>, scalar_prefetch = 0 : i64, scratch_operands = 0 : i64, tpu.core_type = #tpu.core_type<tc>, window_params = [{transform_indices = @transform_0, window_bounds = array<i64: 128, 64>}, {pipeline_mode = #tpu.pipeline_mode<synchronous>, transform_indices = @transform_1, window_bounds = array<i64: 64, 128>}, {pipeline_mode = #tpu.pipeline_mode<synchronous>, transform_indices = @transform_2, window_bounds = array<i64: 1, 128>}, {pipeline_mode = #tpu.pipeline_mode<synchronous>, transform_indices = @transform_3, window_bounds = array<i64: 128, 4>}, {pipeline_mode = #tpu.pipeline_mode<synchronous>, transform_indices = @transform_4, window_bounds = array<i64: 4, 128>}, {pipeline_mode = #tpu.pipeline_mode<synchronous>, transform_indices = @transform_5, window_bounds = array<i64: 1, 128>}, {pipeline_mode = #tpu.pipeline_mode<synchronous>, transform_indices = @transform_6, window_bounds = array<i64: 128, 1536>}, {pipeline_mode = #tpu.pipeline_mode<synchronous>, transform_indices = @transform_7, window_bounds = array<i64: 1, 1536>}, {pipeline_mode = #tpu.pipeline_mode<synchronous>, transform_indices = @transform_8, window_bounds = array<i64: 512, 64>}, {pipeline_mode = #tpu.pipeline_mode<synchronous>, transform_indices = @transform_9, window_bounds = array<i64: 64, 16>}, {pipeline_mode = #tpu.pipeline_mode<synchronous>, transform_indices = @transform_10, window_bounds = array<i64: 64, 512>}, {pipeline_mode = #tpu.pipeline_mode<synchronous>, transform_indices = @transform_11, window_bounds = array<i64: 512, 128>}, {pipeline_mode = #tpu.pipeline_mode<synchronous>, transform_indices = @transform_12, window_bounds = array<i64: 16, 128>}, {pipeline_mode = #tpu.pipeline_mode<synchronous>, transform_indices = @transform_13, window_bounds = array<i64: 128, 32>}, {pipeline_mode = #tpu.pipeline_mode<synchronous>, transform_indices = @transform_14, window_bounds = array<i64: 1, 32>}, {transform_indices = @transform_15, window_bounds = array<i64: 128, 32>}]} {
    %c0 = arith.constant 0 : index
    %c0_0 = arith.constant 0 : index
    %0 = vector.load %arg1[%c0, %c0_0] : memref<128x64xf32, #tpu.memory_space<vmem>>, vector<128x64xf32>
    %c0_1 = arith.constant 0 : index
    %c0_2 = arith.constant 0 : index
    %1 = vector.load %arg2[%c0_1, %c0_2] : memref<64x128xf32, #tpu.memory_space<vmem>>, vector<64x128xf32>
    %cst = arith.constant dense<0.000000e+00> : vector<128x128xf32>
    %2 = tpu.matmul %0, %1, %cst {dimension_numbers = #tpu.dot_dimension_numbers<[1], [0], [0], [1], [0, 0, 1, 1], [], []>} : vector<128x64xf32>, vector<64x128xf32>, vector<128x128xf32> -> vector<128x128xf32>
    %c0_3 = arith.constant 0 : index
    %c0_4 = arith.constant 0 : index
    %3 = vector.load %arg3[%c0_3, %c0_4] : memref<1x128xf32, #tpu.memory_space<vmem>>, vector<1x128xf32>
    %4 = vector.broadcast %3 : vector<1x128xf32> to vector<128x128xf32>
    %5 = arith.addf %2, %4 : vector<128x128xf32>
    %c0_5 = arith.constant 0 : index
    %c0_6 = arith.constant 0 : index
    %6 = vector.load %arg4[%c0_5, %c0_6] : memref<128x4xf32, #tpu.memory_space<vmem>>, vector<128x4xf32>
    %cst_7 = arith.constant dense<0.000000e+00> : vector<128x4xf32>
    %7 = tpu.matmul %5, %6, %cst_7 {dimension_numbers = #tpu.dot_dimension_numbers<[1], [0], [0], [1], [0, 0, 1, 1], [], []>} : vector<128x128xf32>, vector<128x4xf32>, vector<128x4xf32> -> vector<128x4xf32>
    %8 = arith.mulf %5, %5 : vector<128x128xf32>
    %c0_8 = arith.constant 0 : index
    %c0_9 = arith.constant 0 : index
    %9 = vector.load %arg4[%c0_8, %c0_9] : memref<128x4xf32, #tpu.memory_space<vmem>>, vector<128x4xf32>
    %cst_10 = arith.constant dense<0.000000e+00> : vector<128x4xf32>
    %10 = tpu.matmul %8, %9, %cst_10 {dimension_numbers = #tpu.dot_dimension_numbers<[1], [0], [0], [1], [0, 0, 1, 1], [], []>} : vector<128x128xf32>, vector<128x4xf32>, vector<128x4xf32> -> vector<128x4xf32>
    %cst_11 = arith.constant 3.125000e-02 : f32
    %11 = vector.broadcast %cst_11 : f32 to vector<128x4xf32>
    %12 = arith.mulf %7, %11 : vector<128x4xf32>
    %cst_12 = arith.constant 3.125000e-02 : f32
    %13 = vector.broadcast %cst_12 : f32 to vector<128x4xf32>
    %14 = arith.mulf %10, %13 : vector<128x4xf32>
    %15 = arith.mulf %12, %12 : vector<128x4xf32>
    %16 = arith.subf %14, %15 : vector<128x4xf32>
    %cst_13 = arith.constant 9.99999974E-6 : f32
    %17 = vector.broadcast %cst_13 : f32 to vector<128x4xf32>
    %18 = arith.addf %16, %17 : vector<128x4xf32>
    %19 = math.rsqrt %18 : vector<128x4xf32>
    %c0_14 = arith.constant 0 : index
    %c0_15 = arith.constant 0 : index
    %20 = vector.load %arg5[%c0_14, %c0_15] : memref<4x128xf32, #tpu.memory_space<vmem>>, vector<4x128xf32>
    %cst_16 = arith.constant dense<0.000000e+00> : vector<128x128xf32>
    %21 = tpu.matmul %19, %20, %cst_16 {dimension_numbers = #tpu.dot_dimension_numbers<[1], [0], [0], [1], [0, 0, 1, 1], [], []>} : vector<128x4xf32>, vector<4x128xf32>, vector<128x128xf32> -> vector<128x128xf32>
    %22 = arith.mulf %12, %19 : vector<128x4xf32>
    %c0_17 = arith.constant 0 : index
    %c0_18 = arith.constant 0 : index
    %23 = vector.load %arg5[%c0_17, %c0_18] : memref<4x128xf32, #tpu.memory_space<vmem>>, vector<4x128xf32>
    %cst_19 = arith.constant dense<0.000000e+00> : vector<128x128xf32>
    %24 = tpu.matmul %22, %23, %cst_19 {dimension_numbers = #tpu.dot_dimension_numbers<[1], [0], [0], [1], [0, 0, 1, 1], [], []>} : vector<128x4xf32>, vector<4x128xf32>, vector<128x128xf32> -> vector<128x128xf32>
    %25 = arith.mulf %5, %21 : vector<128x128xf32>
    %26 = arith.subf %25, %24 : vector<128x128xf32>
    %c0_20 = arith.constant 0 : index
    %c0_21 = arith.constant 0 : index
    %27 = vector.load %arg6[%c0_20, %c0_21] : memref<1x128xf32, #tpu.memory_space<vmem>>, vector<1x128xf32>
    %28 = vector.broadcast %27 : vector<1x128xf32> to vector<128x128xf32>
    %29 = arith.addf %26, %28 : vector<128x128xf32>
    %c0_22 = arith.constant 0 : index
    %c0_23 = arith.constant 0 : index
    %30 = vector.load %arg7[%c0_22, %c0_23] : memref<128x1536xf32, #tpu.memory_space<vmem>>, vector<128x1536xf32>
    %cst_24 = arith.constant dense<0.000000e+00> : vector<128x1536xf32>
    %31 = tpu.matmul %29, %30, %cst_24 {dimension_numbers = #tpu.dot_dimension_numbers<[1], [0], [0], [1], [0, 0, 1, 1], [], []>} : vector<128x128xf32>, vector<128x1536xf32>, vector<128x1536xf32> -> vector<128x1536xf32>
    %c0_25 = arith.constant 0 : index
    %c0_26 = arith.constant 0 : index
    %32 = vector.load %arg8[%c0_25, %c0_26] : memref<1x1536xf32, #tpu.memory_space<vmem>>, vector<1x1536xf32>
    %33 = vector.broadcast %32 : vector<1x1536xf32> to vector<128x1536xf32>
    %34 = arith.addf %31, %33 : vector<128x1536xf32>
    %35 = vector.extract_strided_slice %34 {offsets = [0, 0], sizes = [128, 512], strides = [1, 1]} : vector<128x1536xf32> to vector<128x512xf32>
    %36 = vector.extract_strided_slice %34 {offsets = [0, 512], sizes = [128, 512], strides = [1, 1]} : vector<128x1536xf32> to vector<128x512xf32>
    %37 = vector.extract_strided_slice %34 {offsets = [0, 1024], sizes = [128, 512], strides = [1, 1]} : vector<128x1536xf32> to vector<128x512xf32>
    %38 = arith.mulf %35, %36 : vector<128x512xf32>
    %c0_27 = arith.constant 0 : index
    %c0_28 = arith.constant 0 : index
    %39 = vector.load %arg9[%c0_27, %c0_28] : memref<512x64xf32, #tpu.memory_space<vmem>>, vector<512x64xf32>
    %cst_29 = arith.constant dense<0.000000e+00> : vector<128x64xf32>
    %40 = tpu.matmul %38, %39, %cst_29 {dimension_numbers = #tpu.dot_dimension_numbers<[1], [0], [0], [1], [0, 0, 1, 1], [], []>} : vector<128x512xf32>, vector<512x64xf32>, vector<128x64xf32> -> vector<128x64xf32>
    %cst_30 = arith.constant dense<0xFF800000> : vector<128xf32>
    %41 = vector.multi_reduction <maximumf>, %40, %cst_30 [1] : vector<128x64xf32> to vector<128xf32>
    %42 = vector.shape_cast %41 : vector<128xf32> to vector<128x1xf32>
    %43 = vector.broadcast %42 : vector<128x1xf32> to vector<128x64xf32>
    %44 = arith.subf %40, %43 : vector<128x64xf32>
    %45 = math.exp %44 : vector<128x64xf32>
    %c0_31 = arith.constant 0 : index
    %c0_32 = arith.constant 0 : index
    %46 = vector.load %arg10[%c0_31, %c0_32] : memref<64x16xf32, #tpu.memory_space<vmem>>, vector<64x16xf32>
    %cst_33 = arith.constant dense<0.000000e+00> : vector<128x16xf32>
    %47 = tpu.matmul %45, %46, %cst_33 {dimension_numbers = #tpu.dot_dimension_numbers<[1], [0], [0], [1], [0, 0, 1, 1], [], []>} : vector<128x64xf32>, vector<64x16xf32>, vector<128x16xf32> -> vector<128x16xf32>
    %c0_34 = arith.constant 0 : index
    %c0_35 = arith.constant 0 : index
    %48 = vector.load %arg11[%c0_34, %c0_35] : memref<64x512xf32, #tpu.memory_space<vmem>>, vector<64x512xf32>
    %cst_36 = arith.constant dense<0.000000e+00> : vector<128x512xf32>
    %49 = tpu.matmul %45, %48, %cst_36 {dimension_numbers = #tpu.dot_dimension_numbers<[1], [0], [0], [1], [0, 0, 1, 1], [], []>} : vector<128x64xf32>, vector<64x512xf32>, vector<128x512xf32> -> vector<128x512xf32>
    %50 = arith.mulf %49, %37 : vector<128x512xf32>
    %c0_37 = arith.constant 0 : index
    %c0_38 = arith.constant 0 : index
    %51 = vector.load %arg12[%c0_37, %c0_38] : memref<512x128xf32, #tpu.memory_space<vmem>>, vector<512x128xf32>
    %cst_39 = arith.constant dense<0.000000e+00> : vector<128x128xf32>
    %52 = tpu.matmul %50, %51, %cst_39 {dimension_numbers = #tpu.dot_dimension_numbers<[1], [0], [0], [1], [0, 0, 1, 1], [], []>} : vector<128x512xf32>, vector<512x128xf32>, vector<128x128xf32> -> vector<128x128xf32>
    %cst_40 = arith.constant 1.000000e+00 : f32
    %53 = vector.broadcast %cst_40 : f32 to vector<128x16xf32>
    %54 = arith.divf %53, %47 : vector<128x16xf32>
    %c0_41 = arith.constant 0 : index
    %c0_42 = arith.constant 0 : index
    %55 = vector.load %arg13[%c0_41, %c0_42] : memref<16x128xf32, #tpu.memory_space<vmem>>, vector<16x128xf32>
    %cst_43 = arith.constant dense<0.000000e+00> : vector<128x128xf32>
    %56 = tpu.matmul %54, %55, %cst_43 {dimension_numbers = #tpu.dot_dimension_numbers<[1], [0], [0], [1], [0, 0, 1, 1], [], []>} : vector<128x16xf32>, vector<16x128xf32>, vector<128x128xf32> -> vector<128x128xf32>
    %57 = arith.mulf %52, %56 : vector<128x128xf32>
    %c0_44 = arith.constant 0 : index
    %c0_45 = arith.constant 0 : index
    %58 = vector.load %arg14[%c0_44, %c0_45] : memref<128x32xf32, #tpu.memory_space<vmem>>, vector<128x32xf32>
    %cst_46 = arith.constant dense<0.000000e+00> : vector<128x32xf32>
    %59 = tpu.matmul %57, %58, %cst_46 {dimension_numbers = #tpu.dot_dimension_numbers<[1], [0], [0], [1], [0, 0, 1, 1], [], []>} : vector<128x128xf32>, vector<128x32xf32>, vector<128x32xf32> -> vector<128x32xf32>
    %c0_47 = arith.constant 0 : index
    %c0_48 = arith.constant 0 : index
    %60 = vector.load %arg15[%c0_47, %c0_48] : memref<1x32xf32, #tpu.memory_space<vmem>>, vector<1x32xf32>
    %61 = vector.broadcast %60 : vector<1x32xf32> to vector<128x32xf32>
    %62 = arith.addf %59, %61 : vector<128x32xf32>
    %c0_49 = arith.constant 0 : index
    %c0_50 = arith.constant 0 : index
    %63 = vector.load %arg16[%c0_49, %c0_50] : memref<128x32xf32, #tpu.memory_space<vmem>>, vector<128x32xf32>
    tpu.vector_store %arg16[%c0_49, %c0_50], %62 {strides = array<i32>} : memref<128x32xf32, #tpu.memory_space<vmem>>, vector<128x32xf32>,
    return
  }
  func.func @transform_0(%arg0: i32) -> (i32, i32) {
    %c0_i32 = arith.constant 0 : i32
    %c0_i32_0 = arith.constant 0 : i32
    return %arg0, %c0_i32 : i32, i32
  }
  func.func @transform_1(%arg0: i32) -> (i32, i32) {
    %c0_i32 = arith.constant 0 : i32
    %c0_i32_0 = arith.constant 0 : i32
    %c0_i32_1 = arith.constant 0 : i32
    return %c0_i32, %c0_i32_0 : i32, i32
  }
  func.func @transform_2(%arg0: i32) -> (i32, i32) {
    %c0_i32 = arith.constant 0 : i32
    %c0_i32_0 = arith.constant 0 : i32
    %c0_i32_1 = arith.constant 0 : i32
    return %c0_i32, %c0_i32_0 : i32, i32
  }
  func.func @transform_3(%arg0: i32) -> (i32, i32) {
    %c0_i32 = arith.constant 0 : i32
    %c0_i32_0 = arith.constant 0 : i32
    %c0_i32_1 = arith.constant 0 : i32
    return %c0_i32, %c0_i32_0 : i32, i32
  }
  func.func @transform_4(%arg0: i32) -> (i32, i32) {
    %c0_i32 = arith.constant 0 : i32
    %c0_i32_0 = arith.constant 0 : i32
    %c0_i32_1 = arith.constant 0 : i32
    return %c0_i32, %c0_i32_0 : i32, i32
  }
  func.func @transform_5(%arg0: i32) -> (i32, i32) {
    %c0_i32 = arith.constant 0 : i32
    %c0_i32_0 = arith.constant 0 : i32
    %c0_i32_1 = arith.constant 0 : i32
    return %c0_i32, %c0_i32_0 : i32, i32
  }
  func.func @transform_6(%arg0: i32) -> (i32, i32) {
    %c0_i32 = arith.constant 0 : i32
    %c0_i32_0 = arith.constant 0 : i32
    %c0_i32_1 = arith.constant 0 : i32
    return %c0_i32, %c0_i32_0 : i32, i32
  }
  func.func @transform_7(%arg0: i32) -> (i32, i32) {
    %c0_i32 = arith.constant 0 : i32
    %c0_i32_0 = arith.constant 0 : i32
    %c0_i32_1 = arith.constant 0 : i32
    return %c0_i32, %c0_i32_0 : i32, i32
  }
  func.func @transform_8(%arg0: i32) -> (i32, i32) {
    %c0_i32 = arith.constant 0 : i32
    %c0_i32_0 = arith.constant 0 : i32
    %c0_i32_1 = arith.constant 0 : i32
    return %c0_i32, %c0_i32_0 : i32, i32
  }
  func.func @transform_9(%arg0: i32) -> (i32, i32) {
    %c0_i32 = arith.constant 0 : i32
    %c0_i32_0 = arith.constant 0 : i32
    %c0_i32_1 = arith.constant 0 : i32
    return %c0_i32, %c0_i32_0 : i32, i32
  }
  func.func @transform_10(%arg0: i32) -> (i32, i32) {
    %c0_i32 = arith.constant 0 : i32
    %c0_i32_0 = arith.constant 0 : i32
    %c0_i32_1 = arith.constant 0 : i32
    return %c0_i32, %c0_i32_0 : i32, i32
  }
  func.func @transform_11(%arg0: i32) -> (i32, i32) {
    %c0_i32 = arith.constant 0 : i32
    %c0_i32_0 = arith.constant 0 : i32
    %c0_i32_1 = arith.constant 0 : i32
    return %c0_i32, %c0_i32_0 : i32, i32
  }
  func.func @transform_12(%arg0: i32) -> (i32, i32) {
    %c0_i32 = arith.constant 0 : i32
    %c0_i32_0 = arith.constant 0 : i32
    %c0_i32_1 = arith.constant 0 : i32
    return %c0_i32, %c0_i32_0 : i32, i32
  }
  func.func @transform_13(%arg0: i32) -> (i32, i32) {
    %c0_i32 = arith.constant 0 : i32
    %c0_i32_0 = arith.constant 0 : i32
    %c0_i32_1 = arith.constant 0 : i32
    return %c0_i32, %c0_i32_0 : i32, i32
  }
  func.func @transform_14(%arg0: i32) -> (i32, i32) {
    %c0_i32 = arith.constant 0 : i32
    %c0_i32_0 = arith.constant 0 : i32
    %c0_i32_1 = arith.constant 0 : i32
    return %c0_i32, %c0_i32_0 : i32, i32
  }
  func.func @transform_15(%arg0: i32) -> (i32, i32) {
    %c0_i32 = arith.constant 0 : i32
    %c0_i32_0 = arith.constant 0 : i32
    return %arg0, %c0_i32 : i32, i32
  }
}

</mosaic_0001>

<bundles_post_ra>
// kernel: tpu_custom_call.1
= control target key start
LH: loop header
LB: loop body
LE: loop exit
PB: predicated region body
PF: predicated region fallthrough
CT: control target
= control target key end

     0   :  { %20 = vsyncpa [#allocation3], 0  ;;  %s4592_s18 = smov 0   ;;  %s7261_s0 = inlined_call_operand.vmem [shape: f32[256,64], index: 0, kind: input, shape index: {}]   ;;  %s7262_s1 = inlined_call_operand.vmem [shape: f32[64,128], index: 1, kind: input, shape index: {}]   ;;  %s7263_s2 = inlined_call_operand.vmem [shape: f32[1,128], index: 2, kind: input, shape index: {}]   ;;  %s7264_s3 = inlined_call_operand.vmem [shape: f32[128,4], index: 3, kind: input, shape index: {}]   ;;  %s7265_s4 = inlined_call_operand.vmem [shape: f32[4,128], index: 4, kind: input, shape index: {}]   ;;  %s7266_s5 = inlined_call_operand.vmem [shape: f32[1,128], index: 5, kind: input, shape index: {}]   ;;  %s7267_s6 = inlined_call_operand.hbm [shape: f32[128,1536], index: 6, kind: input, shape index: {}]   ;;  %s7268_s7 = inlined_call_operand.vmem [shape: f32[1,1536], index: 7, kind: input, shape index: {}]   ;;  %s7269_s8 = inlined_call_operand.vmem [shape: f32[512,64], index: 8, kind: input, shape index: {}]   ;;  %s7270_s9 = inlined_call_operand.vmem [shape: f32[64,16], index: 9, kind: input, shape index: {}]   ;;  %s7271_s10 = inlined_call_operand.vmem [shape: f32[64,512], index: 10, kind: input, shape index: {}]   ;;  %s7272_s11 = inlined_call_operand.vmem [shape: f32[512,128], index: 11, kind: input, shape index: {}]   ;;  %s7273_s12 = inlined_call_operand.vmem [shape: f32[16,128], index: 12, kind: input, shape index: {}]   ;;  %s7274_s13 = inlined_call_operand.vmem [shape: f32[128,32], index: 13, kind: input, shape index: {}]   ;;  %s7275_s14 = inlined_call_operand.vmem [shape: f32[1,32], index: 14, kind: input, shape index: {}]   ;;  %s7276_s15 = inlined_call_operand.vmem [shape: f32[256,32], index: 15, kind: output, shape index: {}]  }
   0x1 LB: > { %s403_s21 = sshll.u32 %s7267_s6, 4  ;;  %s4186_s22 = sadd.s32 4294967295, %s4507_s18   ;;  %s4507_s18 = sphi %s4592_s18, %s26_s18   ;;  %s404_s21 = int_to_ptr.hbm [resolvable:$true] %s403_s21 }
   0x2   : > { %p4188_p0 = scmp.ge.s32.totalorder %s4507_s18, 1  ;;  %p377_p1 = scmp.lt.s32.totalorder %s4507_s18, 3 }
   0x3   : > { %p4355_p2 = scmp.eq.s32.totalorder %s4186_s22, 0  ;;  %s4509_s23 = smov [#allocation2]  }
   0x4   : > { %p378_p3 = pnand %p4188_p0, %p377_p1  ;;  %s405_s24 = sshll.u32 %s4509_s23, 4  ;;  %s406_s24 = int_to_ptr.vmem [resolvable:$true] %s405_s24 }
   0x5   : > { %s4510_s25 = smov 1536   ;;  %s4511_s26 = smov 96  }
   0x6   : > { %p4351_p4 = pneg %p378_p3  ;;  %454 = sbr.rel (%p378_p3) target bundleno = 1868 (0x74c), region = 80 }
   0x8   : > { %p4352_p5 = pnand %p4355_p2, %p4351_p4 }
   0xa   : > { %4354 = dma.hbm_to_vmem [thread:$0]  (!%p4352_p5), %s404_s21, 24576, %s406_s24, [#allocation3], %s4510_s25, %s4510_s25, %s4511_s26  }
   0xb   : > { %4502 = dma.done.wait (%p4355_p2), [#allocation3], 24576  }
   0xc   : > { %4504 = vsyncadd (%p4355_p2), [#allocation3], 4294942720  ;;  %s4193_s27 = sshll.u32 %s4186_s22, 4  ;;  %v538_v0 = vld [vmem:[%s7262_s1 + $0x38] sm:$0xff]  ;;  %v537_v1 = vld [vmem:[%s7262_s1 + $0x30] sm:$0xff]  ;;  %vm543_vm0 = vcmask 523264  }
   0xd   : > { %p504_p6 = scmp.lt.s32.totalorder %s4193_s27, 31  ;;  %600 = vmatpush.msra.mxu0 %v538_v0  ;;  %v536_v2 = vld [vmem:[%s7262_s1 + $0x28] sm:$0xff]  ;;  %v535_v3 = vld [vmem:[%s7262_s1 + $0x20] sm:$0xff]  ;;  %v534_v4 = vld [vmem:[%s7262_s1 + $0x18] sm:$0xff]  ;;  %vm1109_vm1 = vcmask 1043456   ;;  %vm1060_vm4 = vcmask 31744  }
   0xe   : > { %v533_v5 = vld [vmem:[%s7262_s1 + $0x10] sm:$0xff]  ;;  %v532_v6 = vld [vmem:[%s7262_s1 + $0x8] sm:$0xff]  ;;  %v531_v7 = vld [vmem:[%s7262_s1] sm:$0xff] }
   0xf   : > { %601 = vmatpush.msra.mxu0 %v537_v1  ;;  %s7462_s27 = smov (!%p504_p6, %s4193_s27), 31  ;;  %v672_v17 = vld [vmem:[%s7264_s3 + $0x78] sm:$0xff]  ;;  %v671_v18 = vld [vmem:[%s7264_s3 + $0x70] sm:$0xff]  ;;  %v670_v19 = vld [vmem:[%s7264_s3 + $0x68] sm:$0xff] }
  0x10   : > { %s4194_s24 = sshll.u32 %s7462_s27, 3  ;;  %673 = vmatpush.msra.mxu1 %v672_v17  ;;  %754 = vmatpush.msra.mxu2 %v672_v17  ;;  %v669_v20 = vld [vmem:[%s7264_s3 + $0x60] sm:$0xff]  ;;  %v668_v22 = vld [vmem:[%s7264_s3 + $0x58] sm:$0xff]  ;;  %v667_v23 = vld [vmem:[%s7264_s3 + $0x50] sm:$0xff] }
  0x11   : > { %602 = vmatpush.msra.mxu0 %v536_v2  ;;  %s4632_s17 = scalar_lea.vmem %s7261_s0, %s4194_s24  ;;  %v666_v24 = vld [vmem:[%s7264_s3 + $0x48] sm:$0xff]  ;;  %v665_v25 = vld [vmem:[%s7264_s3 + $0x40] sm:$0xff]  ;;  %v664_v27 = vld [vmem:[%s7264_s3 + $0x38] sm:$0xff] }
  0x12   : > { %v515_v8 = vld [vmem:[%s4632_s17] sm:$0xff]  ;;  %v516_v9 = vld [vmem:[%s4632_s17 + $0x8] sm:$0xff]  ;;  %v517_v10 = vld [vmem:[%s4632_s17 + $0x10] sm:$0xff]  ;;  %674 = vmatpush.msra.mxu1 %v671_v18  ;;  %755 = vmatpush.msra.mxu2 %v671_v18 }
  0x13   : > { %603 = vmatpush.msra.mxu0 %v535_v3  ;;  %v518_v11 = vld [vmem:[%s4632_s17 + $0x18] sm:$0xff]  ;;  %v519_v12 = vld [vmem:[%s4632_s17 + $0x20] sm:$0xff]  ;;  %v520_v13 = vld [vmem:[%s4632_s17 + $0x28] sm:$0xff] }
  0x14   : > { %v521_v14 = vld [vmem:[%s4632_s17 + $0x30] sm:$0xff]  ;;  %v522_v15 = vld [vmem:[%s4632_s17 + $0x38] sm:$0xff]  ;;  %v523_v16 = vld [vmem:[%s4632_s17 + $0x40] sm:$0xff]  ;;  %675 = vmatpush.msra.mxu1 %v670_v19  ;;  %756 = vmatpush.msra.mxu2 %v670_v19 }
  0x15   : > { %604 = vmatpush.msra.mxu0 %v534_v4  ;;  %v524_v21 = vld [vmem:[%s4632_s17 + $0x48] sm:$0xff]  ;;  %v525_v26 = vld [vmem:[%s4632_s17 + $0x50] sm:$0xff]  ;;  %v661_v30 = vld [vmem:[%s7264_s3 + $0x20] sm:$0xff] }
  0x16   : > { %676 = vmatpush.msra.mxu1 %v669_v20  ;;  %757 = vmatpush.msra.mxu2 %v669_v20  ;;  %v663_v28 = vld [vmem:[%s7264_s3 + $0x30] sm:$0xff]  ;;  %v662_v29 = vld [vmem:[%s7264_s3 + $0x28] sm:$0xff]  ;;  %v526_v31 = vld [vmem:[%s4632_s17 + $0x58] sm:$0xff] }
  0x17   : > { %605 = vmatpush.msra.mxu0 %v533_v5  ;;  %v660_v32 = vld [vmem:[%s7264_s3 + $0x18] sm:$0xff]  ;;  %v659_v33 = vld [vmem:[%s7264_s3 + $0x10] sm:$0xff]  ;;  %v658_v34 = vld [vmem:[%s7264_s3 + $0x8] sm:$0xff] }
  0x18   : > { %677 = vmatpush.msra.mxu1 %v668_v22  ;;  %758 = vmatpush.msra.mxu2 %v668_v22  ;;  %v527_v35 = vld [vmem:[%s4632_s17 + $0x60] sm:$0xff]  ;;  %v528_v37 = vld [vmem:[%s4632_s17 + $0x68] sm:$0xff]  ;;  %v529_v38 = vld [vmem:[%s4632_s17 + $0x70] sm:$0xff] }
  0x19   : > { %606 = vmatpush.msra.mxu0 %v532_v6  ;;  %v657_v36 = vld [vmem:[%s7264_s3] sm:$0xff]  ;;  %v530_v39 = vld [vmem:[%s4632_s17 + $0x78] sm:$0xff]  ;;  %s7224_s17 = scalar_lea.vmem %s7276_s15, %s4194_s24 }
  0x1a   : > { %678 = vmatpush.msra.mxu1 %v667_v23  ;;  %759 = vmatpush.msra.mxu2 %v667_v23  ;;  %v4720_v40 = vld [vmem:[%s7263_s2] ss:$0 sm:$0xff] }
  0x1b   : > { %607 = vmatpush.msra.mxu0 %v531_v7 }
  0x1c   : > { %4197 = vmatmul.msk.f32.vlgmr.msra.gmra.mxu0 %vm543_vm0, %v515_v8  ;;  %679 = vmatpush.msra.mxu1 %v666_v24 }
  0x1d   : > { %760 = vmatpush.msra.mxu2 %v666_v24 }
  0x1e   : > { %680 = vmatpush.msra.mxu1 %v665_v25 }
  0x1f   : > { %761 = vmatpush.msra.mxu2 %v665_v25  ;;  %v1059_v25 = vld [vmem:[%s7265_s4] sm:$0xf] }
  0x20   : > { %681 = vmatpush.msra.mxu1 %v664_v27  ;;  %4213 = vmatpush.msk.msra.mxu3 %vm1109_vm1, %v1059_v25 }
  0x21   : > { %762 = vmatpush.msra.mxu2 %v664_v27 }
  0x22   : > { %682 = vmatpush.msra.mxu1 %v663_v28  ;;  %4230 = vmatpush.msk.msrb.mxu3 %vm1109_vm1, %v1059_v25 }
  0x23   : > { %763 = vmatpush.msra.mxu2 %v663_v28 }
  0x24   : > { %4198 = vmatmul.msk.f32.gmra.mxu0 %vm543_vm0, %v516_v9  ;;  %683 = vmatpush.msra.mxu1 %v662_v29 }
  0x25   : > { %764 = vmatpush.msra.mxu2 %v662_v29 }
  0x26   : > { %684 = vmatpush.msra.mxu1 %v661_v30 }
  0x27   : > { %765 = vmatpush.msra.mxu2 %v661_v30 }
  0x28   : > { %685 = vmatpush.msra.mxu1 %v660_v32 }
  0x29   : > { %766 = vmatpush.msra.mxu2 %v660_v32 }
  0x2a   : > { %686 = vmatpush.msra.mxu1 %v659_v33 }
  0x2b   : > { %767 = vmatpush.msra.mxu2 %v659_v33 }
  0x2c   : > { %4199 = vmatmul.msk.f32.gmra.mxu0 %vm543_vm0, %v517_v10  ;;  %687 = vmatpush.msra.mxu1 %v658_v34 }
  0x2d   : > { %768 = vmatpush.msra.mxu2 %v658_v34 }
  0x2e   : > { %688 = vmatpush.msra.mxu1 %v657_v36 }
  0x2f   : > { %769 = vmatpush.msra.mxu2 %v657_v36 }
  0x34   : > { %4200 = vmatmul.msk.f32.gmra.mxu0 %vm543_vm0, %v518_v11 }
  0x3c   : > { %4201 = vmatmul.msk.f32.gmra.mxu0 %vm543_vm0, %v519_v12 }
  0x44   : > { %4202 = vmatmul.msk.f32.gmra.mxu0 %vm543_vm0, %v520_v13 }
  0x4c   : > { %4203 = vmatmul.msk.f32.gmra.mxu0 %vm543_vm0, %v521_v14 }
  0x54   : > { %4204 = vmatmul.msk.f32.gmra.mxu0 %vm543_vm0, %v522_v15 }
  0x5c   : > { %4205 = vmatmul.msk.f32.gmra.mxu0 %vm543_vm0, %v523_v16 }
  0x64   : > { %4206 = vmatmul.msk.f32.gmra.mxu0 %vm543_vm0, %v524_v21 }
  0x6c   : > { %4207 = vmatmul.msk.f32.gmra.mxu0 %vm543_vm0, %v525_v26 }
  0x74   : > { %4208 = vmatmul.msk.f32.gmra.mxu0 %vm543_vm0, %v526_v31 }
  0x7c   : > { %4209 = vmatmul.msk.f32.gmra.mxu0 %vm543_vm0, %v527_v35 }
  0x84   : > { %4210 = vmatmul.msk.f32.gmra.mxu0 %vm543_vm0, %v528_v37 }
  0x8c   : > { %4211 = vmatmul.msk.f32.gmra.mxu0 %vm543_vm0, %v529_v38 }
  0x94   : > { %4212 = vmatmul.msk.f32.gmra.mxu0 %vm543_vm0, %v530_v39 }
  0x99   : > { %v609_v41 = vpop.f32.mrf.mxu0 }
  0x9a   : > { %v4723_v42 = vadd.f32 %v4720_v40, %v609_v41 }
  0x9c   : > { %689 = vmatmul.f32.vlgmr.msra.gmra.mxu1 %v4723_v42  ;;  %v738_v43 = vmul.f32 %v4723_v42, %v4723_v42 }
  0x9e   : > { %770 = vmatmul.f32.vlgmr.msra.gmra.mxu2 %v738_v43 }
  0xa1   : > { %v612_v44 = vpop.f32.mrf.mxu0 }
  0xa2   : > { %v4729_v45 = vadd.f32 %v4720_v40, %v612_v44 }
  0xa4   : > { %692 = vmatmul.f32.gmra.mxu1 %v4729_v45  ;;  %v739_v46 = vmul.f32 %v4729_v45, %v4729_v45 }
  0xa6   : > { %773 = vmatmul.f32.gmra.mxu2 %v739_v46 }
  0xa9   : > { %v615_v47 = vpop.f32.mrf.mxu0 }
  0xaa   : > { %v4735_v48 = vadd.f32 %v4720_v40, %v615_v47 }
  0xac   : > { %695 = vmatmul.f32.gmra.mxu1 %v4735_v48  ;;  %v740_v49 = vmul.f32 %v4735_v48, %v4735_v48 }
  0xae   : > { %776 = vmatmul.f32.gmra.mxu2 %v740_v49 }
  0xb1   : > { %v618_v50 = vpop.f32.mrf.mxu0 }
  0xb2   : > { %v4741_v51 = vadd.f32 %v4720_v40, %v618_v50 }
  0xb4   : > { %698 = vmatmul.f32.gmra.mxu1 %v4741_v51  ;;  %v741_v52 = vmul.f32 %v4741_v51, %v4741_v51 }
  0xb6   : > { %779 = vmatmul.f32.gmra.mxu2 %v741_v52 }
  0xb9   : > { %v621_v53 = vpop.f32.mrf.mxu0 }
  0xba   : > { %v4747_v54 = vadd.f32 %v4720_v40, %v621_v53 }
  0xbc   : > { %701 = vmatmul.f32.gmra.mxu1 %v4747_v54  ;;  %v742_v55 = vmul.f32 %v4747_v54, %v4747_v54 }
  0xbe   : > { %782 = vmatmul.f32.gmra.mxu2 %v742_v55 }
  0xc1   : > { %v624_v56 = vpop.f32.mrf.mxu0 }
  0xc2   : > { %v4753_v57 = vadd.f32 %v4720_v40, %v624_v56 }
  0xc4   : > { %704 = vmatmul.f32.gmra.mxu1 %v4753_v57  ;;  %v743_v58 = vmul.f32 %v4753_v57, %v4753_v57 }
  0xc6   : > { %785 = vmatmul.f32.gmra.mxu2 %v743_v58 }
  0xc9   : > { %v627_v59 = vpop.f32.mrf.mxu0 }
  0xca   : > { %v4759_v60 = vadd.f32 %v4720_v40, %v627_v59 }
  0xcc   : > { %707 = vmatmul.f32.gmra.mxu1 %v4759_v60  ;;  %v744_v61 = vmul.f32 %v4759_v60, %v4759_v60 }
  0xce   : > { %788 = vmatmul.f32.gmra.mxu2 %v744_v61 }
  0xd1   : > { %v630_v62 = vpop.f32.mrf.mxu0 }
  0xd2   : > { %v4765_v63 = vadd.f32 %v4720_v40, %v630_v62 }
  0xd4   : > { %710 = vmatmul.f32.gmra.mxu1 %v4765_v63  ;;  %v745_v0 = vmul.f32 %v4765_v63, %v4765_v63 }
  0xd6   : > { %791 = vmatmul.f32.gmra.mxu2 %v745_v0 }
  0xd9   : > { %v633_v1 = vpop.f32.mrf.mxu0 }
  0xda   : > { %v4771_v2 = vadd.f32 %v4720_v40, %v633_v1 }
  0xdc   : > { %713 = vmatmul.f32.gmra.mxu1 %v4771_v2  ;;  %v746_v3 = vmul.f32 %v4771_v2, %v4771_v2 }
  0xde   : > { %794 = vmatmul.f32.gmra.mxu2 %v746_v3 }
  0xe1   : > { %v636_v4 = vpop.f32.mrf.mxu0 }
  0xe2   : > { %v4777_v5 = vadd.f32 %v4720_v40, %v636_v4 }
  0xe4   : > { %716 = vmatmul.f32.gmra.mxu1 %v4777_v5  ;;  %v747_v6 = vmul.f32 %v4777_v5, %v4777_v5 }
  0xe6   : > { %797 = vmatmul.f32.gmra.mxu2 %v747_v6 }
  0xe9   : > { %v639_v7 = vpop.f32.mrf.mxu0 }
  0xea   : > { %v4783_v8 = vadd.f32 %v4720_v40, %v639_v7 }
  0xec   : > { %719 = vmatmul.f32.gmra.mxu1 %v4783_v8  ;;  %v748_v9 = vmul.f32 %v4783_v8, %v4783_v8 }
  0xee   : > { %800 = vmatmul.f32.gmra.mxu2 %v748_v9 }
  0xf1   : > { %v642_v10 = vpop.f32.mrf.mxu0 }
  0xf2   : > { %v4789_v11 = vadd.f32 %v4720_v40, %v642_v10 }
  0xf4   : > { %722 = vmatmul.f32.gmra.mxu1 %v4789_v11  ;;  %v749_v12 = vmul.f32 %v4789_v11, %v4789_v11 }
  0xf6   : > { %803 = vmatmul.f32.gmra.mxu2 %v749_v12 }
  0xf9   : > { %v645_v13 = vpop.f32.mrf.mxu0 }
  0xfa   : > { %v4795_v14 = vadd.f32 %v4720_v40, %v645_v13 }
  0xfc   : > { %725 = vmatmul.f32.gmra.mxu1 %v4795_v14  ;;  %v750_v15 = vmul.f32 %v4795_v14, %v4795_v14 }
  0xfe   : > { %806 = vmatmul.f32.gmra.mxu2 %v750_v15 }
 0x101   : > { %v648_v16 = vpop.f32.mrf.mxu0 }
 0x102   : > { %v4801_v17 = vadd.f32 %v4720_v40, %v648_v16 }
 0x104   : > { %728 = vmatmul.f32.gmra.mxu1 %v4801_v17  ;;  %v751_v18 = vmul.f32 %v4801_v17, %v4801_v17 }
 0x106   : > { %809 = vmatmul.f32.gmra.mxu2 %v751_v18 }
 0x109   : > { %v651_v19 = vpop.f32.mrf.mxu0 }
 0x10a   : > { %v4807_v20 = vadd.f32 %v4720_v40, %v651_v19 }
 0x10c   : > { %731 = vmatmul.f32.gmra.mxu1 %v4807_v20  ;;  %v752_v21 = vmul.f32 %v4807_v20, %v4807_v20 }
 0x10e   : > { %812 = vmatmul.f32.gmra.mxu2 %v752_v21 }
 0x111   : > { %v654_v22 = vpop.f32.mrf.mxu0 }
 0x112   : > { %v4813_v23 = vadd.f32 %v4720_v40, %v654_v22 }
 0x114   : > { %734 = vmatmul.f32.gmra.mxu1 %v4813_v23  ;;  %v753_v24 = vmul.f32 %v4813_v23, %v4813_v23 }
 0x116   : > { %815 = vmatmul.f32.gmra.mxu2 %v753_v24 }
 0x119   : > { %v690_v26 = vpop.f32.mrf.mxu1 }
 0x11a   : > { %v819_v27 = vmul.f32 0.03125, %v690_v26 }
 0x11c   : > { %v851_v30 = vmul.f32 %v819_v27, %v819_v27 }
 0x121   : > { %v693_v28 = vpop.f32.mrf.mxu1  ;;  %v771_v29 = vpop.f32.mrf.mxu2 }
 0x122   : > { %v835_v31 = vmul.f32 0.03125, %v771_v29  ;;  %v820_v33 = vmul.f32 0.03125, %v693_v28 }
 0x124   : > { %v867_v32 = vsub.f32 %v835_v31, %v851_v30  ;;  %v852_v37 = vmul.f32 %v820_v33, %v820_v33 }
 0x126   : > { %v883_v34 = vadd.f32 1e-05, %v867_v32 }
 0x128   : > { %4371 = vrsqrt.f32 %v883_v34  ;;  %vm905_vm3 = vweird.f32 %v883_v34 }
 0x129   : > { %v696_v35 = vpop.f32.mrf.mxu1  ;;  %v774_v36 = vpop.f32.mrf.mxu2 }
 0x12a   : > { %v836_v38 = vmul.f32 0.03125, %v774_v36  ;;  %v4821_v41 = vmul.f32 0.03125, %v696_v35 }
 0x12c   : > { %v868_v39 = vsub.f32 %v836_v38, %v852_v37  ;;  %v853_v50 = vmul.f32 %v4821_v41, %v4821_v41 }
 0x12e   : > { %v4372_v40 = vpop.eup %4371  ;;  %v884_v43 = vadd.f32 1e-05, %v868_v39 }
 0x12f   : > { %v900_v44 = vmul.f32 %v4372_v40, %v883_v34  ;;  %vm906_vm2 = vweird.f32 %v4372_v40 }
 0x130   : > { %4373 = vrsqrt.f32 %v884_v43  ;;  %vm907_vm5 = vmor %vm905_vm3, %vm906_vm2  ;;  %vm915_vm7 = vweird.f32 %v884_v43 }
 0x131   : > { %v699_v46 = vpop.f32.mrf.mxu1  ;;  %v777_v47 = vpop.f32.mrf.mxu2  ;;  %v901_v49 = vmul.f32 %v4372_v40, %v900_v44 }
 0x132   : > { %v837_v52 = vmul.f32 0.03125, %v777_v47  ;;  %v4825_v59 = vmul.f32 0.03125, %v699_v46 }
 0x133   : > { %v902_v53 = vmul.f32 0.5, %v901_v49 }
 0x134   : > { %v869_v55 = vsub.f32 %v837_v52, %v853_v50  ;;  %v854_v7 = vmul.f32 %v4825_v59, %v4825_v59 }
 0x135   : > { %v903_v56 = vsub.f32 1.5, %v902_v53 }
 0x136   : > { %v4374_v58 = vpop.eup %4373  ;;  %v885_v61 = vadd.f32 1e-05, %v869_v55 }
 0x137   : > { %v910_v62 = vmul.f32 %v4374_v58, %v884_v43  ;;  %v904_v0 = vmul.f32 %v4372_v40, %v903_v56  ;;  %vm916_vm6 = vweird.f32 %v4374_v58 }
 0x138   : > { %4375 = vrsqrt.f32 %v885_v61  ;;  %vm917_vm8 = vmor %vm915_vm7, %vm916_vm6  ;;  %vm925_vm10 = vweird.f32 %v885_v61 }
 0x139   : > { %v702_v1 = vpop.f32.mrf.mxu1  ;;  %v780_v3 = vpop.f32.mrf.mxu2  ;;  %v908_v4 = vsel %vm907_vm5, %v4372_v40, %v904_v0  ;;  %v911_v6 = vmul.f32 %v4374_v58, %v910_v62 }
 0x13a   : > { %v838_v9 = vmul.f32 0.03125, %v780_v3  ;;  %4214 = vmatmul.msk.f32.vlgmr.msra.gmra.mxu3 %vm1060_vm4, %v908_v4  ;;  %v4830_v10 = vmul.f32 %v908_v4, %v819_v27  ;;  %v4832_v18 = vmul.f32 0.03125, %v702_v1 }
 0x13b   : > { %v912_v12 = vmul.f32 0.5, %v911_v6 }
 0x13c   : > { %v870_v13 = vsub.f32 %v838_v9, %v854_v7  ;;  %v855_v27 = vmul.f32 %v4832_v18, %v4832_v18 }
 0x13d   : > { %v913_v15 = vsub.f32 1.5, %v912_v12 }
 0x13e   : > { %v4376_v16 = vpop.eup %4375  ;;  %v886_v19 = vadd.f32 1e-05, %v870_v13 }
 0x13f   : > { %v920_v21 = vmul.f32 %v4376_v16, %v885_v61  ;;  %v914_v22 = vmul.f32 %v4374_v58, %v913_v15  ;;  %vm926_vm9 = vweird.f32 %v4376_v16 }
 0x140   : > { %4377 = vrsqrt.f32 %v886_v19  ;;  %vm927_vm11 = vmor %vm925_vm10, %vm926_vm9  ;;  %vm935_vm13 = vweird.f32 %v886_v19 }
 0x141   : > { %v705_v24 = vpop.f32.mrf.mxu1  ;;  %v783_v25 = vpop.f32.mrf.mxu2  ;;  %v918_v26 = vsel %vm917_vm8, %v4374_v58, %v914_v22  ;;  %v921_v28 = vmul.f32 %v4376_v16, %v920_v21 }
 0x142   : > { %v839_v29 = vmul.f32 0.03125, %v783_v25  ;;  %4215 = vmatmul.msk.f32.gmra.mxu3 %vm1060_vm4, %v918_v26  ;;  %v4837_v30 = vmul.f32 %v918_v26, %v820_v33  ;;  %v4839_v36 = vmul.f32 0.03125, %v705_v24 }
 0x143   : > { %v922_v31 = vmul.f32 0.5, %v921_v28 }
 0x144   : > { %v871_v32 = vsub.f32 %v839_v29, %v855_v27  ;;  %v856_v33 = vmul.f32 %v4839_v36, %v4839_v36 }
 0x145   : > { %v923_v34 = vsub.f32 1.5, %v922_v31 }
 0x146   : > { %v4378_v35 = vpop.eup %4377  ;;  %v887_v37 = vadd.f32 1e-05, %v871_v32 }
 0x147   : > { %v930_v38 = vmul.f32 %v4378_v35, %v886_v19  ;;  %v924_v39 = vmul.f32 %v4376_v16, %v923_v34  ;;  %vm936_vm12 = vweird.f32 %v4378_v35 }
 0x148   : > { %4379 = vrsqrt.f32 %v887_v37  ;;  %vm937_vm14 = vmor %vm935_vm13, %vm936_vm12  ;;  %vm945_vm1 = vweird.f32 %v887_v37 }
 0x149   : > { %v708_v40 = vpop.f32.mrf.mxu1  ;;  %v786_v43 = vpop.f32.mrf.mxu2  ;;  %v928_v44 = vsel %vm927_vm11, %v4376_v16, %v924_v39  ;;  %v931_v46 = vmul.f32 %v4378_v35, %v930_v38 }
 0x14a   : > { %v840_v47 = vmul.f32 0.03125, %v786_v43  ;;  %4216 = vmatmul.msk.f32.gmra.mxu3 %vm1060_vm4, %v928_v44  ;;  %v4845_v49 = vmul.f32 %v928_v44, %v4821_v41  ;;  %v4847_v56 = vmul.f32 0.03125, %v708_v40 }
 0x14b   : > { %v932_v50 = vmul.f32 0.5, %v931_v46 }
 0x14c   : > { %v872_v52 = vsub.f32 %v840_v47, %v856_v33  ;;  %v857_v41 = vmul.f32 %v4847_v56, %v4847_v56 }
 0x14d   : > { %v933_v53 = vsub.f32 1.5, %v932_v50 }
 0x14e   : > { %v4380_v55 = vpop.eup %4379  ;;  %v888_v58 = vadd.f32 1e-05, %v872_v52 }
 0x14f   : > { %v940_v61 = vmul.f32 %v4380_v55, %v887_v37  ;;  %v934_v62 = vmul.f32 %v4378_v35, %v933_v53  ;;  %vm946_vm15 = vweird.f32 %v4380_v55 }
 0x150   : > { %4381 = vrsqrt.f32 %v888_v58  ;;  %vm947_vm2 = vmor %vm945_vm1, %vm946_vm15  ;;  %vm955_vm5 = vweird.f32 %v888_v58 }
 0x151   : > { %v711_v0 = vpop.f32.mrf.mxu1  ;;  %v789_v1 = vpop.f32.mrf.mxu2  ;;  %v938_v3 = vsel %vm937_vm14, %v4378_v35, %v934_v62  ;;  %v941_v4 = vmul.f32 %v4380_v55, %v940_v61 }
 0x152   : > { %v841_v6 = vmul.f32 0.03125, %v789_v1  ;;  %4217 = vmatmul.msk.f32.gmra.mxu3 %vm1060_vm4, %v938_v3  ;;  %v4853_v7 = vmul.f32 %v938_v3, %v4825_v59  ;;  %v4855_v16 = vmul.f32 0.03125, %v711_v0 }
 0x153   : > { %v942_v9 = vmul.f32 0.5, %v941_v4 }
 0x154   : > { %v873_v12 = vsub.f32 %v841_v6, %v857_v41  ;;  %v858_v59 = vmul.f32 %v4855_v16, %v4855_v16 }
 0x155   : > { %v943_v13 = vsub.f32 1.5, %v942_v9 }
 0x156   : > { %v4382_v15 = vpop.eup %4381  ;;  %v889_v19 = vadd.f32 1e-05, %v873_v12 }
 0x157   : > { %v950_v21 = vmul.f32 %v4382_v15, %v888_v58  ;;  %v944_v22 = vmul.f32 %v4380_v55, %v943_v13  ;;  %vm956_vm3 = vweird.f32 %v4382_v15 }
 0x158   : > { %4383 = vrsqrt.f32 %v889_v19  ;;  %vm957_vm6 = vmor %vm955_vm5, %vm956_vm3  ;;  %vm965_vm8 = vweird.f32 %v889_v19 }
 0x159   : > { %v714_v24 = vpop.f32.mrf.mxu1  ;;  %v792_v25 = vpop.f32.mrf.mxu2  ;;  %v948_v26 = vsel %vm947_vm2, %v4380_v55, %v944_v22  ;;  %v951_v28 = vmul.f32 %v4382_v15, %v950_v21 }
 0x15a   : > { %v842_v27 = vmul.f32 0.03125, %v792_v25  ;;  %4218 = vmatmul.msk.f32.gmra.mxu3 %vm1060_vm4, %v948_v26  ;;  %v4861_v29 = vmul.f32 %v948_v26, %v4832_v18  ;;  %v4863_v37 = vmul.f32 0.03125, %v714_v24 }
 0x15b   : > { %v952_v31 = vmul.f32 0.5, %v951_v28 }
 0x15c   : > { %v874_v32 = vsub.f32 %v842_v27, %v858_v59  ;;  %v859_v18 = vmul.f32 %v4863_v37, %v4863_v37 }
 0x15d   : > { %v953_v34 = vsub.f32 1.5, %v952_v31 }
 0x15e   : > { %v4384_v35 = vpop.eup %4383  ;;  %v890_v38 = vadd.f32 1e-05, %v874_v32 }
 0x15f   : > { %v960_v39 = vmul.f32 %v4384_v35, %v889_v19  ;;  %v954_v40 = vmul.f32 %v4382_v15, %v953_v34  ;;  %vm966_vm7 = vweird.f32 %v4384_v35 }
 0x160   : > { %4385 = vrsqrt.f32 %v890_v38  ;;  %vm967_vm9 = vmor %vm965_vm8, %vm966_vm7  ;;  %vm975_vm11 = vweird.f32 %v890_v38 }
 0x161   : > { %v717_v43 = vpop.f32.mrf.mxu1  ;;  %v795_v44 = vpop.f32.mrf.mxu2  ;;  %v958_v46 = vsel %vm957_vm6, %v4382_v15, %v954_v40  ;;  %v961_v33 = vmul.f32 %v4384_v35, %v960_v39 }
 0x162   : > { %v843_v47 = vmul.f32 0.03125, %v795_v44  ;;  %4219 = vmatmul.msk.f32.gmra.mxu3 %vm1060_vm4, %v958_v46  ;;  %v4869_v50 = vmul.f32 %v958_v46, %v4839_v36  ;;  %v4871_v61 = vmul.f32 0.03125, %v717_v43 }
 0x163   : > { %v962_v52 = vmul.f32 0.5, %v961_v33 }
 0x164   : > { %v875_v53 = vsub.f32 %v843_v47, %v859_v18  ;;  %v860_v36 = vmul.f32 %v4871_v61, %v4871_v61 }
 0x165   : > { %v963_v55 = vsub.f32 1.5, %v962_v52 }
 0x166   : > { %v4386_v58 = vpop.eup %4385  ;;  %v891_v62 = vadd.f32 1e-05, %v875_v53 }
 0x167   : > { %v970_v0 = vmul.f32 %v4386_v58, %v890_v38  ;;  %v964_v1 = vmul.f32 %v4384_v35, %v963_v55  ;;  %vm976_vm10 = vweird.f32 %v4386_v58 }
 0x168   : > { %4387 = vrsqrt.f32 %v891_v62  ;;  %vm977_vm12 = vmor %vm975_vm11, %vm976_vm10  ;;  %vm985_vm14 = vweird.f32 %v891_v62 }
 0x169   : > { %v720_v3 = vpop.f32.mrf.mxu1  ;;  %v798_v4 = vpop.f32.mrf.mxu2  ;;  %v968_v41 = vsel %vm967_vm9, %v4384_v35, %v964_v1  ;;  %v971_v6 = vmul.f32 %v4386_v58, %v970_v0 }
 0x16a   : > { %v844_v9 = vmul.f32 0.03125, %v798_v4  ;;  %4220 = vmatmul.msk.f32.gmra.mxu3 %vm1060_vm4, %v968_v41  ;;  %v4877_v12 = vmul.f32 %v968_v41, %v4847_v56  ;;  %v4879_v22 = vmul.f32 0.03125, %v720_v3 }
 0x16b   : > { %v972_v13 = vmul.f32 0.5, %v971_v6 }
 0x16c   : > { %v876_v15 = vsub.f32 %v844_v9, %v860_v36  ;;  %v861_v56 = vmul.f32 %v4879_v22, %v4879_v22 }
 0x16d   : > { %v973_v21 = vsub.f32 1.5, %v972_v13 }
 0x16e   : > { %v4388_v19 = vpop.eup %4387  ;;  %v892_v24 = vadd.f32 1e-05, %v876_v15 }
 0x16f   : > { %v980_v25 = vmul.f32 %v4388_v19, %v891_v62  ;;  %v974_v26 = vmul.f32 %v4386_v58, %v973_v21  ;;  %vm986_vm13 = vweird.f32 %v4388_v19 }
 0x170   : > { %4389 = vrsqrt.f32 %v892_v24  ;;  %vm987_vm15 = vmor %vm985_vm14, %vm986_vm13  ;;  %vm995_vm2 = vweird.f32 %v892_v24 }
 0x171   : > { %v723_v28 = vpop.f32.mrf.mxu1  ;;  %v801_v59 = vpop.f32.mrf.mxu2  ;;  %v978_v27 = vsel %vm977_vm12, %v4386_v58, %v974_v26  ;;  %v981_v31 = vmul.f32 %v4388_v19, %v980_v25 }
 0x172   : > { %v845_v32 = vmul.f32 0.03125, %v801_v59  ;;  %4221 = vmatmul.msk.f32.gmra.mxu3 %vm1060_vm4, %v978_v27  ;;  %v4885_v34 = vmul.f32 %v978_v27, %v4855_v16  ;;  %v4887_v43 = vmul.f32 0.03125, %v723_v28 }
 0x173   : > { %v982_v35 = vmul.f32 0.5, %v981_v31 }
 0x174   : > { %v877_v39 = vsub.f32 %v845_v32, %v861_v56  ;;  %v862_v16 = vmul.f32 %v4887_v43, %v4887_v43 }
 0x175   : > { %v983_v40 = vsub.f32 1.5, %v982_v35 }
 0x176   : > { %v4390_v38 = vpop.eup %4389  ;;  %v893_v44 = vadd.f32 1e-05, %v877_v39 }
 0x177   : > { %v990_v46 = vmul.f32 %v4390_v38, %v892_v24  ;;  %v984_v33 = vmul.f32 %v4388_v19, %v983_v40  ;;  %vm996_vm1 = vweird.f32 %v4390_v38 }
 0x178   : > { %4391 = vrsqrt.f32 %v893_v44  ;;  %vm997_vm3 = vmor %vm995_vm2, %vm996_vm1  ;;  %vm1005_vm6 = vweird.f32 %v893_v44 }
 0x179   : > { %v726_v18 = vpop.f32.mrf.mxu1  ;;  %v804_v47 = vpop.f32.mrf.mxu2  ;;  %v988_v52 = vsel %vm987_vm15, %v4388_v19, %v984_v33  ;;  %v991_v53 = vmul.f32 %v4390_v38, %v990_v46 }
 0x17a   : > { %v846_v55 = vmul.f32 0.03125, %v804_v47  ;;  %4222 = vmatmul.msk.f32.gmra.mxu3 %vm1060_vm4, %v988_v52  ;;  %v4893_v58 = vmul.f32 %v988_v52, %v4863_v37  ;;  %v4895_v4 = vmul.f32 0.03125, %v726_v18 }
 0x17b   : > { %v992_v0 = vmul.f32 0.5, %v991_v53 }
 0x17c   : > { %v878_v1 = vsub.f32 %v846_v55, %v862_v16  ;;  %v863_v37 = vmul.f32 %v4895_v4, %v4895_v4 }
 0x17d   : > { %v993_v3 = vsub.f32 1.5, %v992_v0 }
 0x17e   : > { %v4392_v62 = vpop.eup %4391  ;;  %v894_v41 = vadd.f32 1e-05, %v878_v1 }
 0x17f   : > { %v1000_v6 = vmul.f32 %v4392_v62, %v893_v44  ;;  %v994_v36 = vmul.f32 %v4390_v38, %v993_v3  ;;  %vm1006_vm5 = vweird.f32 %v4392_v62 }
 0x180   : > { %4393 = vrsqrt.f32 %v894_v41  ;;  %vm1007_vm7 = vmor %vm1005_vm6, %vm1006_vm5  ;;  %vm1015_vm9 = vweird.f32 %v894_v41 }
 0x181   : > { %v729_v9 = vpop.f32.mrf.mxu1  ;;  %v807_v13 = vpop.f32.mrf.mxu2  ;;  %v998_v15 = vsel %vm997_vm3, %v4390_v38, %v994_v36  ;;  %v1001_v21 = vmul.f32 %v4392_v62, %v1000_v6 }
 0x182   : > { %v847_v19 = vmul.f32 0.03125, %v807_v13  ;;  %4223 = vmatmul.msk.f32.gmra.mxu3 %vm1060_vm4, %v998_v15  ;;  %v4901_v25 = vmul.f32 %v998_v15, %v4871_v61  ;;  %v4903_v27 = vmul.f32 0.03125, %v729_v9 }
 0x183   : > { %v1002_v26 = vmul.f32 0.5, %v1001_v21 }
 0x184   : > { %v879_v28 = vsub.f32 %v847_v19, %v863_v37  ;;  %v864_v61 = vmul.f32 %v4903_v27, %v4903_v27 }
 0x185   : > { %v1003_v59 = vsub.f32 1.5, %v1002_v26 }
 0x186   : > { %v4394_v24 = vpop.eup %4393  ;;  %v895_v31 = vadd.f32 1e-05, %v879_v28 }
 0x187   : > { %v1010_v56 = vmul.f32 %v4394_v24, %v894_v41  ;;  %v1004_v32 = vmul.f32 %v4392_v62, %v1003_v59  ;;  %vm1016_vm8 = vweird.f32 %v4394_v24 }
 0x188   : > { %4395 = vrsqrt.f32 %v895_v31  ;;  %vm1017_vm10 = vmor %vm1015_vm9, %vm1016_vm8  ;;  %vm1025_vm12 = vweird.f32 %v895_v31 }
 0x189   : > { %v732_v35 = vpop.f32.mrf.mxu1  ;;  %v810_v39 = vpop.f32.mrf.mxu2  ;;  %v1008_v40 = vsel %vm1007_vm7, %v4392_v62, %v1004_v32  ;;  %v1011_v38 = vmul.f32 %v4394_v24, %v1010_v56 }
 0x18a   : > { %v848_v46 = vmul.f32 0.03125, %v810_v39  ;;  %4224 = vmatmul.msk.f32.gmra.mxu3 %vm1060_vm4, %v1008_v40  ;;  %v4909_v33 = vmul.f32 %v1008_v40, %v4879_v22  ;;  %v4911_v53 = vmul.f32 0.03125, %v732_v35 }
 0x18b   : > { %v1012_v18 = vmul.f32 0.5, %v1011_v38 }
 0x18c   : > { %v880_v47 = vsub.f32 %v848_v46, %v864_v61  ;;  %v865_v22 = vmul.f32 %v4911_v53, %v4911_v53 }
 0x18d   : > { %v1013_v52 = vsub.f32 1.5, %v1012_v18 }
 0x18e   : > { %v4396_v44 = vpop.eup %4395  ;;  %v896_v16 = vadd.f32 1e-05, %v880_v47 }
 0x18f   : > { %v1020_v55 = vmul.f32 %v4396_v44, %v895_v31  ;;  %v1014_v0 = vmul.f32 %v4394_v24, %v1013_v52  ;;  %vm1026_vm11 = vweird.f32 %v4396_v44 }
 0x190   : > { %4397 = vrsqrt.f32 %v896_v16  ;;  %vm1027_vm13 = vmor %vm1025_vm12, %vm1026_vm11  ;;  %vm1035_vm15 = vweird.f32 %v896_v16 }
 0x191   : > { %v813_v1 = vpop.f32.mrf.mxu2  ;;  %v1018_v3 = vsel %vm1017_vm10, %v4394_v24, %v1014_v0  ;;  %v1021_v62 = vmul.f32 %v4396_v44, %v1020_v55  ;;  %v735_v9 = vpop.f32.mrf.mxu1  ;;  %v1542_v55 = vld [vmem:[#allocation2 + $0x5b8] sm:$0xff] }
 0x192   : > { %v849_v6 = vmul.f32 0.03125, %v813_v1  ;;  %4225 = vmatmul.msk.f32.gmra.mxu3 %vm1060_vm4, %v1018_v3  ;;  %v4917_v36 = vmul.f32 %v1018_v3, %v4887_v43  ;;  %v4919_v37 = vmul.f32 0.03125, %v735_v9 }
 0x193   : > { %v1022_v13 = vmul.f32 0.5, %v1021_v62  ;;  %1774 = vmatpush.msra.mxu3 %v1542_v55  ;;  %v1539_v62 = vld [vmem:[#allocation2 + $0x5a0] sm:$0xff]  ;;  %v1482_v55 = vld [vmem:[#allocation2 + $0x3d8] sm:$0xff] }
 0x194   : > { %v881_v15 = vsub.f32 %v849_v6, %v865_v22  ;;  %v866_v43 = vmul.f32 %v4919_v37, %v4919_v37  ;;  %v1540_v22 = vld [vmem:[#allocation2 + $0x5a8] sm:$0xff]  ;;  %1579 = vmatpush.msrb.mxu0 %v1539_v62  ;;  %v1470_v62 = vld [vmem:[#allocation2 + $0x378] sm:$0xff] }
 0x195   : > { %v1023_v21 = vsub.f32 1.5, %v1022_v13  ;;  %1644 = vmatpush.msrb.mxu1 %v1540_v22 }
 0x196   : > { %v4398_v41 = vpop.eup %4397  ;;  %v897_v19 = vadd.f32 1e-05, %v881_v15  ;;  %v1529_v15 = vld [vmem:[#allocation2 + $0x550] sm:$0xff] }
 0x197   : > { %v1030_v26 = vmul.f32 %v4398_v41, %v896_v16  ;;  %v1024_v28 = vmul.f32 %v4396_v44, %v1023_v21  ;;  %vm1036_vm14 = vweird.f32 %v4398_v41  ;;  %v1530_v21 = vld [vmem:[#allocation2 + $0x558] sm:$0xff] }
 0x198   : > { %4399 = vrsqrt.f32 %v897_v19  ;;  %vm1037_vm1 = vmor %vm1035_vm15, %vm1036_vm14  ;;  %vm1045_vm3 = vweird.f32 %v897_v19  ;;  %1775 = vmatpush.msra.mxu3 %v1530_v21  ;;  %v1445_v21 = vld [vmem:[#allocation2 + $0x2b0] sm:$0xff] }
 0x199   : > { %v816_v59 = vpop.f32.mrf.mxu2  ;;  %v1028_v24 = vsel %vm1027_vm13, %v4396_v44, %v1024_v28  ;;  %v1031_v56 = vmul.f32 %v4398_v41, %v1030_v26  ;;  %v1527_v28 = vld [vmem:[#allocation2 + $0x540] sm:$0xff] }
 0x19a   : > { %v850_v32 = vmul.f32 0.03125, %v816_v59  ;;  %4226 = vmatmul.msk.f32.gmra.mxu3 %vm1060_vm4, %v1028_v24  ;;  %v4925_v35 = vmul.f32 %v1028_v24, %v4895_v4  ;;  %v1541_v4 = vld [vmem:[#allocation2 + $0x5b0] sm:$0xff]  ;;  %v1528_v59 = vld [vmem:[#allocation2 + $0x548] sm:$0xff]  ;;  %1580 = vmatpush.msrb.mxu0 %v1527_v28 }
 0x19b   : > { %v1032_v39 = vmul.f32 0.5, %v1031_v56  ;;  %1709 = vmatpush.msrb.mxu2 %v1541_v4  ;;  %1645 = vmatpush.msrb.mxu1 %v1528_v59  ;;  %v1517_v56 = vld [vmem:[#allocation2 + $0x4f0] sm:$0xff]  ;;  %v1444_v28 = vld [vmem:[#allocation2 + $0x2a8] sm:$0xff] }
 0x19c   : > { %v882_v40 = vsub.f32 %v850_v32, %v866_v43  ;;  %v1518_v43 = vld [vmem:[#allocation2 + $0x4f8] sm:$0xff]  ;;  %v1515_v32 = vld [vmem:[#allocation2 + $0x4e0] sm:$0xff]  ;;  %v1481_v4 = vld [vmem:[#allocation2 + $0x3d0] sm:$0xff] }
 0x19d   : > { %v1033_v38 = vsub.f32 1.5, %v1032_v39  ;;  %1710 = vmatpush.msrb.mxu2 %v1529_v15  ;;  %1776 = vmatpush.msra.mxu3 %v1518_v43  ;;  %v1516_v39 = vld [vmem:[#allocation2 + $0x4e8] sm:$0xff]  ;;  %v1433_v59 = vld [vmem:[#allocation2 + $0x250] sm:$0xff] }
 0x19e   : > { %v4400_v61 = vpop.eup %4399  ;;  %v898_v31 = vadd.f32 1e-05, %v882_v40  ;;  %1581 = vmatpush.msrb.mxu0 %v1515_v32  ;;  %1646 = vmatpush.msrb.mxu1 %v1516_v39  ;;  %v1505_v40 = vld [vmem:[#allocation2 + $0x490] sm:$0xff]  ;;  %v1456_v15 = vld [vmem:[#allocation2 + $0x308] sm:$0xff]  ;;  %v1422_v32 = vld [vmem:[#allocation2 + $0x1f8] sm:$0xff] }
 0x19f   : > { %v1040_v46 = vmul.f32 %v4400_v61, %v897_v19  ;;  %v1034_v18 = vmul.f32 %v4398_v41, %v1033_v38  ;;  %vm1046_vm2 = vweird.f32 %v4400_v61  ;;  %1711 = vmatpush.msrb.mxu2 %v1517_v56  ;;  %v1506_v38 = vld [vmem:[#allocation2 + $0x498] sm:$0xff]  ;;  %v1432_v56 = vld [vmem:[#allocation2 + $0x248] sm:$0xff]  ;;  %v1421_v43 = vld [vmem:[#allocation2 + $0x1f0] sm:$0xff] }
 0x1a0   : > { %4401 = vrsqrt.f32 %v898_v31  ;;  %vm1047_vm5 = vmor %vm1045_vm3, %vm1046_vm2  ;;  %vm1055_vm7 = vweird.f32 %v898_v31  ;;  %1777 = vmatpush.msra.mxu3 %v1506_v38  ;;  %v1409_v38 = vld [vmem:[#allocation2 + $0x190] sm:$0xff] }
 0x1a1   : > { %v1038_v47 = vsel %vm1037_vm1, %v4398_v41, %v1034_v18  ;;  %v1041_v52 = vmul.f32 %v4400_v61, %v1040_v46  ;;  %1712 = vmatpush.msrb.mxu2 %v1505_v40  ;;  %v1493_v46 = vld [vmem:[#allocation2 + $0x430] sm:$0xff]  ;;  %v1494_v18 = vld [vmem:[#allocation2 + $0x438] sm:$0xff]  ;;  %v1420_v40 = vld [vmem:[#allocation2 + $0x1e8] sm:$0xff] }
 0x1a2   : > { %4227 = vmatmul.msk.f32.gmra.mxu3 %vm1060_vm4, %v1038_v47  ;;  %v4929_v44 = vmul.f32 %v1038_v47, %v4903_v27 }
 0x1a3   : > { %v1042_v0 = vmul.f32 0.5, %v1041_v52  ;;  %1713 = vmatpush.msrb.mxu2 %v1493_v46  ;;  %1778 = vmatpush.msra.mxu3 %v1494_v18  ;;  %v1492_v52 = vld [vmem:[#allocation2 + $0x428] sm:$0xff]  ;;  %v1397_v18 = vld [vmem:[#allocation2 + $0x130] sm:$0xff] }
 0x1a4   : > { %v1408_v46 = vld [vmem:[#allocation2 + $0x188] sm:$0xff] }
 0x1a5   : > { %v1043_v1 = vsub.f32 1.5, %v1042_v0  ;;  %1714 = vmatpush.msrb.mxu2 %v1481_v4  ;;  %1779 = vmatpush.msra.mxu3 %v1482_v55  ;;  %v1396_v4 = vld [vmem:[#allocation2 + $0x128] sm:$0xff]  ;;  %v1385_v55 = vld [vmem:[#allocation2 + $0xd0] sm:$0xff] }
 0x1a6   : > { %v4402_v3 = vpop.eup %4401 }
 0x1a7   : > { %v1050_v16 = vmul.f32 %v4402_v3, %v898_v31  ;;  %v1044_v6 = vmul.f32 %v4400_v61, %v1043_v1  ;;  %vm1056_vm6 = vweird.f32 %v4402_v3  ;;  %v1503_v31 = vld [vmem:[#allocation2 + $0x480] sm:$0xff]  ;;  %v1480_v1 = vld [vmem:[#allocation2 + $0x3c8] sm:$0xff]  ;;  %1780 = vmatpush.msra.mxu3 %v1470_v62  ;;  %v1373_v62 = vld [vmem:[#allocation2 + $0x70] sm:$0xff] }
 0x1a8   : > { %vm1057_vm8 = vmor %vm1055_vm7, %vm1056_vm6  ;;  %1582 = vmatpush.msrb.mxu0 %v1503_v31  ;;  %v1410_v31 = vld [vmem:[#allocation2 + $0x198] sm:$0xff] }
 0x1a9   : > { %v1048_v9 = vsel %vm1047_vm5, %v4400_v61, %v1044_v6  ;;  %v1051_v13 = vmul.f32 %v4402_v3, %v1050_v16  ;;  %v1468_v16 = vld [vmem:[#allocation2 + $0x368] sm:$0xff]  ;;  %v1457_v6 = vld [vmem:[#allocation2 + $0x310] sm:$0xff] }
 0x1aa   : > { %4228 = vmatmul.msk.f32.gmra.mxu3 %vm1060_vm4, %v1048_v9  ;;  %v4933_v27 = vmul.f32 %v1048_v9, %v4911_v53  ;;  %v1458_v9 = vld [vmem:[#allocation2 + $0x318] sm:$0xff] }
 0x1ab   : > { %v1052_v41 = vmul.f32 0.5, %v1051_v13  ;;  %1781 = vmatpush.msra.mxu3 %v1458_v9  ;;  %v1361_v9 = vld [vmem:[#allocation2 + $0x10] sm:$0xff] }
 0x1ad   : > { %v1053_v26 = vsub.f32 1.5, %v1052_v41  ;;  %v1446_v41 = vld [vmem:[#allocation2 + $0x2b8] sm:$0xff] }
 0x1ae   : > { %1782 = vmatpush.msra.mxu3 %v1446_v41  ;;  %v1545_v41 = vld [vmem:[#allocation2 + $0x5d0] sm:$0xff] }
 0x1af   : > { %v1054_v19 = vmul.f32 %v4402_v3, %v1053_v26 }
 0x1b1   : > { %v1058_v24 = vsel %vm1057_vm8, %v4402_v3, %v1054_v19  ;;  %v1469_v3 = vld [vmem:[#allocation2 + $0x370] sm:$0xff]  ;;  %v1434_v19 = vld [vmem:[#allocation2 + $0x258] sm:$0xff] }
 0x1b2   : > { %4229 = vmatmul.msk.f32.gmra.mxu3 %vm1060_vm4, %v1058_v24  ;;  %v4937_v53 = vmul.f32 %v1058_v24, %v4919_v37  ;;  %v1504_v37 = vld [vmem:[#allocation2 + $0x488] sm:$0xff]  ;;  %1715 = vmatpush.msrb.mxu2 %v1469_v3 }
 0x1b3   : > { %1647 = vmatpush.msrb.mxu1 %v1504_v37  ;;  %1783 = vmatpush.msra.mxu3 %v1434_v19  ;;  %v1384_v3 = vld [vmem:[#allocation2 + $0xc8] sm:$0xff] }
 0x1b4   : > { %1716 = vmatpush.msrb.mxu2 %v1457_v6  ;;  %v1372_v6 = vld [vmem:[#allocation2 + $0x68] sm:$0xff] }
 0x1b5   : > { %1648 = vmatpush.msrb.mxu1 %v1492_v52  ;;  %1784 = vmatpush.msra.mxu3 %v1422_v32  ;;  %v1544_v19 = vld [vmem:[#allocation2 + $0x5c8] sm:$0xff]  ;;  %v1521_v32 = vld [vmem:[#allocation2 + $0x510] sm:$0xff] }
 0x1b6   : > { %1717 = vmatpush.msrb.mxu2 %v1445_v21  ;;  %v1360_v21 = vld [vmem:[#allocation2 + $0x8] sm:$0xff] }
 0x1b7   : > { %1649 = vmatpush.msrb.mxu1 %v1480_v1  ;;  %1785 = vmatpush.msra.mxu3 %v1410_v31  ;;  %v1509_v31 = vld [vmem:[#allocation2 + $0x4b0] sm:$0xff] }
 0x1b8   : > { %1718 = vmatpush.msrb.mxu2 %v1433_v59  ;;  %v1543_v59 = vld [vmem:[#allocation2 + $0x5c0] sm:$0xff] }
 0x1b9   : > { %1650 = vmatpush.msrb.mxu1 %v1468_v16 }
 0x1ba   : > { %4231 = vmatmul.msk.f32.vlgmr.msrb.gmra.mxu3 %vm1060_vm4, %v4830_v10  ;;  %v1491_v10 = vld [vmem:[#allocation2 + $0x420] sm:$0xff]  ;;  %1719 = vmatpush.msrb.mxu2 %v1421_v43  ;;  %v1532_v43 = vld [vmem:[#allocation2 + $0x568] sm:$0xff] }
 0x1bb   : > { %1583 = vmatpush.msrb.mxu0 %v1491_v10  ;;  %1651 = vmatpush.msrb.mxu1 %v1456_v15  ;;  %v1398_v10 = vld [vmem:[#allocation2 + $0x138] sm:$0xff] }
 0x1bc   : > { %1720 = vmatpush.msrb.mxu2 %v1409_v38  ;;  %1786 = vmatpush.msra.mxu3 %v1398_v10  ;;  %v1520_v38 = vld [vmem:[#allocation2 + $0x508] sm:$0xff] }
 0x1bd   : > { %v4941_v61 = vpop.f32.mrf.mxu3  ;;  %1652 = vmatpush.msrb.mxu1 %v1444_v28 }
 0x1be   : > { %1721 = vmatpush.msrb.mxu2 %v1397_v18  ;;  %v5008_v18 = vld [vmem:[%s7266_s5] ss:$0 sm:$0xff] }
 0x1bf   : > { %1653 = vmatpush.msrb.mxu1 %v1432_v56 }
 0x1c0   : > { %1722 = vmatpush.msrb.mxu2 %v1385_v55  ;;  %v1508_v55 = vld [vmem:[#allocation2 + $0x4a8] sm:$0xff] }
 0x1c1   : > { %1654 = vmatpush.msrb.mxu1 %v1420_v40 }
 0x1c2   : > { %4232 = vmatmul.msk.f32.gmra.mxu3 %vm1060_vm4, %v4837_v30  ;;  %v1479_v30 = vld [vmem:[#allocation2 + $0x3c0] sm:$0xff]  ;;  %1723 = vmatpush.msrb.mxu2 %v1373_v62 }
 0x1c3   : > { %1584 = vmatpush.msrb.mxu0 %v1479_v30  ;;  %1655 = vmatpush.msrb.mxu1 %v1408_v46  ;;  %v1386_v30 = vld [vmem:[#allocation2 + $0xd8] sm:$0xff]  ;;  %v1307_v46 = vmul.f32 %v4941_v61, %v4723_v42  ;;  %v1497_v42 = vld [vmem:[#allocation2 + $0x450] sm:$0xff] }
 0x1c4   : > { %1787 = vmatpush.msra.mxu3 %v1386_v30  ;;  %1724 = vmatpush.msrb.mxu2 %v1361_v9  ;;  %v1498_v61 = vld [vmem:[#allocation2 + $0x458] sm:$0xff] }
 0x1c5   : > { %v4945_v47 = vpop.f32.mrf.mxu3  ;;  %1656 = vmatpush.msrb.mxu1 %v1396_v4  ;;  %v1507_v4 = vld [vmem:[#allocation2 + $0x4a0] sm:$0xff] }
 0x1c6   : > { %1969 = vmatpush.msra.mxu2 %v1545_v41  ;;  %v1308_v30 = vmul.f32 %v4945_v47, %v4729_v45  ;;  %v1485_v45 = vld [vmem:[#allocation2 + $0x3f0] sm:$0xff]  ;;  %v1486_v47 = vld [vmem:[#allocation2 + $0x3f8] sm:$0xff]  ;;  %v1484_v41 = vld [vmem:[#allocation2 + $0x3e8] sm:$0xff] }
 0x1c7   : > { %1657 = vmatpush.msrb.mxu1 %v1384_v3 }
 0x1c9   : > { %1658 = vmatpush.msrb.mxu1 %v1372_v6 }
 0x1ca   : > { %4233 = vmatmul.msk.f32.gmra.mxu3 %vm1060_vm4, %v4845_v49  ;;  %v1467_v49 = vld [vmem:[#allocation2 + $0x360] sm:$0xff] }
 0x1cb   : > { %1585 = vmatpush.msrb.mxu0 %v1467_v49  ;;  %v1374_v49 = vld [vmem:[#allocation2 + $0x78] sm:$0xff]  ;;  %1659 = vmatpush.msrb.mxu1 %v1360_v21  ;;  %v1483_v21 = vld [vmem:[#allocation2 + $0x3e0] sm:$0xff] }
 0x1cc   : > { %1788 = vmatpush.msra.mxu3 %v1374_v49  ;;  %v1495_v49 = vld [vmem:[#allocation2 + $0x440] sm:$0xff] }
 0x1cd   : > { %v4949_v0 = vpop.f32.mrf.mxu3  ;;  %1904 = vmatpush.msra.mxu1 %v1544_v19 }
 0x1ce   : > { %v1309_v6 = vmul.f32 %v4949_v0, %v4735_v48  ;;  %v1473_v48 = vld [vmem:[#allocation2 + $0x390] sm:$0xff]  ;;  %v1474_v0 = vld [vmem:[#allocation2 + $0x398] sm:$0xff] }
 0x1cf   : > { %1905 = vmatpush.msra.mxu1 %v1532_v43 }
 0x1d1   : > { %1906 = vmatpush.msra.mxu1 %v1520_v38  ;;  %v1459_v38 = vld [vmem:[#allocation2 + $0x320] sm:$0xff] }
 0x1d2   : > { %4234 = vmatmul.msk.f32.gmra.mxu3 %vm1060_vm4, %v4853_v7  ;;  %v1455_v7 = vld [vmem:[#allocation2 + $0x300] sm:$0xff] }
 0x1d3   : > { %1586 = vmatpush.msrb.mxu0 %v1455_v7  ;;  %v1362_v7 = vld [vmem:[#allocation2 + $0x18] sm:$0xff]  ;;  %1907 = vmatpush.msra.mxu1 %v1508_v55  ;;  %v1448_v55 = vld [vmem:[#allocation2 + $0x2c8] sm:$0xff] }
 0x1d4   : > { %1789 = vmatpush.msra.mxu3 %v1362_v7 }
 0x1d5   : > { %v4953_v22 = vpop.f32.mrf.mxu3 }
 0x1da   : > { %4235 = vmatmul.msk.f32.gmra.mxu3 %vm1060_vm4, %v4861_v29  ;;  %v1443_v29 = vld [vmem:[#allocation2 + $0x2a0] sm:$0xff] }
 0x1db   : > { %1587 = vmatpush.msrb.mxu0 %v1443_v29  ;;  %v1546_v29 = vld [vmem:[#allocation2 + $0x5d8] sm:$0xff] }
 0x1dc   : > { %2034 = vmatpush.msrb.mxu3 %v1546_v29  ;;  %v1310_v29 = vmul.f32 %v4953_v22, %v4741_v51  ;;  %v1461_v51 = vld [vmem:[#allocation2 + $0x330] sm:$0xff]  ;;  %v1462_v22 = vld [vmem:[#allocation2 + $0x338] sm:$0xff] }
 0x1dd   : > { %v4957_v13 = vpop.f32.mrf.mxu3 }
 0x1de   : > { %v1311_v43 = vmul.f32 %v4957_v13, %v4747_v54  ;;  %v1449_v54 = vld [vmem:[#allocation2 + $0x2d0] sm:$0xff]  ;;  %v1450_v13 = vld [vmem:[#allocation2 + $0x2d8] sm:$0xff] }
 0x1e2   : > { %4236 = vmatmul.msk.f32.gmra.mxu3 %vm1060_vm4, %v4869_v50  ;;  %v1431_v50 = vld [vmem:[#allocation2 + $0x240] sm:$0xff] }
 0x1e3   : > { %1588 = vmatpush.msrb.mxu0 %v1431_v50  ;;  %v1534_v50 = vld [vmem:[#allocation2 + $0x578] sm:$0xff] }
 0x1e4   : > { %2035 = vmatpush.msrb.mxu3 %v1534_v50  ;;  %v1471_v50 = vld [vmem:[#allocation2 + $0x380] sm:$0xff] }
 0x1e5   : > { %v4961_v26 = vpop.f32.mrf.mxu3 }
 0x1ea   : > { %4237 = vmatmul.msk.f32.gmra.mxu3 %vm1060_vm4, %v4877_v12  ;;  %v1419_v12 = vld [vmem:[#allocation2 + $0x1e0] sm:$0xff] }
 0x1eb   : > { %1589 = vmatpush.msrb.mxu0 %v1419_v12  ;;  %v1522_v12 = vld [vmem:[#allocation2 + $0x518] sm:$0xff] }
 0x1ec   : > { %2036 = vmatpush.msrb.mxu3 %v1522_v12 }
 0x1ed   : > { %v4965_v24 = vpop.f32.mrf.mxu3 }
 0x1f2   : > { %4238 = vmatmul.msk.f32.gmra.mxu3 %vm1060_vm4, %v4885_v34  ;;  %v1407_v34 = vld [vmem:[#allocation2 + $0x180] sm:$0xff] }
 0x1f3   : > { %1590 = vmatpush.msrb.mxu0 %v1407_v34  ;;  %v1510_v34 = vld [vmem:[#allocation2 + $0x4b8] sm:$0xff] }
 0x1f4   : > { %2037 = vmatpush.msrb.mxu3 %v1510_v34  ;;  %v1312_v34 = vmul.f32 %v4961_v26, %v4753_v57  ;;  %v1437_v57 = vld [vmem:[#allocation2 + $0x270] sm:$0xff]  ;;  %v1438_v26 = vld [vmem:[#allocation2 + $0x278] sm:$0xff] }
 0x1f5   : > { %v4969_v39 = vpop.f32.mrf.mxu3 }
 0x1f6   : > { %2038 = vmatpush.msrb.mxu3 %v1498_v61 }
 0x1f8   : > { %2039 = vmatpush.msrb.mxu3 %v1486_v47 }
 0x1fa   : > { %4239 = vmatmul.msk.f32.gmra.mxu3 %vm1060_vm4, %v4893_v58  ;;  %v1395_v58 = vld [vmem:[#allocation2 + $0x120] sm:$0xff] }
 0x1fb   : > { %1591 = vmatpush.msrb.mxu0 %v1395_v58  ;;  %2040 = vmatpush.msrb.mxu3 %v1474_v0 }
 0x1fd   : > { %v4973_v37 = vpop.f32.mrf.mxu3  ;;  %2041 = vmatpush.msrb.mxu3 %v1462_v22  ;;  %v1399_v22 = vld [vmem:[#allocation2 + $0x140] sm:$0xff] }
 0x1ff   : > { %2042 = vmatpush.msrb.mxu3 %v1450_v13  ;;  %v1388_v13 = vld [vmem:[#allocation2 + $0xe8] sm:$0xff] }
 0x201   : > { %2043 = vmatpush.msrb.mxu3 %v1438_v26  ;;  %v1363_v26 = vld [vmem:[#allocation2 + $0x20] sm:$0xff] }
 0x202   : > { %4240 = vmatmul.msk.f32.gmra.mxu3 %vm1060_vm4, %v4901_v25  ;;  %v1383_v25 = vld [vmem:[#allocation2 + $0xc0] sm:$0xff] }
 0x203   : > { %1592 = vmatpush.msrb.mxu0 %v1383_v25 }
 0x205   : > { %v4977_v52 = vpop.f32.mrf.mxu3 }
 0x20a   : > { %4241 = vmatmul.msk.f32.gmra.mxu3 %vm1060_vm4, %v4909_v33  ;;  %v1371_v33 = vld [vmem:[#allocation2 + $0x60] sm:$0xff] }
 0x20b   : > { %1593 = vmatpush.msrb.mxu0 %v1371_v33  ;;  %v1496_v33 = vld [vmem:[#allocation2 + $0x448] sm:$0xff] }
 0x20c   : > { %1908 = vmatpush.msra.mxu1 %v1496_v33  ;;  %v1314_v33 = vmul.f32 %v4969_v39, %v4765_v63  ;;  %v1413_v63 = vld [vmem:[#allocation2 + $0x1b0] sm:$0xff]  ;;  %v1414_v39 = vld [vmem:[#allocation2 + $0x1b8] sm:$0xff] }
 0x20d   : > { %v4981_v1 = vpop.f32.mrf.mxu3 }
 0x20e   : > { %1909 = vmatpush.msra.mxu1 %v1484_v41 }
 0x212   : > { %4242 = vmatmul.msk.f32.gmra.mxu3 %vm1060_vm4, %v4917_v36  ;;  %v1359_v36 = vld [vmem:[#allocation2] sm:$0xff] }
 0x213   : > { %1594 = vmatpush.msrb.mxu0 %v1359_v36 }
 0x215   : > { %v4985_v16 = vpop.f32.mrf.mxu3  ;;  %1839 = vmatpush.msra.mxu0 %v1543_v59 }
 0x21a   : > { %4243 = vmatmul.msk.f32.gmra.mxu3 %vm1060_vm4, %v4925_v35  ;;  %v1533_v35 = vld [vmem:[#allocation2 + $0x570] sm:$0xff] }
 0x21b   : > { %1970 = vmatpush.msra.mxu2 %v1533_v35 }
 0x21d   : > { %v4989_v15 = vpop.f32.mrf.mxu3  ;;  %1971 = vmatpush.msra.mxu2 %v1521_v32 }
 0x21f   : > { %1972 = vmatpush.msra.mxu2 %v1509_v31  ;;  %v1460_v31 = vld [vmem:[#allocation2 + $0x328] sm:$0xff] }
 0x221   : > { %1973 = vmatpush.msra.mxu2 %v1497_v42  ;;  %v1313_v42 = vmul.f32 %v4965_v24, %v4759_v60  ;;  %v1425_v60 = vld [vmem:[#allocation2 + $0x210] sm:$0xff]  ;;  %v1426_v24 = vld [vmem:[#allocation2 + $0x218] sm:$0xff] }
 0x222   : > { %4244 = vmatmul.msk.f32.gmra.mxu3 %vm1060_vm4, %v4929_v44  ;;  %v1531_v44 = vld [vmem:[#allocation2 + $0x560] sm:$0xff] }
 0x223   : > { %1840 = vmatpush.msra.mxu0 %v1531_v44  ;;  %1974 = vmatpush.msra.mxu2 %v1485_v45  ;;  %v1472_v44 = vld [vmem:[#allocation2 + $0x388] sm:$0xff] }
 0x224   : > { %1910 = vmatpush.msra.mxu1 %v1472_v44  ;;  %2044 = vmatpush.msrb.mxu3 %v1426_v24 }
 0x225   : > { %v4993_v28 = vpop.f32.mrf.mxu3  ;;  %1975 = vmatpush.msra.mxu2 %v1473_v48 }
 0x226   : > { %1911 = vmatpush.msra.mxu1 %v1460_v31  ;;  %2045 = vmatpush.msrb.mxu3 %v1414_v39 }
 0x227   : > { %1976 = vmatpush.msra.mxu2 %v1461_v51 }
 0x228   : > { %1912 = vmatpush.msra.mxu1 %v1448_v55  ;;  %v1375_v55 = vld [vmem:[#allocation2 + $0x80] sm:$0xff] }
 0x229   : > { %1977 = vmatpush.msra.mxu2 %v1449_v54  ;;  %v1387_v54 = vld [vmem:[#allocation2 + $0xe0] sm:$0xff] }
 0x22a   : > { %4245 = vmatmul.msk.f32.gmra.mxu3 %vm1060_vm4, %v4933_v27  ;;  %v1519_v27 = vld [vmem:[#allocation2 + $0x500] sm:$0xff] }
 0x22b   : > { %1841 = vmatpush.msra.mxu0 %v1519_v27  ;;  %1978 = vmatpush.msra.mxu2 %v1437_v57  ;;  %v1376_v57 = vld [vmem:[#allocation2 + $0x88] sm:$0xff] }
 0x22d   : > { %v4997_v56 = vpop.f32.mrf.mxu3  ;;  %1842 = vmatpush.msra.mxu0 %v1507_v4  ;;  %v1447_v4 = vld [vmem:[#allocation2 + $0x2c0] sm:$0xff]  ;;  %1979 = vmatpush.msra.mxu2 %v1425_v60  ;;  %v1549_v60 = vld [vmem:[#allocation2 + $0x5f0] sm:$0xff] }
 0x22f   : > { %1843 = vmatpush.msra.mxu0 %v1495_v49  ;;  %v1436_v49 = vld [vmem:[#allocation2 + $0x268] sm:$0xff]  ;;  %1980 = vmatpush.msra.mxu2 %v1413_v63 }
 0x230   : > { %1913 = vmatpush.msra.mxu1 %v1436_v49 }
 0x231   : > { %1844 = vmatpush.msra.mxu0 %v1483_v21  ;;  %v1315_v21 = vmul.f32 %v4973_v37, %v4771_v2  ;;  %v1401_v2 = vld [vmem:[#allocation2 + $0x150] sm:$0xff]  ;;  %v1402_v37 = vld [vmem:[#allocation2 + $0x158] sm:$0xff] }
 0x232   : > { %4246 = vmatmul.msk.f32.gmra.mxu3 %vm1060_vm4, %v4937_v53  ;;  %1981 = vmatpush.msra.mxu2 %v1401_v2 }
 0x233   : > { %1845 = vmatpush.msra.mxu0 %v1471_v50  ;;  %2046 = vmatpush.msrb.mxu3 %v1402_v37  ;;  %v1523_v37 = vld [vmem:[#allocation2 + $0x520] sm:$0xff] }
 0x235   : > { %v5001_v40 = vpop.f32.mrf.mxu3  ;;  %1846 = vmatpush.msra.mxu0 %v1459_v38 }
 0x237   : > { %1847 = vmatpush.msra.mxu0 %v1447_v4 }
 0x23d   : > { %v1259_v53 = vpop.f32.mrf.mxu3 }
 0x23e   : > { %v1323_v10 = vsub.f32 %v1307_v46, %v1259_v53 }
 0x240   : > { %v5011_v58 = vadd.f32 %v5008_v18, %v1323_v10 }
 0x242   : > { %1595 = vmatmul.f32.vlgmr.msrb.gmra.mxu0 %v5011_v58  ;;  %1660 = vmatmul.f32.vlgmr.msrb.gmra.mxu1 %v5011_v58 }
 0x243   : > { %1725 = vmatmul.f32.vlgmr.msrb.gmra.mxu2 %v5011_v58  ;;  %1790 = vmatmul.f32.vlgmr.msra.gmra.mxu3 %v5011_v58 }
 0x245   : > { %v1262_v25 = vpop.f32.mrf.mxu3 }
 0x246   : > { %v1324_v3 = vsub.f32 %v1308_v30, %v1262_v25 }
 0x248   : > { %v5020_v62 = vadd.f32 %v5008_v18, %v1324_v3  ;;  %v1435_v3 = vld [vmem:[#allocation2 + $0x260] sm:$0xff] }
 0x249   : > { %1848 = vmatpush.msra.mxu0 %v1435_v3 }
 0x24a   : > { %1598 = vmatmul.f32.gmra.mxu0 %v5020_v62  ;;  %1663 = vmatmul.f32.gmra.mxu1 %v5020_v62 }
 0x24b   : > { %1728 = vmatmul.f32.gmra.mxu2 %v5020_v62  ;;  %1793 = vmatmul.f32.gmra.mxu3 %v5020_v62 }
 0x24d   : > { %v1265_v9 = vpop.f32.mrf.mxu3 }
 0x24e   : > { %v1325_v7 = vsub.f32 %v1309_v6, %v1265_v9  ;;  %v1423_v9 = vld [vmem:[#allocation2 + $0x200] sm:$0xff] }
 0x24f   : > { %1849 = vmatpush.msra.mxu0 %v1423_v9 }
 0x250   : > { %v5029_v36 = vadd.f32 %v5008_v18, %v1325_v7  ;;  %v1424_v7 = vld [vmem:[#allocation2 + $0x208] sm:$0xff] }
 0x251   : > { %1914 = vmatpush.msra.mxu1 %v1424_v7  ;;  %v1321_v7 = vmul.f32 %v4997_v56, %v4807_v20  ;;  %v1525_v20 = vld [vmem:[#allocation2 + $0x530] sm:$0xff]  ;;  %v1526_v56 = vld [vmem:[#allocation2 + $0x538] sm:$0xff] }
 0x252   : > { %1601 = vmatmul.f32.gmra.mxu0 %v5029_v36  ;;  %1666 = vmatmul.f32.gmra.mxu1 %v5029_v36 }
 0x253   : > { %1731 = vmatmul.f32.gmra.mxu2 %v5029_v36  ;;  %1796 = vmatmul.f32.gmra.mxu3 %v5029_v36 }
 0x255   : > { %v1268_v59 = vpop.f32.mrf.mxu3 }
 0x256   : > { %v1326_v19 = vsub.f32 %v1310_v29, %v1268_v59  ;;  %v1411_v29 = vld [vmem:[#allocation2 + $0x1a0] sm:$0xff]  ;;  %v1412_v59 = vld [vmem:[#allocation2 + $0x1a8] sm:$0xff] }
 0x257   : > { %1850 = vmatpush.msra.mxu0 %v1411_v29  ;;  %1915 = vmatpush.msra.mxu1 %v1412_v59  ;;  %v1322_v29 = vmul.f32 %v5001_v40, %v4813_v23  ;;  %v1513_v23 = vld [vmem:[#allocation2 + $0x4d0] sm:$0xff]  ;;  %v1514_v40 = vld [vmem:[#allocation2 + $0x4d8] sm:$0xff] }
 0x258   : > { %v5038_v35 = vadd.f32 %v5008_v18, %v1326_v19  ;;  %v1316_v19 = vmul.f32 %v4977_v52, %v4777_v5  ;;  %v1389_v5 = vld [vmem:[#allocation2 + $0xf0] sm:$0xff]  ;;  %v1390_v52 = vld [vmem:[#allocation2 + $0xf8] sm:$0xff] }
 0x259   : > { %1851 = vmatpush.msra.mxu0 %v1399_v22  ;;  %1982 = vmatpush.msra.mxu2 %v1389_v5  ;;  %v1501_v5 = vld [vmem:[#allocation2 + $0x470] sm:$0xff] }
 0x25a   : > { %1604 = vmatmul.f32.gmra.mxu0 %v5038_v35  ;;  %1669 = vmatmul.f32.gmra.mxu1 %v5038_v35 }
 0x25b   : > { %1734 = vmatmul.f32.gmra.mxu2 %v5038_v35  ;;  %1799 = vmatmul.f32.gmra.mxu3 %v5038_v35 }
 0x25c   : > { %2047 = vmatpush.msrb.mxu3 %v1390_v52  ;;  %1852 = vmatpush.msra.mxu0 %v1387_v54  ;;  %v1502_v52 = vld [vmem:[#allocation2 + $0x478] sm:$0xff] }
 0x25d   : > { %v1271_v32 = vpop.f32.mrf.mxu3 }
 0x25e   : > { %v1327_v12 = vsub.f32 %v1311_v43, %v1271_v32  ;;  %v1400_v43 = vld [vmem:[#allocation2 + $0x148] sm:$0xff]  ;;  %v1317_v32 = vmul.f32 %v4981_v1, %v4783_v8  ;;  %v1377_v8 = vld [vmem:[#allocation2 + $0x90] sm:$0xff]  ;;  %v1378_v1 = vld [vmem:[#allocation2 + $0x98] sm:$0xff]  ;;  %1853 = vmatpush.msra.mxu0 %v1375_v55 }
 0x25f   : > { %1916 = vmatpush.msra.mxu1 %v1400_v43  ;;  %1983 = vmatpush.msra.mxu2 %v1377_v8  ;;  %v1512_v43 = vld [vmem:[#allocation2 + $0x4c8] sm:$0xff] }
 0x260   : > { %v5047_v27 = vadd.f32 %v5008_v18, %v1327_v12  ;;  %2048 = vmatpush.msrb.mxu3 %v1378_v1  ;;  %1854 = vmatpush.msra.mxu0 %v1363_v26  ;;  %v1500_v8 = vld [vmem:[#allocation2 + $0x468] sm:$0xff]  ;;  %v1489_v1 = vld [vmem:[#allocation2 + $0x410] sm:$0xff] }
 0x261   : > { %1917 = vmatpush.msra.mxu1 %v1388_v13  ;;  %v1499_v13 = vld [vmem:[#allocation2 + $0x460] sm:$0xff]  ;;  %v1477_v26 = vld [vmem:[#allocation2 + $0x3b0] sm:$0xff] }
 0x262   : > { %1607 = vmatmul.f32.gmra.mxu0 %v5047_v27  ;;  %1672 = vmatmul.f32.gmra.mxu1 %v5047_v27 }
 0x263   : > { %1737 = vmatmul.f32.gmra.mxu2 %v5047_v27  ;;  %1802 = vmatmul.f32.gmra.mxu3 %v5047_v27 }
 0x264   : > { %1918 = vmatpush.msra.mxu1 %v1376_v57 }
 0x265   : > { %v1274_v46 = vpop.f32.mrf.mxu3 }
 0x266   : > { %v1328_v53 = vsub.f32 %v1312_v34, %v1274_v46  ;;  %v1318_v34 = vmul.f32 %v4985_v16, %v4789_v11  ;;  %v1365_v11 = vld [vmem:[#allocation2 + $0x30] sm:$0xff]  ;;  %v1366_v16 = vld [vmem:[#allocation2 + $0x38] sm:$0xff] }
 0x267   : > { %1984 = vmatpush.msra.mxu2 %v1365_v11  ;;  %2049 = vmatpush.msrb.mxu3 %v1366_v16  ;;  %v1487_v11 = vld [vmem:[#allocation2 + $0x400] sm:$0xff]  ;;  %v1488_v16 = vld [vmem:[#allocation2 + $0x408] sm:$0xff] }
 0x268   : > { %v5056_v10 = vadd.f32 %v5008_v18, %v1328_v53 }
 0x269   : > { %2229 = vmatpush.msrb.mxu2 %v1549_v60 }
 0x26a   : > { %1610 = vmatmul.f32.gmra.mxu0 %v5056_v10  ;;  %1675 = vmatmul.f32.gmra.mxu1 %v5056_v10 }
 0x26b   : > { %1740 = vmatmul.f32.gmra.mxu2 %v5056_v10  ;;  %1805 = vmatmul.f32.gmra.mxu3 %v5056_v10 }
 0x26d   : > { %v1277_v61 = vpop.f32.mrf.mxu3 }
 0x26e   : > { %v1329_v30 = vsub.f32 %v1313_v42, %v1277_v61  ;;  %v1319_v42 = vmul.f32 %v4989_v15, %v4795_v14  ;;  %v1364_v61 = vld [vmem:[#allocation2 + $0x28] sm:$0xff]  ;;  %v1550_v14 = vld [vmem:[#allocation2 + $0x5f8] sm:$0xff]  ;;  %v1320_v15 = vmul.f32 %v4993_v28, %v4801_v17  ;;  %v1537_v17 = vld [vmem:[#allocation2 + $0x590] sm:$0xff] }
 0x26f   : > { %1919 = vmatpush.msra.mxu1 %v1364_v61  ;;  %2294 = vmatpush.msra.mxu3 %v1550_v14  ;;  %v1538_v28 = vld [vmem:[#allocation2 + $0x598] sm:$0xff]  ;;  %v1475_v14 = vld [vmem:[#allocation2 + $0x3a0] sm:$0xff] }
 0x270   : > { %v5065_v25 = vadd.f32 %v5008_v18, %v1329_v30  ;;  %2230 = vmatpush.msrb.mxu2 %v1537_v17 }
 0x271   : > { %2295 = vmatpush.msra.mxu3 %v1538_v28 }
 0x272   : > { %1613 = vmatmul.f32.gmra.mxu0 %v5065_v25  ;;  %1678 = vmatmul.f32.gmra.mxu1 %v5065_v25 }
 0x273   : > { %1743 = vmatmul.f32.gmra.mxu2 %v5065_v25  ;;  %1808 = vmatmul.f32.gmra.mxu3 %v5065_v25 }
 0x274   : > { %2231 = vmatpush.msrb.mxu2 %v1525_v20  ;;  %2296 = vmatpush.msra.mxu3 %v1526_v56 }
 0x275   : > { %v1280_v45 = vpop.f32.mrf.mxu3 }
 0x276   : > { %v1330_v47 = vsub.f32 %v1314_v33, %v1280_v45  ;;  %v1547_v45 = vld [vmem:[#allocation2 + $0x5e0] sm:$0xff]  ;;  %2232 = vmatpush.msrb.mxu2 %v1513_v23  ;;  %2297 = vmatpush.msra.mxu3 %v1514_v40 }
 0x277   : > { %2099 = vmatpush.msrb.mxu0 %v1547_v45 }
 0x278   : > { %v5074_v6 = vadd.f32 %v5008_v18, %v1330_v47  ;;  %v1548_v47 = vld [vmem:[#allocation2 + $0x5e8] sm:$0xff]  ;;  %2233 = vmatpush.msrb.mxu2 %v1501_v5  ;;  %2298 = vmatpush.msra.mxu3 %v1502_v52  ;;  %v1439_v5 = vld [vmem:[#allocation2 + $0x280] sm:$0xff] }
 0x279   : > { %2164 = vmatpush.msrb.mxu1 %v1548_v47  ;;  %v1440_v52 = vld [vmem:[#allocation2 + $0x288] sm:$0xff] }
 0x27a   : > { %1616 = vmatmul.f32.gmra.mxu0 %v5074_v6  ;;  %1681 = vmatmul.f32.gmra.mxu1 %v5074_v6 }
 0x27b   : > { %1746 = vmatmul.f32.gmra.mxu2 %v5074_v6  ;;  %1811 = vmatmul.f32.gmra.mxu3 %v5074_v6 }
 0x27c   : > { %2234 = vmatpush.msrb.mxu2 %v1489_v1 }
 0x27d   : > { %v1283_v41 = vpop.f32.mrf.mxu3 }
 0x27e   : > { %v1331_v48 = vsub.f32 %v1315_v21, %v1283_v41  ;;  %v1535_v21 = vld [vmem:[#allocation2 + $0x580] sm:$0xff]  ;;  %v1536_v41 = vld [vmem:[#allocation2 + $0x588] sm:$0xff]  ;;  %2235 = vmatpush.msrb.mxu2 %v1477_v26 }
 0x27f   : > { %2100 = vmatpush.msrb.mxu0 %v1535_v21  ;;  %2165 = vmatpush.msrb.mxu1 %v1536_v41  ;;  %v1454_v21 = vld [vmem:[#allocation2 + $0x2f8] sm:$0xff]  ;;  %v1427_v26 = vld [vmem:[#allocation2 + $0x220] sm:$0xff] }
 0x280   : > { %v5083_v0 = vadd.f32 %v5008_v18, %v1331_v48 }
 0x281   : > { %2101 = vmatpush.msrb.mxu0 %v1523_v37  ;;  %v1441_v37 = vld [vmem:[#allocation2 + $0x290] sm:$0xff] }
 0x282   : > { %1619 = vmatmul.f32.gmra.mxu0 %v5083_v0  ;;  %1684 = vmatmul.f32.gmra.mxu1 %v5083_v0 }
 0x283   : > { %1749 = vmatmul.f32.gmra.mxu2 %v5083_v0  ;;  %1814 = vmatmul.f32.gmra.mxu3 %v5083_v0 }
 0x285   : > { %v1286_v50 = vpop.f32.mrf.mxu3 }
 0x286   : > { %v1332_v44 = vsub.f32 %v1316_v19, %v1286_v50  ;;  %v1524_v19 = vld [vmem:[#allocation2 + $0x528] sm:$0xff] }
 0x287   : > { %2166 = vmatpush.msrb.mxu1 %v1524_v19  ;;  %v1442_v19 = vld [vmem:[#allocation2 + $0x298] sm:$0xff] }
 0x288   : > { %v5092_v51 = vadd.f32 %v5008_v18, %v1332_v44 }
 0x289   : > { %2167 = vmatpush.msrb.mxu1 %v1512_v43 }
 0x28a   : > { %1622 = vmatmul.f32.gmra.mxu0 %v5092_v51  ;;  %1687 = vmatmul.f32.gmra.mxu1 %v5092_v51 }
 0x28b   : > { %1752 = vmatmul.f32.gmra.mxu2 %v5092_v51  ;;  %1817 = vmatmul.f32.gmra.mxu3 %v5092_v51 }
 0x28c   : > { %2168 = vmatpush.msrb.mxu1 %v1500_v8  ;;  %v1430_v8 = vld [vmem:[#allocation2 + $0x238] sm:$0xff] }
 0x28d   : > { %v1289_v12 = vpop.f32.mrf.mxu3 }
 0x28e   : > { %v1333_v38 = vsub.f32 %v1317_v32, %v1289_v12  ;;  %2169 = vmatpush.msrb.mxu1 %v1488_v16 }
 0x290   : > { %v5101_v31 = vadd.f32 %v5008_v18, %v1333_v38 }
 0x292   : > { %1625 = vmatmul.f32.gmra.mxu0 %v5101_v31  ;;  %1690 = vmatmul.f32.gmra.mxu1 %v5101_v31 }
 0x293   : > { %1755 = vmatmul.f32.gmra.mxu2 %v5101_v31  ;;  %1820 = vmatmul.f32.gmra.mxu3 %v5101_v31 }
 0x295   : > { %v1292_v46 = vpop.f32.mrf.mxu3 }
 0x296   : > { %v1334_v53 = vsub.f32 %v1318_v34, %v1292_v46  ;;  %v1490_v34 = vld [vmem:[#allocation2 + $0x418] sm:$0xff] }
 0x297   : > { %2299 = vmatpush.msra.mxu3 %v1490_v34 }
 0x298   : > { %v5110_v4 = vadd.f32 %v5008_v18, %v1334_v53 }
 0x29a   : > { %1628 = vmatmul.f32.gmra.mxu0 %v5110_v4  ;;  %1693 = vmatmul.f32.gmra.mxu1 %v5110_v4 }
 0x29b   : > { %1758 = vmatmul.f32.gmra.mxu2 %v5110_v4  ;;  %1823 = vmatmul.f32.gmra.mxu3 %v5110_v4 }
 0x29d   : > { %v1295_v30 = vpop.f32.mrf.mxu3 }
 0x29e   : > { %v1335_v3 = vsub.f32 %v1319_v42, %v1295_v30  ;;  %v1478_v42 = vld [vmem:[#allocation2 + $0x3b8] sm:$0xff] }
 0x29f   : > { %2300 = vmatpush.msra.mxu3 %v1478_v42  ;;  %v1428_v42 = vld [vmem:[#allocation2 + $0x228] sm:$0xff] }
 0x2a0   : > { %v5119_v49 = vadd.f32 %v5008_v18, %v1335_v3 }
 0x2a2   : > { %1631 = vmatmul.f32.gmra.mxu0 %v5119_v49  ;;  %1696 = vmatmul.f32.gmra.mxu1 %v5119_v49 }
 0x2a3   : > { %1761 = vmatmul.f32.gmra.mxu2 %v5119_v49  ;;  %1826 = vmatmul.f32.gmra.mxu3 %v5119_v49 }
 0x2a5   : > { %v1298_v24 = vpop.f32.mrf.mxu3 }
 0x2a6   : > { %v1336_v33 = vsub.f32 %v1320_v15, %v1298_v24  ;;  %v1476_v15 = vld [vmem:[#allocation2 + $0x3a8] sm:$0xff]  ;;  %v1465_v24 = vld [vmem:[#allocation2 + $0x350] sm:$0xff] }
 0x2a7   : > { %2170 = vmatpush.msrb.mxu1 %v1476_v15  ;;  %2236 = vmatpush.msrb.mxu2 %v1465_v24  ;;  %v1418_v15 = vld [vmem:[#allocation2 + $0x1d8] sm:$0xff] }
 0x2a8   : > { %v5128_v9 = vadd.f32 %v5008_v18, %v1336_v33  ;;  %v1466_v33 = vld [vmem:[#allocation2 + $0x358] sm:$0xff] }
 0x2a9   : > { %2301 = vmatpush.msra.mxu3 %v1466_v33 }
 0x2aa   : > { %1634 = vmatmul.f32.gmra.mxu0 %v5128_v9  ;;  %1699 = vmatmul.f32.gmra.mxu1 %v5128_v9 }
 0x2ab   : > { %1764 = vmatmul.f32.gmra.mxu2 %v5128_v9  ;;  %1829 = vmatmul.f32.gmra.mxu3 %v5128_v9 }
 0x2ac   : > { %2302 = vmatpush.msra.mxu3 %v1454_v21  ;;  %v1416_v21 = vld [vmem:[#allocation2 + $0x1c8] sm:$0xff] }
 0x2ad   : > { %v1301_v63 = vpop.f32.mrf.mxu3 }
 0x2ae   : > { %v1337_v39 = vsub.f32 %v1321_v7, %v1301_v63  ;;  %v1463_v7 = vld [vmem:[#allocation2 + $0x340] sm:$0xff]  ;;  %v1464_v63 = vld [vmem:[#allocation2 + $0x348] sm:$0xff]  ;;  %2303 = vmatpush.msra.mxu3 %v1442_v19 }
 0x2af   : > { %2171 = vmatpush.msrb.mxu1 %v1464_v63 }
 0x2b0   : > { %v5137_v48 = vadd.f32 %v5008_v18, %v1337_v39  ;;  %v1453_v39 = vld [vmem:[#allocation2 + $0x2f0] sm:$0xff]  ;;  %2304 = vmatpush.msra.mxu3 %v1430_v8  ;;  %v1404_v8 = vld [vmem:[#allocation2 + $0x168] sm:$0xff] }
 0x2b1   : > { %2237 = vmatpush.msrb.mxu2 %v1453_v39  ;;  %v1415_v39 = vld [vmem:[#allocation2 + $0x1c0] sm:$0xff] }
 0x2b2   : > { %1637 = vmatmul.f32.gmra.mxu0 %v5137_v48  ;;  %1702 = vmatmul.f32.gmra.mxu1 %v5137_v48 }
 0x2b3   : > { %1767 = vmatmul.f32.gmra.mxu2 %v5137_v48  ;;  %1832 = vmatmul.f32.gmra.mxu3 %v5137_v48 }
 0x2b4   : > { %2238 = vmatpush.msrb.mxu2 %v1441_v37  ;;  %2305 = vmatpush.msra.mxu3 %v1418_v15 }
 0x2b5   : > { %v1304_v59 = vpop.f32.mrf.mxu3 }
 0x2b6   : > { %v1338_v2 = vsub.f32 %v1322_v29, %v1304_v59  ;;  %v1451_v59 = vld [vmem:[#allocation2 + $0x2e0] sm:$0xff] }
 0x2b8   : > { %v5146_v50 = vadd.f32 %v5008_v18, %v1338_v2  ;;  %v1511_v18 = vld [vmem:[#allocation2 + $0x4c0] sm:$0xff]  ;;  %v1452_v2 = vld [vmem:[#allocation2 + $0x2e8] sm:$0xff] }
 0x2b9   : > { %2102 = vmatpush.msrb.mxu0 %v1511_v18  ;;  %2172 = vmatpush.msrb.mxu1 %v1452_v2  ;;  %v1406_v2 = vld [vmem:[#allocation2 + $0x178] sm:$0xff] }
 0x2ba   : > { %1640 = vmatmul.f32.gmra.mxu0 %v5146_v50  ;;  %1705 = vmatmul.f32.gmra.mxu1 %v5146_v50 }
 0x2bb   : > { %1770 = vmatmul.f32.gmra.mxu2 %v5146_v50  ;;  %1835 = vmatmul.f32.gmra.mxu3 %v5146_v50 }
 0x2bc   : > { %2103 = vmatpush.msrb.mxu0 %v1499_v13  ;;  %2173 = vmatpush.msrb.mxu1 %v1440_v52  ;;  %v1429_v13 = vld [vmem:[#allocation2 + $0x230] sm:$0xff] }
 0x2bd   : > { %2239 = vmatpush.msrb.mxu2 %v1429_v13  ;;  %2306 = vmatpush.msra.mxu3 %v1406_v2  ;;  %v1403_v13 = vld [vmem:[#allocation2 + $0x160] sm:$0xff]  ;;  %v1392_v2 = vld [vmem:[#allocation2 + $0x108] sm:$0xff] }
 0x2be   : > { %2104 = vmatpush.msrb.mxu0 %v1487_v11  ;;  %2174 = vmatpush.msrb.mxu1 %v1428_v42  ;;  %v1394_v42 = vld [vmem:[#allocation2 + $0x118] sm:$0xff] }
 0x2bf   : > { %v5152_v44 = vpop.f32.mrf.mxu0  ;;  %v5154_v22 = vpop.f32.mrf.mxu1  ;;  %2307 = vmatpush.msra.mxu3 %v1394_v42 }
 0x2c0   : > { %7281 = vst [vmem:[#allocation5_spill] sm:$0xff] %v5152_v44  ;;  %2105 = vmatpush.msrb.mxu0 %v1475_v14  ;;  %v1417_v14 = vld [vmem:[#allocation2 + $0x1d0] sm:$0xff]  ;;  %2175 = vmatpush.msrb.mxu1 %v1416_v21 }
 0x2c1   : > { %7282 = vst [vmem:[#allocation6_spill] sm:$0xff] %v5154_v22  ;;  %2240 = vmatpush.msrb.mxu2 %v1417_v14 }
 0x2c2   : > { %1855 = vmatmul.f32.vlgmr.msra.gmra.mxu0 %v5011_v58  ;;  %1920 = vmatmul.f32.vlgmr.msra.gmra.mxu1 %v5011_v58 }
 0x2c3   : > { %1985 = vmatmul.f32.vlgmr.msra.gmra.mxu2 %v5011_v58  ;;  %2050 = vmatmul.f32.vlgmr.msrb.gmra.mxu3 %v5011_v58 }
 0x2c4   : > { %2106 = vmatpush.msrb.mxu0 %v1463_v7  ;;  %2176 = vmatpush.msrb.mxu1 %v1404_v8  ;;  %v1382_v8 = vld [vmem:[#allocation2 + $0xb8] sm:$0xff] }
 0x2c5   : > { %2308 = vmatpush.msra.mxu3 %v1382_v8  ;;  %v1370_v8 = vld [vmem:[#allocation2 + $0x58] sm:$0xff] }
 0x2c6   : > { %v5160_v32 = vpop.f32.mrf.mxu2  ;;  %v5162_v12 = vpop.f32.mrf.mxu3  ;;  %2107 = vmatpush.msrb.mxu0 %v1451_v59  ;;  %v1405_v59 = vld [vmem:[#allocation2 + $0x170] sm:$0xff]  ;;  %2177 = vmatpush.msrb.mxu1 %v1392_v2  ;;  %v1379_v2 = vld [vmem:[#allocation2 + $0xa0] sm:$0xff] }
 0x2c7   : > { %v5164_v38 = vpop.f32.mrf.mxu0  ;;  %v5166_v54 = vpop.f32.mrf.mxu1  ;;  %2241 = vmatpush.msrb.mxu2 %v1405_v59  ;;  %v1391_v59 = vld [vmem:[#allocation2 + $0x100] sm:$0xff]  ;;  %2309 = vmatpush.msra.mxu3 %v1370_v8  ;;  %v2486_v8 = vld [vmem:[%s7269_s8 + $0x1f8] sm:$0xff] }
 0x2c8   : > { %7283 = vst [vmem:[#allocation7_spill] sm:$0xff] %v5164_v38  ;;  %2108 = vmatpush.msrb.mxu0 %v1439_v5 }
 0x2c9   : > { %7284 = vst [vmem:[#allocation8_spill] sm:$0xff] %v5166_v54  ;;  %2682 = vmatpush.msrb.mxu3 %v2486_v8  ;;  %v2485_v8 = vld [vmem:[%s7269_s8 + $0x1f0] sm:$0xff] }
 0x2ca   : > { %1858 = vmatmul.f32.gmra.mxu0 %v5020_v62  ;;  %1923 = vmatmul.f32.gmra.mxu1 %v5020_v62 }
 0x2cb   : > { %1988 = vmatmul.f32.gmra.mxu2 %v5020_v62  ;;  %2053 = vmatmul.f32.gmra.mxu3 %v5020_v62 }
 0x2cc   : > { %2109 = vmatpush.msrb.mxu0 %v1427_v26  ;;  %v1393_v26 = vld [vmem:[#allocation2 + $0x110] sm:$0xff]  ;;  %2683 = vmatpush.msrb.mxu3 %v2485_v8 }
 0x2cd   : > { %2242 = vmatpush.msrb.mxu2 %v1393_v26 }
 0x2ce   : > { %v5172_v46 = vpop.f32.mrf.mxu2  ;;  %v5174_v53 = vpop.f32.mrf.mxu3  ;;  %2110 = vmatpush.msrb.mxu0 %v1415_v39 }
 0x2cf   : > { %v5176_v55 = vpop.f32.mrf.mxu0  ;;  %v5178_v57 = vpop.f32.mrf.mxu1 }
 0x2d0   : > { %7285 = vst [vmem:[#allocation9_spill] sm:$0xff] %v5176_v55  ;;  %2111 = vmatpush.msrb.mxu0 %v1403_v13  ;;  %v1381_v13 = vld [vmem:[#allocation2 + $0xb0] sm:$0xff] }
 0x2d1   : > { %7286 = vst [vmem:[#allocation10_spill] sm:$0xff] %v5178_v57  ;;  %2243 = vmatpush.msrb.mxu2 %v1381_v13  ;;  %v1369_v13 = vld [vmem:[#allocation2 + $0x50] sm:$0xff]  ;;  %v2482_v57 = vld [vmem:[%s7269_s8 + $0x1d8] sm:$0xff] }
 0x2d2   : > { %1861 = vmatmul.f32.gmra.mxu0 %v5029_v36  ;;  %1926 = vmatmul.f32.gmra.mxu1 %v5029_v36 }
 0x2d3   : > { %1991 = vmatmul.f32.gmra.mxu2 %v5029_v36  ;;  %2056 = vmatmul.f32.gmra.mxu3 %v5029_v36 }
 0x2d4   : > { %2112 = vmatpush.msrb.mxu0 %v1391_v59  ;;  %2244 = vmatpush.msrb.mxu2 %v1369_v13  ;;  %v2470_v13 = vld [vmem:[%s7269_s8 + $0x178] sm:$0xff] }
 0x2d6   : > { %v5184_v61 = vpop.f32.mrf.mxu2  ;;  %v5186_v30 = vpop.f32.mrf.mxu3  ;;  %2113 = vmatpush.msrb.mxu0 %v1379_v2  ;;  %2617 = vmatpush.msra.mxu2 %v2470_v13  ;;  %v2469_v13 = vld [vmem:[%s7269_s8 + $0x170] sm:$0xff] }
 0x2d7   : > { %v5188_v3 = vpop.f32.mrf.mxu0  ;;  %v5190_v60 = vpop.f32.mrf.mxu1 }
 0x2d8   : > { %7287 = vst [vmem:[#allocation11_spill] sm:$0xff] %v5188_v3  ;;  %2618 = vmatpush.msra.mxu2 %v2469_v13  ;;  %v2466_v3 = vld [vmem:[%s7269_s8 + $0x158] sm:$0xff] }
 0x2d9   : > { %7288 = vst [vmem:[#allocation12_spill] sm:$0xff] %v5190_v60 }
 0x2da   : > { %1864 = vmatmul.f32.gmra.mxu0 %v5038_v35  ;;  %1929 = vmatmul.f32.gmra.mxu1 %v5038_v35 }
 0x2db   : > { %1994 = vmatmul.f32.gmra.mxu2 %v5038_v35  ;;  %2059 = vmatmul.f32.gmra.mxu3 %v5038_v35 }
 0x2de   : > { %v5196_v45 = vpop.f32.mrf.mxu2  ;;  %v5198_v47 = vpop.f32.mrf.mxu3 }
 0x2df   : > { %v5200_v17 = vpop.f32.mrf.mxu0  ;;  %v5202_v28 = vpop.f32.mrf.mxu1 }
 0x2e0   : > { %7289 = vst [vmem:[#allocation13_spill] sm:$0xff] %v5200_v17  ;;  %v2451_v17 = vld [vmem:[%s7269_s8 + $0xe0] sm:$0xff] }
 0x2e1   : > { %7290 = vst [vmem:[#allocation14_spill] sm:$0xff] %v5202_v28  ;;  %v2435_v28 = vld [vmem:[%s7269_s8 + $0x60] sm:$0xff] }
 0x2e2   : > { %1867 = vmatmul.f32.gmra.mxu0 %v5047_v27  ;;  %1932 = vmatmul.f32.gmra.mxu1 %v5047_v27 }
 0x2e3   : > { %1997 = vmatmul.f32.gmra.mxu2 %v5047_v27  ;;  %2062 = vmatmul.f32.gmra.mxu3 %v5047_v27 }
 0x2e6   : > { %v5208_v41 = vpop.f32.mrf.mxu2  ;;  %v5210_v20 = vpop.f32.mrf.mxu3 }
 0x2e7   : > { %v5212_v56 = vpop.f32.mrf.mxu0  ;;  %v5214_v29 = vpop.f32.mrf.mxu1 }
 0x2e8   : > { %7291 = vst [vmem:[#allocation15_spill] sm:$0xff] %v5212_v56  ;;  %v2452_v56 = vld [vmem:[%s7269_s8 + $0xe8] sm:$0xff] }
 0x2e9   : > { %7292 = vst [vmem:[#allocation16_spill] sm:$0xff] %v5214_v29  ;;  %v2436_v29 = vld [vmem:[%s7269_s8 + $0x68] sm:$0xff] }
 0x2ea   : > { %1870 = vmatmul.f32.gmra.mxu0 %v5056_v10  ;;  %1935 = vmatmul.f32.gmra.mxu1 %v5056_v10 }
 0x2eb   : > { %2000 = vmatmul.f32.gmra.mxu2 %v5056_v10  ;;  %2065 = vmatmul.f32.gmra.mxu3 %v5056_v10 }
 0x2ee   : > { %v5220_v23 = vpop.f32.mrf.mxu2  ;;  %v5222_v40 = vpop.f32.mrf.mxu3 }
 0x2ef   : > { %v5224_v18 = vpop.f32.mrf.mxu0  ;;  %v5226_v43 = vpop.f32.mrf.mxu1 }
 0x2f0   : > { %7293 = vst [vmem:[#allocation17_spill] sm:$0xff] %v5224_v18  ;;  %v2453_v18 = vld [vmem:[%s7269_s8 + $0xf0] sm:$0xff] }
 0x2f1   : > { %7294 = vst [vmem:[#allocation18_spill] sm:$0xff] %v5226_v43  ;;  %v2437_v43 = vld [vmem:[%s7269_s8 + $0x70] sm:$0xff] }
 0x2f2   : > { %1873 = vmatmul.f32.gmra.mxu0 %v5065_v25  ;;  %1938 = vmatmul.f32.gmra.mxu1 %v5065_v25 }
 0x2f3   : > { %2003 = vmatmul.f32.gmra.mxu2 %v5065_v25  ;;  %2068 = vmatmul.f32.gmra.mxu3 %v5065_v25 }
 0x2f6   : > { %v5232_v1 = vpop.f32.mrf.mxu2  ;;  %v5234_v34 = vpop.f32.mrf.mxu3 }
 0x2f7   : > { %v5236_v11 = vpop.f32.mrf.mxu0  ;;  %v5238_v16 = vpop.f32.mrf.mxu1 }
 0x2f8   : > { %7295 = vst [vmem:[#allocation19_spill] sm:$0xff] %v5236_v11 }
 0x2f9   : > { %7296 = vst [vmem:[#allocation20_spill] sm:$0xff] %v5238_v16 }
 0x2fa   : > { %1876 = vmatmul.f32.gmra.mxu0 %v5074_v6  ;;  %1941 = vmatmul.f32.gmra.mxu1 %v5074_v6 }
 0x2fb   : > { %2006 = vmatmul.f32.gmra.mxu2 %v5074_v6  ;;  %2071 = vmatmul.f32.gmra.mxu3 %v5074_v6 }
 0x2fe   : > { %v5244_v24 = vpop.f32.mrf.mxu2  ;;  %v5246_v33 = vpop.f32.mrf.mxu3 }
 0x2ff   : > { %v5248_v7 = vpop.f32.mrf.mxu0  ;;  %v5250_v63 = vpop.f32.mrf.mxu1 }
 0x300   : > { %7297 = vst [vmem:[#allocation21_spill] sm:$0xff] %v5248_v7  ;;  %v2454_v7 = vld [vmem:[%s7269_s8 + $0xf8] sm:$0xff] }
 0x301   : > { %7298 = vst [vmem:[#allocation22_spill] sm:$0xff] %v5250_v63  ;;  %v2438_v63 = vld [vmem:[%s7269_s8 + $0x78] sm:$0xff] }
 0x302   : > { %1879 = vmatmul.f32.gmra.mxu0 %v5083_v0  ;;  %1944 = vmatmul.f32.gmra.mxu1 %v5083_v0 }
 0x303   : > { %2009 = vmatmul.f32.gmra.mxu2 %v5083_v0  ;;  %2074 = vmatmul.f32.gmra.mxu3 %v5083_v0 }
 0x306   : > { %v5256_v37 = vpop.f32.mrf.mxu2  ;;  %v5258_v19 = vpop.f32.mrf.mxu3 }
 0x307   : > { %v5260_v5 = vpop.f32.mrf.mxu0  ;;  %v5262_v52 = vpop.f32.mrf.mxu1 }
 0x308   : > { %7299 = vst [vmem:[#allocation23_spill] sm:$0xff] %v5260_v5  ;;  %v1368_v5 = vld [vmem:[#allocation2 + $0x48] sm:$0xff] }
 0x309   : > { %7300 = vst [vmem:[#allocation24_spill] sm:$0xff] %v5262_v52 }
 0x30a   : > { %1882 = vmatmul.f32.gmra.mxu0 %v5092_v51  ;;  %1947 = vmatmul.f32.gmra.mxu1 %v5092_v51 }
 0x30b   : > { %2012 = vmatmul.f32.gmra.mxu2 %v5092_v51  ;;  %2077 = vmatmul.f32.gmra.mxu3 %v5092_v51 }
 0x30e   : > { %v5268_v14 = vpop.f32.mrf.mxu2  ;;  %v5270_v15 = vpop.f32.mrf.mxu3 }
 0x30f   : > { %v5272_v39 = vpop.f32.mrf.mxu0  ;;  %v5274_v21 = vpop.f32.mrf.mxu1 }
 0x310   : > { %7301 = vst [vmem:[#allocation25_spill] sm:$0xff] %v5272_v39  ;;  %v1380_v39 = vld [vmem:[#allocation2 + $0xa8] sm:$0xff] }
 0x311   : > { %7302 = vst [vmem:[#allocation26_spill] sm:$0xff] %v5274_v21  ;;  %2178 = vmatpush.msrb.mxu1 %v1380_v39  ;;  %v1367_v39 = vld [vmem:[#allocation2 + $0x40] sm:$0xff] }
 0x312   : > { %1885 = vmatmul.f32.gmra.mxu0 %v5101_v31  ;;  %1950 = vmatmul.f32.gmra.mxu1 %v5101_v31 }
 0x313   : > { %2015 = vmatmul.f32.gmra.mxu2 %v5101_v31  ;;  %2080 = vmatmul.f32.gmra.mxu3 %v5101_v31 }
 0x314   : > { %2114 = vmatpush.msrb.mxu0 %v1367_v39  ;;  %2179 = vmatpush.msrb.mxu1 %v1368_v5 }
 0x316   : > { %v5280_v26 = vpop.f32.mrf.mxu2  ;;  %v5282_v42 = vpop.f32.mrf.mxu3  ;;  %2487 = vmatpush.msra.mxu0 %v2438_v63  ;;  %2552 = vmatpush.msra.mxu1 %v2454_v7  ;;  %v2468_v7 = vld [vmem:[%s7269_s8 + $0x168] sm:$0xff] }
 0x317   : > { %v5284_v21 = vpop.f32.mrf.mxu0  ;;  %v5286_v59 = vpop.f32.mrf.mxu1  ;;  %v2484_v63 = vld [vmem:[%s7269_s8 + $0x1e8] sm:$0xff]  ;;  %2619 = vmatpush.msra.mxu2 %v2468_v7 }
 0x318   : > { %7303 = vst [vmem:[#allocation27_spill] sm:$0xff] %v5284_v21  ;;  %2488 = vmatpush.msra.mxu0 %v2437_v43  ;;  %2553 = vmatpush.msra.mxu1 %v2453_v18  ;;  %v2467_v18 = vld [vmem:[%s7269_s8 + $0x160] sm:$0xff] }
 0x319   : > { %7304 = vst [vmem:[#allocation28_spill] sm:$0xff] %v5286_v59  ;;  %2684 = vmatpush.msrb.mxu3 %v2484_v63  ;;  %v2483_v43 = vld [vmem:[%s7269_s8 + $0x1e0] sm:$0xff]  ;;  %2620 = vmatpush.msra.mxu2 %v2467_v18 }
 0x31a   : > { %1888 = vmatmul.f32.gmra.mxu0 %v5110_v4  ;;  %1953 = vmatmul.f32.gmra.mxu1 %v5110_v4 }
 0x31b   : > { %2018 = vmatmul.f32.gmra.mxu2 %v5110_v4  ;;  %2083 = vmatmul.f32.gmra.mxu3 %v5110_v4 }
 0x31c   : > { %2489 = vmatpush.msra.mxu0 %v2436_v29  ;;  %2554 = vmatpush.msra.mxu1 %v2452_v56  ;;  %v5399_v56 = vld [vmem:[%s7268_s7] sm:$0xff] }
 0x31d   : > { %2685 = vmatpush.msrb.mxu3 %v2483_v43  ;;  %v5404_v29 = vperm.slane %v5399_v56, 2  ;;  %v5407_v18 = vperm.slane %v5399_v56, 3  ;;  %v5412_v43 = vperm.slane %v5399_v56, 6  ;;  %v5415_v60 = vperm.slane %v5399_v56, 7  ;;  %2621 = vmatpush.msra.mxu2 %v2466_v3 }
 0x31e   : > { %v5292_v52 = vpop.f32.mrf.mxu2  ;;  %v5294_v21 = vpop.f32.mrf.mxu3  ;;  %2490 = vmatpush.msra.mxu0 %v2435_v28  ;;  %2555 = vmatpush.msra.mxu1 %v2451_v17 }
 0x31f   : > { %v5296_v59 = vpop.f32.mrf.mxu0  ;;  %v5298_v2 = vpop.f32.mrf.mxu1  ;;  %2686 = vmatpush.msrb.mxu3 %v2482_v57  ;;  %v1727_v54 = vadd.f32 %v5160_v32, %v5404_v29  ;;  %v1792_v38 = vadd.f32 %v5162_v12, %v5407_v18  ;;  %v2434_v57 = vld [vmem:[%s7269_s8 + $0x58] sm:$0xff]  ;;  %v2465_v12 = vld [vmem:[%s7269_s8 + $0x150] sm:$0xff]  ;;  %v1730_v17 = vadd.f32 %v5172_v46, %v5404_v29 }
 0x320   : > { %7305 = vst [vmem:[#allocation29_spill] sm:$0xff] %v5296_v59  ;;  %v2450_v32 = vld [vmem:[%s7269_s8 + $0xd8] sm:$0xff]  ;;  %2491 = vmatpush.msra.mxu0 %v2434_v57  ;;  %2622 = vmatpush.msra.mxu2 %v2465_v12  ;;  %v2433_v12 = vld [vmem:[%s7269_s8 + $0x50] sm:$0xff] }
 0x321   : > { %7306 = vst [vmem:[#allocation30_spill] sm:$0xff] %v5298_v2  ;;  %2556 = vmatpush.msra.mxu1 %v2450_v32  ;;  %v2449_v46 = vld [vmem:[%s7269_s8 + $0xd0] sm:$0xff] }
 0x322   : > { %1891 = vmatmul.f32.gmra.mxu0 %v5119_v49  ;;  %1956 = vmatmul.f32.gmra.mxu1 %v5119_v49 }
 0x323   : > { %2021 = vmatmul.f32.gmra.mxu2 %v5119_v49  ;;  %2086 = vmatmul.f32.gmra.mxu3 %v5119_v49 }
 0x324   : > { %2492 = vmatpush.msra.mxu0 %v2433_v12  ;;  %2557 = vmatpush.msra.mxu1 %v2449_v46 }
 0x326   : > { %v5310_v39 = vpop.f32.mrf.mxu2  ;;  %v5312_v5 = vpop.f32.mrf.mxu3 }
 0x327   : > { %v5314_v2 = vpop.f32.mrf.mxu0  ;;  %v5316_v59 = vpop.f32.mrf.mxu1 }
 0x328   : > { %7307 = vst [vmem:[#allocation31_spill] sm:$0xff] %v5314_v2 }
 0x329   : > { %7308 = vst [vmem:[#allocation32_spill] sm:$0xff] %v5316_v59 }
 0x32a   : > { %1894 = vmatmul.f32.gmra.mxu0 %v5128_v9  ;;  %1959 = vmatmul.f32.gmra.mxu1 %v5128_v9 }
 0x32b   : > { %2024 = vmatmul.f32.gmra.mxu2 %v5128_v9  ;;  %2089 = vmatmul.f32.gmra.mxu3 %v5128_v9 }
 0x32e   : > { %v5334_v59 = vpop.f32.mrf.mxu2  ;;  %v5336_v2 = vpop.f32.mrf.mxu3 }
 0x32f   : > { %v5338_v16 = vpop.f32.mrf.mxu0  ;;  %v5340_v11 = vpop.f32.mrf.mxu1 }
 0x330   : > { %7309 = vst [vmem:[#allocation33_spill] sm:$0xff] %v5338_v16 }
 0x331   : > { %7310 = vst [vmem:[#allocation34_spill] sm:$0xff] %v5340_v11 }
 0x332   : > { %1897 = vmatmul.f32.gmra.mxu0 %v5137_v48  ;;  %1962 = vmatmul.f32.gmra.mxu1 %v5137_v48 }
 0x333   : > { %2027 = vmatmul.f32.gmra.mxu2 %v5137_v48  ;;  %2092 = vmatmul.f32.gmra.mxu3 %v5137_v48 }
 0x336   : > { %v5358_v13 = vpop.f32.mrf.mxu2  ;;  %v5360_v8 = vpop.f32.mrf.mxu3 }
 0x337   : > { %v5362_v11 = vpop.f32.mrf.mxu0  ;;  %v5364_v16 = vpop.f32.mrf.mxu1 }
 0x338   : > { %7311 = vst [vmem:[#allocation35_spill] sm:$0xff] %v5362_v11 }
 0x339   : > { %7312 = vst [vmem:[#allocation36_spill] sm:$0xff] %v5364_v16 }
 0x33a   : > { %1900 = vmatmul.f32.gmra.mxu0 %v5146_v50  ;;  %1965 = vmatmul.f32.gmra.mxu1 %v5146_v50 }
 0x33b   : > { %2030 = vmatmul.f32.gmra.mxu2 %v5146_v50  ;;  %2095 = vmatmul.f32.gmra.mxu3 %v5146_v50 }
 0x33e   : > { %v5382_v7 = vpop.f32.mrf.mxu2  ;;  %v5384_v63 = vpop.f32.mrf.mxu3 }
 0x33f   : > { %7313 = vst [vmem:[#allocation37_spill] sm:$0xff] %v5382_v7  ;;  %v5386_v16 = vpop.f32.mrf.mxu0  ;;  %v5388_v11 = vpop.f32.mrf.mxu1 }
 0x340   : > { %7314 = vst [vmem:[#allocation38_spill] sm:$0xff] %v5384_v63 }
 0x342   : > { %2115 = vmatmul.f32.vlgmr.msrb.gmra.mxu0 %v5011_v58  ;;  %2180 = vmatmul.f32.vlgmr.msrb.gmra.mxu1 %v5011_v58 }
 0x343   : > { %2245 = vmatmul.f32.vlgmr.msrb.gmra.mxu2 %v5011_v58  ;;  %2310 = vmatmul.f32.vlgmr.msra.gmra.mxu3 %v5011_v58 }
 0x346   : > { %v1986_v55 = vpop.f32.mrf.mxu2  ;;  %v2051_v58 = vpop.f32.mrf.mxu3 }
 0x347   : > { %v1987_v63 = vadd.f32 %v1986_v55, %v5412_v43  ;;  %v2052_v7 = vadd.f32 %v2051_v58, %v5415_v60  ;;  %v5429_v22 = vpop.f32.mrf.mxu0  ;;  %v5431_v44 = vpop.f32.mrf.mxu1 }
 0x348   : > { %7315 = vst [vmem:[#allocation39_spill] sm:$0xff] %v5431_v44 }
 0x349   : > { %v5433_v28 = vmul.f32 %v1987_v63, %v1727_v54  ;;  %v5435_v3 = vmul.f32 %v2052_v7, %v1792_v38  ;;  %v2481_v38 = vld [vmem:[%s7269_s8 + $0x1d0] sm:$0xff] }
 0x34a   : > { %2118 = vmatmul.f32.gmra.mxu0 %v5020_v62  ;;  %2183 = vmatmul.f32.gmra.mxu1 %v5020_v62 }
 0x34b   : > { %2248 = vmatmul.f32.gmra.mxu2 %v5020_v62  ;;  %2313 = vmatmul.f32.gmra.mxu3 %v5020_v62  ;;  %v1795_v62 = vadd.f32 %v5174_v53, %v5407_v18  ;;  %v2464_v53 = vld [vmem:[%s7269_s8 + $0x148] sm:$0xff] }
 0x34c   : > { %2687 = vmatpush.msrb.mxu3 %v2481_v38  ;;  %v2480_v38 = vld [vmem:[%s7269_s8 + $0x1c8] sm:$0xff]  ;;  %2623 = vmatpush.msra.mxu2 %v2464_v53 }
 0x34d   : > { %v2432_v53 = vld [vmem:[%s7269_s8 + $0x48] sm:$0xff] }
 0x34e   : > { %v1989_v54 = vpop.f32.mrf.mxu2  ;;  %v2054_v55 = vpop.f32.mrf.mxu3  ;;  %2688 = vmatpush.msrb.mxu3 %v2480_v38  ;;  %v2479_v38 = vld [vmem:[%s7269_s8 + $0x1c0] sm:$0xff]  ;;  %2493 = vmatpush.msra.mxu0 %v2432_v53 }
 0x34f   : > { %v1990_v7 = vadd.f32 %v1989_v54, %v5412_v43  ;;  %v2055_v63 = vadd.f32 %v2054_v55, %v5415_v60  ;;  %v5459_v58 = vpop.f32.mrf.mxu0  ;;  %v5461_v44 = vpop.f32.mrf.mxu1 }
 0x350   : > { %7316 = vst [vmem:[#allocation40_spill] sm:$0xff] %v5461_v44  ;;  %2689 = vmatpush.msrb.mxu3 %v2479_v38  ;;  %v2478_v38 = vld [vmem:[%s7269_s8 + $0x1b8] sm:$0xff] }
 0x351   : > { %v5463_v57 = vmul.f32 %v1990_v7, %v1730_v17  ;;  %v5465_v32 = vmul.f32 %v2055_v63, %v1795_v62  ;;  %v1733_v17 = vadd.f32 %v5184_v61, %v5404_v29  ;;  %v2448_v61 = vld [vmem:[%s7269_s8 + $0xc8] sm:$0xff] }
 0x352   : > { %2121 = vmatmul.f32.gmra.mxu0 %v5029_v36  ;;  %2186 = vmatmul.f32.gmra.mxu1 %v5029_v36 }
 0x353   : > { %2251 = vmatmul.f32.gmra.mxu2 %v5029_v36  ;;  %2316 = vmatmul.f32.gmra.mxu3 %v5029_v36  ;;  %v1798_v36 = vadd.f32 %v5186_v30, %v5407_v18  ;;  %v2463_v30 = vld [vmem:[%s7269_s8 + $0x140] sm:$0xff] }
 0x354   : > { %2558 = vmatpush.msra.mxu1 %v2448_v61  ;;  %2624 = vmatpush.msra.mxu2 %v2463_v30  ;;  %v2431_v30 = vld [vmem:[%s7269_s8 + $0x40] sm:$0xff] }
 0x355   : > { %2494 = vmatpush.msra.mxu0 %v2431_v30  ;;  %2690 = vmatpush.msrb.mxu3 %v2478_v38  ;;  %v2477_v38 = vld [vmem:[%s7269_s8 + $0x1b0] sm:$0xff] }
 0x356   : > { %v1992_v54 = vpop.f32.mrf.mxu2  ;;  %v2057_v55 = vpop.f32.mrf.mxu3 }
 0x357   : > { %v1993_v62 = vadd.f32 %v1992_v54, %v5412_v43  ;;  %v2058_v7 = vadd.f32 %v2057_v55, %v5415_v60  ;;  %v5489_v63 = vpop.f32.mrf.mxu0  ;;  %v5491_v44 = vpop.f32.mrf.mxu1  ;;  %2691 = vmatpush.msrb.mxu3 %v2477_v38  ;;  %v2476_v38 = vld [vmem:[%s7269_s8 + $0x1a8] sm:$0xff] }
 0x358   : > { %7317 = vst [vmem:[#allocation41_spill] sm:$0xff] %v5491_v44 }
 0x359   : > { %v5493_v12 = vmul.f32 %v1993_v62, %v1733_v17  ;;  %v5495_v46 = vmul.f32 %v2058_v7, %v1798_v36  ;;  %v1736_v17 = vadd.f32 %v5196_v45, %v5404_v29  ;;  %v2447_v45 = vld [vmem:[%s7269_s8 + $0xc0] sm:$0xff]  ;;  %2692 = vmatpush.msrb.mxu3 %v2476_v38 }
 0x35a   : > { %2124 = vmatmul.f32.gmra.mxu0 %v5038_v35  ;;  %2189 = vmatmul.f32.gmra.mxu1 %v5038_v35  ;;  %v2475_v38 = vld [vmem:[%s7269_s8 + $0x1a0] sm:$0xff] }
 0x35b   : > { %2254 = vmatmul.f32.gmra.mxu2 %v5038_v35  ;;  %2319 = vmatmul.f32.gmra.mxu3 %v5038_v35  ;;  %v1801_v35 = vadd.f32 %v5198_v47, %v5407_v18  ;;  %v2462_v47 = vld [vmem:[%s7269_s8 + $0x138] sm:$0xff] }
 0x35c   : > { %2559 = vmatpush.msra.mxu1 %v2447_v45  ;;  %2625 = vmatpush.msra.mxu2 %v2462_v47  ;;  %v2430_v47 = vld [vmem:[%s7269_s8 + $0x38] sm:$0xff] }
 0x35d   : > { %2495 = vmatpush.msra.mxu0 %v2430_v47  ;;  %2693 = vmatpush.msrb.mxu3 %v2475_v38  ;;  %v2474_v38 = vld [vmem:[%s7269_s8 + $0x198] sm:$0xff] }
 0x35e   : > { %v1995_v54 = vpop.f32.mrf.mxu2  ;;  %v2060_v55 = vpop.f32.mrf.mxu3 }
 0x35f   : > { %v1996_v36 = vadd.f32 %v1995_v54, %v5412_v43  ;;  %v2061_v62 = vadd.f32 %v2060_v55, %v5415_v60  ;;  %v5519_v7 = vpop.f32.mrf.mxu0  ;;  %v5521_v44 = vpop.f32.mrf.mxu1  ;;  %2694 = vmatpush.msrb.mxu3 %v2474_v38  ;;  %v2473_v38 = vld [vmem:[%s7269_s8 + $0x190] sm:$0xff] }
 0x360   : > { %7318 = vst [vmem:[#allocation42_spill] sm:$0xff] %v5521_v44 }
 0x361   : > { %v5523_v53 = vmul.f32 %v1996_v36, %v1736_v17  ;;  %v5525_v61 = vmul.f32 %v2061_v62, %v1801_v35  ;;  %v1739_v17 = vadd.f32 %v5208_v41, %v5404_v29  ;;  %v2446_v41 = vld [vmem:[%s7269_s8 + $0xb8] sm:$0xff]  ;;  %2695 = vmatpush.msrb.mxu3 %v2473_v38  ;;  %v2472_v38 = vld [vmem:[%s7269_s8 + $0x188] sm:$0xff] }
 0x362   : > { %2127 = vmatmul.f32.gmra.mxu0 %v5047_v27  ;;  %2192 = vmatmul.f32.gmra.mxu1 %v5047_v27 }
 0x363   : > { %2257 = vmatmul.f32.gmra.mxu2 %v5047_v27  ;;  %2322 = vmatmul.f32.gmra.mxu3 %v5047_v27  ;;  %v1804_v27 = vadd.f32 %v5210_v20, %v5407_v18  ;;  %v2461_v20 = vld [vmem:[%s7269_s8 + $0x130] sm:$0xff] }
 0x364   : > { %2560 = vmatpush.msra.mxu1 %v2446_v41  ;;  %2626 = vmatpush.msra.mxu2 %v2461_v20  ;;  %v2429_v20 = vld [vmem:[%s7269_s8 + $0x30] sm:$0xff] }
 0x365   : > { %2496 = vmatpush.msra.mxu0 %v2429_v20  ;;  %2696 = vmatpush.msrb.mxu3 %v2472_v38  ;;  %v2471_v38 = vld [vmem:[%s7269_s8 + $0x180] sm:$0xff] }
 0x366   : > { %v1998_v54 = vpop.f32.mrf.mxu2  ;;  %v2063_v55 = vpop.f32.mrf.mxu3 }
 0x367   : > { %v1999_v35 = vadd.f32 %v1998_v54, %v5412_v43  ;;  %v2064_v36 = vadd.f32 %v2063_v55, %v5415_v60  ;;  %v5549_v62 = vpop.f32.mrf.mxu0  ;;  %v5551_v44 = vpop.f32.mrf.mxu1  ;;  %2697 = vmatpush.msrb.mxu3 %v2471_v38 }
 0x368   : > { %7319 = vst [vmem:[#allocation43_spill] sm:$0xff] %v5551_v44 }
 0x369   : > { %v5553_v30 = vmul.f32 %v1999_v35, %v1739_v17  ;;  %v5555_v45 = vmul.f32 %v2064_v36, %v1804_v27  ;;  %v1742_v17 = vadd.f32 %v5220_v23, %v5404_v29  ;;  %v2445_v23 = vld [vmem:[%s7269_s8 + $0xb0] sm:$0xff] }
 0x36a   : > { %2130 = vmatmul.f32.gmra.mxu0 %v5056_v10  ;;  %2195 = vmatmul.f32.gmra.mxu1 %v5056_v10 }
 0x36b   : > { %2260 = vmatmul.f32.gmra.mxu2 %v5056_v10  ;;  %2325 = vmatmul.f32.gmra.mxu3 %v5056_v10  ;;  %v1807_v10 = vadd.f32 %v5222_v40, %v5407_v18  ;;  %v2460_v40 = vld [vmem:[%s7269_s8 + $0x128] sm:$0xff] }
 0x36c   : > { %2561 = vmatpush.msra.mxu1 %v2445_v23  ;;  %2627 = vmatpush.msra.mxu2 %v2460_v40  ;;  %v2428_v40 = vld [vmem:[%s7269_s8 + $0x28] sm:$0xff] }
 0x36d   : > { %2497 = vmatpush.msra.mxu0 %v2428_v40 }
 0x36e   : > { %v2001_v54 = vpop.f32.mrf.mxu2  ;;  %v2066_v55 = vpop.f32.mrf.mxu3 }
 0x36f   : > { %v2002_v27 = vadd.f32 %v2001_v54, %v5412_v43  ;;  %v2067_v35 = vadd.f32 %v2066_v55, %v5415_v60  ;;  %v5579_v36 = vpop.f32.mrf.mxu0  ;;  %v5581_v44 = vpop.f32.mrf.mxu1 }
 0x370   : > { %7320 = vst [vmem:[#allocation44_spill] sm:$0xff] %v5581_v44 }
 0x371   : > { %v5583_v47 = vmul.f32 %v2002_v27, %v1742_v17  ;;  %v5585_v41 = vmul.f32 %v2067_v35, %v1807_v10  ;;  %v1745_v17 = vadd.f32 %v5232_v1, %v5404_v29  ;;  %v2444_v1 = vld [vmem:[%s7269_s8 + $0xa8] sm:$0xff] }
 0x372   : > { %2133 = vmatmul.f32.gmra.mxu0 %v5065_v25  ;;  %2198 = vmatmul.f32.gmra.mxu1 %v5065_v25 }
 0x373   : > { %2263 = vmatmul.f32.gmra.mxu2 %v5065_v25  ;;  %2328 = vmatmul.f32.gmra.mxu3 %v5065_v25  ;;  %v1810_v25 = vadd.f32 %v5234_v34, %v5407_v18  ;;  %v2459_v34 = vld [vmem:[%s7269_s8 + $0x120] sm:$0xff] }
 0x374   : > { %2562 = vmatpush.msra.mxu1 %v2444_v1  ;;  %2628 = vmatpush.msra.mxu2 %v2459_v34  ;;  %v2427_v34 = vld [vmem:[%s7269_s8 + $0x20] sm:$0xff] }
 0x375   : > { %2498 = vmatpush.msra.mxu0 %v2427_v34 }
 0x376   : > { %v2004_v54 = vpop.f32.mrf.mxu2  ;;  %v2069_v55 = vpop.f32.mrf.mxu3 }
 0x377   : > { %v2005_v10 = vadd.f32 %v2004_v54, %v5412_v43  ;;  %v2070_v27 = vadd.f32 %v2069_v55, %v5415_v60  ;;  %v5609_v35 = vpop.f32.mrf.mxu0  ;;  %v5611_v44 = vpop.f32.mrf.mxu1 }
 0x378   : > { %7321 = vst [vmem:[#allocation45_spill] sm:$0xff] %v5611_v44 }
 0x379   : > { %v5613_v20 = vmul.f32 %v2005_v10, %v1745_v17  ;;  %v5615_v23 = vmul.f32 %v2070_v27, %v1810_v25  ;;  %v1748_v17 = vadd.f32 %v5244_v24, %v5404_v29  ;;  %v2443_v24 = vld [vmem:[%s7269_s8 + $0xa0] sm:$0xff] }
 0x37a   : > { %2136 = vmatmul.f32.gmra.mxu0 %v5074_v6  ;;  %2201 = vmatmul.f32.gmra.mxu1 %v5074_v6 }
 0x37b   : > { %2266 = vmatmul.f32.gmra.mxu2 %v5074_v6  ;;  %2331 = vmatmul.f32.gmra.mxu3 %v5074_v6  ;;  %v1813_v6 = vadd.f32 %v5246_v33, %v5407_v18  ;;  %v2458_v33 = vld [vmem:[%s7269_s8 + $0x118] sm:$0xff] }
 0x37c   : > { %2563 = vmatpush.msra.mxu1 %v2443_v24  ;;  %2629 = vmatpush.msra.mxu2 %v2458_v33  ;;  %v2426_v33 = vld [vmem:[%s7269_s8 + $0x18] sm:$0xff] }
 0x37d   : > { %2499 = vmatpush.msra.mxu0 %v2426_v33 }
 0x37e   : > { %v2007_v54 = vpop.f32.mrf.mxu2  ;;  %v2072_v55 = vpop.f32.mrf.mxu3 }
 0x37f   : > { %v2008_v25 = vadd.f32 %v2007_v54, %v5412_v43  ;;  %v2073_v10 = vadd.f32 %v2072_v55, %v5415_v60  ;;  %v5639_v27 = vpop.f32.mrf.mxu0  ;;  %v5641_v44 = vpop.f32.mrf.mxu1 }
 0x380   : > { %7322 = vst [vmem:[#allocation46_spill] sm:$0xff] %v5641_v44 }
 0x381   : > { %v5643_v40 = vmul.f32 %v2008_v25, %v1748_v17  ;;  %v5645_v1 = vmul.f32 %v2073_v10, %v1813_v6  ;;  %v1751_v17 = vadd.f32 %v5256_v37, %v5404_v29  ;;  %v2442_v37 = vld [vmem:[%s7269_s8 + $0x98] sm:$0xff] }
 0x382   : > { %2139 = vmatmul.f32.gmra.mxu0 %v5083_v0  ;;  %2204 = vmatmul.f32.gmra.mxu1 %v5083_v0 }
 0x383   : > { %2269 = vmatmul.f32.gmra.mxu2 %v5083_v0  ;;  %2334 = vmatmul.f32.gmra.mxu3 %v5083_v0  ;;  %v1816_v0 = vadd.f32 %v5258_v19, %v5407_v18  ;;  %v2457_v19 = vld [vmem:[%s7269_s8 + $0x110] sm:$0xff] }
 0x384   : > { %2564 = vmatpush.msra.mxu1 %v2442_v37  ;;  %2630 = vmatpush.msra.mxu2 %v2457_v19  ;;  %v2425_v19 = vld [vmem:[%s7269_s8 + $0x10] sm:$0xff] }
 0x385   : > { %2500 = vmatpush.msra.mxu0 %v2425_v19 }
 0x386   : > { %v2010_v54 = vpop.f32.mrf.mxu2  ;;  %v2075_v55 = vpop.f32.mrf.mxu3 }
 0x387   : > { %v2011_v6 = vadd.f32 %v2010_v54, %v5412_v43  ;;  %v2076_v25 = vadd.f32 %v2075_v55, %v5415_v60  ;;  %v5669_v10 = vpop.f32.mrf.mxu0  ;;  %v5671_v44 = vpop.f32.mrf.mxu1 }
 0x388   : > { %7323 = vst [vmem:[#allocation47_spill] sm:$0xff] %v5671_v44 }
 0x389   : > { %v5673_v34 = vmul.f32 %v2011_v6, %v1751_v17  ;;  %v5675_v24 = vmul.f32 %v2076_v25, %v1816_v0  ;;  %v1754_v17 = vadd.f32 %v5268_v14, %v5404_v29  ;;  %v2441_v14 = vld [vmem:[%s7269_s8 + $0x90] sm:$0xff] }
 0x38a   : > { %2142 = vmatmul.f32.gmra.mxu0 %v5092_v51  ;;  %2207 = vmatmul.f32.gmra.mxu1 %v5092_v51 }
 0x38b   : > { %2272 = vmatmul.f32.gmra.mxu2 %v5092_v51  ;;  %2337 = vmatmul.f32.gmra.mxu3 %v5092_v51  ;;  %v1819_v51 = vadd.f32 %v5270_v15, %v5407_v18  ;;  %v2456_v15 = vld [vmem:[%s7269_s8 + $0x108] sm:$0xff] }
 0x38c   : > { %2565 = vmatpush.msra.mxu1 %v2441_v14  ;;  %2631 = vmatpush.msra.mxu2 %v2456_v15  ;;  %v2424_v15 = vld [vmem:[%s7269_s8 + $0x8] sm:$0xff] }
 0x38d   : > { %2501 = vmatpush.msra.mxu0 %v2424_v15 }
 0x38e   : > { %v2013_v54 = vpop.f32.mrf.mxu2  ;;  %v2078_v55 = vpop.f32.mrf.mxu3 }
 0x38f   : > { %v2014_v0 = vadd.f32 %v2013_v54, %v5412_v43  ;;  %v2079_v6 = vadd.f32 %v2078_v55, %v5415_v60  ;;  %v5699_v25 = vpop.f32.mrf.mxu0  ;;  %v5701_v44 = vpop.f32.mrf.mxu1 }
 0x390   : > { %7324 = vst [vmem:[#allocation48_spill] sm:$0xff] %v5701_v44 }
 0x391   : > { %v5703_v33 = vmul.f32 %v2014_v0, %v1754_v17  ;;  %v5705_v37 = vmul.f32 %v2079_v6, %v1819_v51  ;;  %v1757_v17 = vadd.f32 %v5280_v26, %v5404_v29  ;;  %v2440_v26 = vld [vmem:[%s7269_s8 + $0x88] sm:$0xff] }
 0x392   : > { %2145 = vmatmul.f32.gmra.mxu0 %v5101_v31  ;;  %2210 = vmatmul.f32.gmra.mxu1 %v5101_v31 }
 0x393   : > { %2275 = vmatmul.f32.gmra.mxu2 %v5101_v31  ;;  %2340 = vmatmul.f32.gmra.mxu3 %v5101_v31  ;;  %v1822_v31 = vadd.f32 %v5282_v42, %v5407_v18  ;;  %v2455_v42 = vld [vmem:[%s7269_s8 + $0x100] sm:$0xff] }
 0x394   : > { %2566 = vmatpush.msra.mxu1 %v2440_v26  ;;  %2632 = vmatpush.msra.mxu2 %v2455_v42  ;;  %v2423_v42 = vld [vmem:[%s7269_s8] sm:$0xff] }
 0x395   : > { %2502 = vmatpush.msra.mxu0 %v2423_v42  ;;  %v1766_v42 = vadd.f32 %v5334_v59, %v5404_v29 }
 0x396   : > { %v2016_v54 = vpop.f32.mrf.mxu2  ;;  %v2081_v55 = vpop.f32.mrf.mxu3 }
 0x397   : > { %v2017_v51 = vadd.f32 %v2016_v54, %v5412_v43  ;;  %v2082_v0 = vadd.f32 %v2081_v55, %v5415_v60  ;;  %v5729_v6 = vpop.f32.mrf.mxu0  ;;  %v5731_v44 = vpop.f32.mrf.mxu1 }
 0x398   : > { %7325 = vst [vmem:[#allocation49_spill] sm:$0xff] %v5731_v44 }
 0x399   : > { %v5733_v19 = vmul.f32 %v2017_v51, %v1757_v17  ;;  %v5735_v14 = vmul.f32 %v2082_v0, %v1822_v31  ;;  %v1760_v17 = vadd.f32 %v5292_v52, %v5404_v29  ;;  %v2439_v52 = vld [vmem:[%s7269_s8 + $0x80] sm:$0xff] }
 0x39a   : > { %2148 = vmatmul.f32.gmra.mxu0 %v5110_v4  ;;  %2213 = vmatmul.f32.gmra.mxu1 %v5110_v4 }
 0x39b   : > { %2278 = vmatmul.f32.gmra.mxu2 %v5110_v4  ;;  %2343 = vmatmul.f32.gmra.mxu3 %v5110_v4  ;;  %v1825_v4 = vadd.f32 %v5294_v21, %v5407_v18 }
 0x39c   : > { %2567 = vmatpush.msra.mxu1 %v2439_v52  ;;  %v1831_v52 = vadd.f32 %v5336_v2, %v5407_v18  ;;  %v1769_v2 = vadd.f32 %v5358_v13, %v5404_v29 }
 0x39e   : > { %v2019_v54 = vpop.f32.mrf.mxu2  ;;  %v2084_v55 = vpop.f32.mrf.mxu3 }
 0x39f   : > { %v2020_v31 = vadd.f32 %v2019_v54, %v5412_v43  ;;  %v2085_v51 = vadd.f32 %v2084_v55, %v5415_v60  ;;  %v5759_v0 = vpop.f32.mrf.mxu0  ;;  %v5761_v44 = vpop.f32.mrf.mxu1  ;;  %v1763_v54 = vadd.f32 %v5310_v39, %v5404_v29  ;;  %v1828_v55 = vadd.f32 %v5312_v5, %v5407_v18 }
 0x3a0   : > { %7326 = vst [vmem:[#allocation50_spill] sm:$0xff] %v5761_v44 }
 0x3a1   : > { %v5763_v15 = vmul.f32 %v2020_v31, %v1760_v17  ;;  %v5765_v26 = vmul.f32 %v2085_v51, %v1825_v4 }
 0x3a2   : > { %2151 = vmatmul.f32.gmra.mxu0 %v5119_v49  ;;  %2216 = vmatmul.f32.gmra.mxu1 %v5119_v49 }
 0x3a3   : > { %2281 = vmatmul.f32.gmra.mxu2 %v5119_v49  ;;  %2346 = vmatmul.f32.gmra.mxu3 %v5119_v49 }
 0x3a6   : > { %v2022_v21 = vpop.f32.mrf.mxu2  ;;  %v2087_v38 = vpop.f32.mrf.mxu3 }
 0x3a7   : > { %v2023_v17 = vadd.f32 %v2022_v21, %v5412_v43  ;;  %v2088_v4 = vadd.f32 %v2087_v38, %v5415_v60  ;;  %v5783_v31 = vpop.f32.mrf.mxu0  ;;  %v5785_v51 = vpop.f32.mrf.mxu1 }
 0x3a8   : > { %7327 = vst [vmem:[#allocation51_spill] sm:$0xff] %v5783_v31 }
 0x3a9   : > { %7328 = vst [vmem:[#allocation52_spill] sm:$0xff] %v5785_v51  ;;  %v5787_v44 = vmul.f32 %v2023_v17, %v1763_v54  ;;  %v5789_v49 = vmul.f32 %v2088_v4, %v1828_v55 }
 0x3aa   : > { %2154 = vmatmul.f32.gmra.mxu0 %v5128_v9  ;;  %2219 = vmatmul.f32.gmra.mxu1 %v5128_v9 }
 0x3ab   : > { %2284 = vmatmul.f32.gmra.mxu2 %v5128_v9  ;;  %2349 = vmatmul.f32.gmra.mxu3 %v5128_v9 }
 0x3ae   : > { %v2025_v39 = vpop.f32.mrf.mxu2  ;;  %v2090_v5 = vpop.f32.mrf.mxu3 }
 0x3af   : > { %v2026_v21 = vadd.f32 %v2025_v39, %v5412_v43  ;;  %v2091_v38 = vadd.f32 %v2090_v5, %v5415_v60  ;;  %v5801_v54 = vpop.f32.mrf.mxu0  ;;  %v5803_v55 = vpop.f32.mrf.mxu1  ;;  %v1834_v39 = vadd.f32 %v5360_v8, %v5407_v18  ;;  %v5834_v8 = vperm.slane %v5399_v56, 0 }
 0x3b0   : > { %7329 = vst [vmem:[#allocation53_spill] sm:$0xff] %v5801_v54  ;;  %v7340_v54 = vld [vmem:[#allocation38_spill] sm:$0xff] }
 0x3b1   : > { %7330 = vst [vmem:[#allocation54_spill] sm:$0xff] %v5803_v55  ;;  %v5805_v17 = vmul.f32 %v2026_v21, %v1766_v42  ;;  %v5807_v4 = vmul.f32 %v2091_v38, %v1831_v52  ;;  %v5824_v38 = vperm.slane %v5399_v56, 4 }
 0x3b2   : > { %2157 = vmatmul.f32.gmra.mxu0 %v5137_v48  ;;  %2222 = vmatmul.f32.gmra.mxu1 %v5137_v48 }
 0x3b3   : > { %7331 = vst [vmem:[#allocation55_spill] sm:$0xff] %v5805_v17  ;;  %2287 = vmatmul.f32.gmra.mxu2 %v5137_v48  ;;  %2352 = vmatmul.f32.gmra.mxu3 %v5137_v48  ;;  %v5827_v48 = vperm.slane %v5399_v56, 5 }
 0x3b4   : > { %7332 = vst [vmem:[#allocation56_spill] sm:$0xff] %v5807_v4 }
 0x3b6   : > { %v2028_v9 = vpop.f32.mrf.mxu2  ;;  %v2093_v59 = vpop.f32.mrf.mxu3 }
 0x3b7   : > { %v2029_v5 = vadd.f32 %v2028_v9, %v5412_v43  ;;  %v2094_v42 = vadd.f32 %v2093_v59, %v5415_v60  ;;  %v5819_v52 = vpop.f32.mrf.mxu0  ;;  %v5821_v21 = vpop.f32.mrf.mxu1  ;;  %v5837_v9 = vperm.slane %v5399_v56, 1  ;;  %v1857_v59 = vadd.f32 %v5386_v16, %v5824_v38  ;;  %v7338_v56 = vld [vmem:[#allocation6_spill] sm:$0xff] }
 0x3b8   : > { %7333 = vst [vmem:[#allocation57_spill] sm:$0xff] %v5819_v52 }
 0x3b9   : > { %7334 = vst [vmem:[#allocation58_spill] sm:$0xff] %v5821_v21  ;;  %v5829_v55 = vmul.f32 %v2029_v5, %v1769_v2  ;;  %v5831_v13 = vmul.f32 %v2094_v42, %v1834_v39  ;;  %v1922_v2 = vadd.f32 %v5388_v11, %v5827_v48  ;;  %v7337_v39 = vld [vmem:[#allocation5_spill] sm:$0xff]  ;;  %v1662_v42 = vadd.f32 %v7338_v56, %v5837_v9 }
 0x3ba   : > { %2160 = vmatmul.f32.gmra.mxu0 %v5146_v50  ;;  %2225 = vmatmul.f32.gmra.mxu1 %v5146_v50  ;;  %v1597_v5 = vadd.f32 %v7337_v39, %v5834_v8 }
 0x3bb   : > { %7335 = vst [vmem:[#allocation59_spill] sm:$0xff] %v5829_v55  ;;  %2290 = vmatmul.f32.gmra.mxu2 %v5146_v50  ;;  %2355 = vmatmul.f32.gmra.mxu3 %v5146_v50  ;;  %v1837_v50 = vadd.f32 %v7340_v54, %v5407_v18  ;;  %v2360_v51 = vmul.f32 %v1922_v2, %v1662_v42 }
 0x3bc   : > { %7336 = vst [vmem:[#allocation60_spill] sm:$0xff] %v5831_v13  ;;  %v7339_v13 = vld [vmem:[#allocation37_spill] sm:$0xff]  ;;  %v2359_v39 = vmul.f32 %v1857_v59, %v1597_v5  ;;  %v7345_v59 = vld [vmem:[#allocation40_spill] sm:$0xff] }
 0x3bd   : > { %v1772_v55 = vadd.f32 %v7339_v13, %v5404_v29  ;;  %v1860_v29 = vadd.f32 %v5429_v22, %v5824_v38  ;;  %v1863_v22 = vadd.f32 %v5459_v58, %v5824_v38  ;;  %v1928_v2 = vadd.f32 %v7345_v59, %v5827_v48  ;;  %v7346_v5 = vld [vmem:[#allocation9_spill] sm:$0xff] }
 0x3be   : > { %v2031_v21 = vpop.f32.mrf.mxu2  ;;  %v2096_v52 = vpop.f32.mrf.mxu3  ;;  %v1603_v42 = vadd.f32 %v7346_v5, %v5834_v8  ;;  %v1866_v58 = vadd.f32 %v5489_v63, %v5824_v38  ;;  %v1869_v63 = vadd.f32 %v5519_v7, %v5824_v38  ;;  %v1872_v7 = vadd.f32 %v5549_v62, %v5824_v38 }
 0x3bf   : > { %v2032_v4 = vadd.f32 %v2031_v21, %v5412_v43  ;;  %v2097_v16 = vadd.f32 %v2096_v52, %v5415_v60  ;;  %v5857_v17 = vpop.f32.mrf.mxu0  ;;  %v5859_v11 = vpop.f32.mrf.mxu1  ;;  %v7341_v60 = vld [vmem:[#allocation39_spill] sm:$0xff]  ;;  %v1875_v62 = vadd.f32 %v5579_v36, %v5824_v38  ;;  %v1878_v36 = vadd.f32 %v5609_v35, %v5824_v38 }
 0x3c0   : > { %v1925_v18 = vadd.f32 %v7341_v60, %v5827_v48  ;;  %v7342_v43 = vld [vmem:[#allocation7_spill] sm:$0xff]  ;;  %v1881_v35 = vadd.f32 %v5639_v27, %v5824_v38  ;;  %v1884_v27 = vadd.f32 %v5669_v10, %v5824_v38  ;;  %v1887_v10 = vadd.f32 %v5699_v25, %v5824_v38 }
 0x3c1   : > { %v5861_v31 = vmul.f32 %v2032_v4, %v1772_v55  ;;  %v5863_v56 = vmul.f32 %v2097_v16, %v1837_v50  ;;  %v1600_v54 = vadd.f32 %v7342_v43, %v5834_v8  ;;  %v7343_v55 = vld [vmem:[#allocation8_spill] sm:$0xff]  ;;  %v7347_v50 = vld [vmem:[#allocation10_spill] sm:$0xff]  ;;  %v7349_v43 = vld [vmem:[#allocation41_spill] sm:$0xff]  ;;  %v1890_v25 = vadd.f32 %v5729_v6, %v5824_v38 }
 0x3c2   : > { %2503 = vmatmul.f32.vlgmr.msra.gmra.mxu0 %v2359_v39  ;;  %2568 = vmatmul.f32.vlgmr.msra.gmra.mxu1 %v2360_v51  ;;  %v1665_v4 = vadd.f32 %v7343_v55, %v5837_v9  ;;  %v1668_v16 = vadd.f32 %v7347_v50, %v5837_v9  ;;  %v7350_v55 = vld [vmem:[#allocation11_spill] sm:$0xff]  ;;  %v1893_v6 = vadd.f32 %v5759_v0, %v5824_v38 }
 0x3c3   : > { %2633 = vmatmul.f32.vlgmr.msra.gmra.mxu2 %v5433_v28  ;;  %2698 = vmatmul.f32.vlgmr.msrb.gmra.mxu3 %v5435_v3  ;;  %v2363_v3 = vmul.f32 %v1860_v29, %v1600_v54  ;;  %v1931_v54 = vadd.f32 %v7349_v43, %v5827_v48  ;;  %v7391_v0 = vld [vmem:[#allocation51_spill] sm:$0xff] }
 0x3c4   : > { %v2364_v13 = vmul.f32 %v1925_v18, %v1665_v4  ;;  %v2368_v18 = vmul.f32 %v1928_v2, %v1668_v16  ;;  %v1606_v4 = vadd.f32 %v7350_v55, %v5834_v8  ;;  %v7354_v16 = vld [vmem:[#allocation13_spill] sm:$0xff] }
 0x3c6   : > { %v5875_v52 = vpop.f32.mrf.mxu2  ;;  %v5877_v21 = vpop.f32.mrf.mxu3 }
 0x3c7   : > { %7344 = vst [vmem:[#allocation5_spill] sm:$0xff] %v5877_v21  ;;  %v5879_v51 = vpop.f32.mrf.mxu0  ;;  %v5881_v28 = vpop.f32.mrf.mxu1 }
 0x3ca   : > { %2506 = vmatmul.f32.gmra.mxu0 %v2363_v3  ;;  %2571 = vmatmul.f32.gmra.mxu1 %v2364_v13  ;;  %v7351_v3 = vld [vmem:[#allocation12_spill] sm:$0xff] }
 0x3cb   : > { %2636 = vmatmul.f32.gmra.mxu2 %v5463_v57  ;;  %2701 = vmatmul.f32.gmra.mxu3 %v5465_v32  ;;  %v2367_v32 = vmul.f32 %v1863_v22, %v1603_v42  ;;  %v1671_v13 = vadd.f32 %v7351_v3, %v5837_v9  ;;  %v7353_v42 = vld [vmem:[#allocation42_spill] sm:$0xff]  ;;  %v7357_v3 = vld [vmem:[#allocation43_spill] sm:$0xff] }
 0x3cc   : > { %v1934_v50 = vadd.f32 %v7353_v42, %v5827_v48  ;;  %v7359_v42 = vld [vmem:[#allocation16_spill] sm:$0xff] }
 0x3cd   : > { %v2372_v5 = vmul.f32 %v1931_v54, %v1671_v13  ;;  %v1937_v13 = vadd.f32 %v7357_v3, %v5827_v48 }
 0x3ce   : > { %v5893_v39 = vpop.f32.mrf.mxu2  ;;  %v5895_v29 = vpop.f32.mrf.mxu3 }
 0x3cf   : > { %7348 = vst [vmem:[#allocation6_spill] sm:$0xff] %v5895_v29  ;;  %v5897_v60 = vpop.f32.mrf.mxu0  ;;  %v5899_v57 = vpop.f32.mrf.mxu1 }
 0x3d2   : > { %2509 = vmatmul.f32.gmra.mxu0 %v2367_v32  ;;  %2574 = vmatmul.f32.gmra.mxu1 %v2368_v18  ;;  %v1609_v32 = vadd.f32 %v7354_v16, %v5834_v8  ;;  %v7355_v18 = vld [vmem:[#allocation14_spill] sm:$0xff]  ;;  %v1677_v16 = vadd.f32 %v7359_v42, %v5837_v9 }
 0x3d3   : > { %2639 = vmatmul.f32.gmra.mxu2 %v5493_v12  ;;  %2704 = vmatmul.f32.gmra.mxu3 %v5495_v46  ;;  %v2371_v46 = vmul.f32 %v1866_v58, %v1606_v4  ;;  %v1674_v43 = vadd.f32 %v7355_v18, %v5837_v9 }
 0x3d4   : > { %v2380_v18 = vmul.f32 %v1937_v13, %v1677_v16 }
 0x3d5   : > { %v2376_v4 = vmul.f32 %v1934_v50, %v1674_v43  ;;  %v7361_v43 = vld [vmem:[#allocation44_spill] sm:$0xff] }
 0x3d6   : > { %v5911_v22 = vpop.f32.mrf.mxu2  ;;  %v5913_v59 = vpop.f32.mrf.mxu3 }
 0x3d7   : > { %7352 = vst [vmem:[#allocation37_spill] sm:$0xff] %v5913_v59  ;;  %v5915_v2 = vpop.f32.mrf.mxu0  ;;  %v5917_v12 = vpop.f32.mrf.mxu1 }
 0x3da   : > { %2512 = vmatmul.f32.gmra.mxu0 %v2371_v46  ;;  %2577 = vmatmul.f32.gmra.mxu1 %v2372_v5  ;;  %v7358_v46 = vld [vmem:[#allocation15_spill] sm:$0xff] }
 0x3db   : > { %2642 = vmatmul.f32.gmra.mxu2 %v5523_v53  ;;  %2707 = vmatmul.f32.gmra.mxu3 %v5525_v61  ;;  %v2375_v61 = vmul.f32 %v1869_v63, %v1609_v32  ;;  %v1612_v5 = vadd.f32 %v7358_v46, %v5834_v8  ;;  %v7363_v46 = vld [vmem:[#allocation18_spill] sm:$0xff] }
 0x3dc   : > { %v1680_v42 = vadd.f32 %v7363_v46, %v5837_v9  ;;  %v7367_v46 = vld [vmem:[#allocation20_spill] sm:$0xff] }
 0x3de   : > { %v5929_v58 = vpop.f32.mrf.mxu2  ;;  %v5931_v54 = vpop.f32.mrf.mxu3 }
 0x3df   : > { %7356 = vst [vmem:[#allocation38_spill] sm:$0xff] %v5931_v54  ;;  %v5933_v55 = vpop.f32.mrf.mxu0  ;;  %v5935_v53 = vpop.f32.mrf.mxu1  ;;  %v7409_v54 = vld [vmem:[#allocation59_spill] sm:$0xff] }
 0x3e2   : > { %2515 = vmatmul.f32.gmra.mxu0 %v2375_v61  ;;  %2580 = vmatmul.f32.gmra.mxu1 %v2376_v4  ;;  %v1940_v61 = vadd.f32 %v7361_v43, %v5827_v48  ;;  %v7362_v4 = vld [vmem:[#allocation17_spill] sm:$0xff]  ;;  %v7366_v43 = vld [vmem:[#allocation19_spill] sm:$0xff] }
 0x3e3   : > { %2645 = vmatmul.f32.gmra.mxu2 %v5553_v30  ;;  %2710 = vmatmul.f32.gmra.mxu3 %v5555_v45  ;;  %v2379_v45 = vmul.f32 %v1872_v7, %v1612_v5  ;;  %v1615_v3 = vadd.f32 %v7362_v4, %v5834_v8  ;;  %v1618_v4 = vadd.f32 %v7366_v43, %v5834_v8 }
 0x3e4   : > { %v2384_v16 = vmul.f32 %v1940_v61, %v1680_v42 }
 0x3e6   : > { %v5947_v63 = vpop.f32.mrf.mxu2  ;;  %v5949_v50 = vpop.f32.mrf.mxu3 }
 0x3e7   : > { %7360 = vst [vmem:[#allocation39_spill] sm:$0xff] %v5949_v50  ;;  %v5951_v32 = vpop.f32.mrf.mxu0  ;;  %v5953_v30 = vpop.f32.mrf.mxu1 }
 0x3ea   : > { %2518 = vmatmul.f32.gmra.mxu0 %v2379_v45  ;;  %2583 = vmatmul.f32.gmra.mxu1 %v2380_v18  ;;  %v7365_v45 = vld [vmem:[#allocation45_spill] sm:$0xff] }
 0x3eb   : > { %2648 = vmatmul.f32.gmra.mxu2 %v5583_v47  ;;  %2713 = vmatmul.f32.gmra.mxu3 %v5585_v41  ;;  %v2383_v41 = vmul.f32 %v1875_v62, %v1615_v3  ;;  %v1943_v18 = vadd.f32 %v7365_v45, %v5827_v48  ;;  %v7370_v45 = vld [vmem:[#allocation21_spill] sm:$0xff] }
 0x3ec   : > { %v1621_v43 = vadd.f32 %v7370_v45, %v5834_v8 }
 0x3ee   : > { %v5965_v7 = vpop.f32.mrf.mxu2  ;;  %v5967_v13 = vpop.f32.mrf.mxu3 }
 0x3ef   : > { %7364 = vst [vmem:[#allocation7_spill] sm:$0xff] %v5967_v13  ;;  %v5969_v5 = vpop.f32.mrf.mxu0  ;;  %v5971_v47 = vpop.f32.mrf.mxu1  ;;  %v1683_v13 = vadd.f32 %v7367_v46, %v5837_v9  ;;  %v7371_v46 = vld [vmem:[#allocation22_spill] sm:$0xff] }
 0x3f1   : > { %v2388_v42 = vmul.f32 %v1943_v18, %v1683_v13 }
 0x3f2   : > { %2521 = vmatmul.f32.gmra.mxu0 %v2383_v41  ;;  %2586 = vmatmul.f32.gmra.mxu1 %v2384_v16  ;;  %v7369_v41 = vld [vmem:[#allocation46_spill] sm:$0xff] }
 0x3f3   : > { %2651 = vmatmul.f32.gmra.mxu2 %v5613_v20  ;;  %2716 = vmatmul.f32.gmra.mxu3 %v5615_v23  ;;  %v2387_v23 = vmul.f32 %v1878_v36, %v1618_v4  ;;  %v1946_v16 = vadd.f32 %v7369_v41, %v5827_v48  ;;  %v7374_v41 = vld [vmem:[#allocation23_spill] sm:$0xff] }
 0x3f4   : > { %v1624_v45 = vadd.f32 %v7374_v41, %v5834_v8 }
 0x3f6   : > { %v5983_v62 = vpop.f32.mrf.mxu2  ;;  %v5985_v61 = vpop.f32.mrf.mxu3 }
 0x3f7   : > { %7368 = vst [vmem:[#allocation8_spill] sm:$0xff] %v5985_v61  ;;  %v5987_v3 = vpop.f32.mrf.mxu0  ;;  %v5989_v20 = vpop.f32.mrf.mxu1  ;;  %v1686_v61 = vadd.f32 %v7371_v46, %v5837_v9  ;;  %v7375_v46 = vld [vmem:[#allocation24_spill] sm:$0xff] }
 0x3f9   : > { %v2392_v4 = vmul.f32 %v1946_v16, %v1686_v61 }
 0x3fa   : > { %2524 = vmatmul.f32.gmra.mxu0 %v2387_v23  ;;  %2589 = vmatmul.f32.gmra.mxu1 %v2388_v42  ;;  %v7373_v23 = vld [vmem:[#allocation47_spill] sm:$0xff] }
 0x3fb   : > { %2654 = vmatmul.f32.gmra.mxu2 %v5643_v40  ;;  %2719 = vmatmul.f32.gmra.mxu3 %v5645_v1  ;;  %v2391_v1 = vmul.f32 %v1881_v35, %v1621_v43  ;;  %v1949_v42 = vadd.f32 %v7373_v23, %v5827_v48  ;;  %v7378_v23 = vld [vmem:[#allocation25_spill] sm:$0xff] }
 0x3fc   : > { %v1627_v41 = vadd.f32 %v7378_v23, %v5834_v8 }
 0x3fe   : > { %v6001_v36 = vpop.f32.mrf.mxu2  ;;  %v6003_v13 = vpop.f32.mrf.mxu3 }
 0x3ff   : > { %7372 = vst [vmem:[#allocation40_spill] sm:$0xff] %v6003_v13  ;;  %v6005_v18 = vpop.f32.mrf.mxu0  ;;  %v6007_v40 = vpop.f32.mrf.mxu1  ;;  %v1689_v13 = vadd.f32 %v7375_v46, %v5837_v9  ;;  %v7379_v46 = vld [vmem:[#allocation26_spill] sm:$0xff] }
 0x401   : > { %v2396_v43 = vmul.f32 %v1949_v42, %v1689_v13 }
 0x402   : > { %2527 = vmatmul.f32.gmra.mxu0 %v2391_v1  ;;  %2592 = vmatmul.f32.gmra.mxu1 %v2392_v4  ;;  %v7377_v1 = vld [vmem:[#allocation48_spill] sm:$0xff] }
 0x403   : > { %2657 = vmatmul.f32.gmra.mxu2 %v5673_v34  ;;  %2722 = vmatmul.f32.gmra.mxu3 %v5675_v24  ;;  %v2395_v24 = vmul.f32 %v1884_v27, %v1624_v45  ;;  %v1952_v4 = vadd.f32 %v7377_v1, %v5827_v48  ;;  %v7382_v1 = vld [vmem:[#allocation27_spill] sm:$0xff] }
 0x404   : > { %v1630_v23 = vadd.f32 %v7382_v1, %v5834_v8 }
 0x406   : > { %v6019_v35 = vpop.f32.mrf.mxu2  ;;  %v6021_v61 = vpop.f32.mrf.mxu3 }
 0x407   : > { %7376 = vst [vmem:[#allocation9_spill] sm:$0xff] %v6021_v61  ;;  %v6023_v16 = vpop.f32.mrf.mxu0  ;;  %v6025_v34 = vpop.f32.mrf.mxu1  ;;  %v1692_v61 = vadd.f32 %v7379_v46, %v5837_v9  ;;  %v7383_v46 = vld [vmem:[#allocation28_spill] sm:$0xff] }
 0x409   : > { %v2400_v45 = vmul.f32 %v1952_v4, %v1692_v61 }
 0x40a   : > { %2530 = vmatmul.f32.gmra.mxu0 %v2395_v24  ;;  %2595 = vmatmul.f32.gmra.mxu1 %v2396_v43  ;;  %v7381_v24 = vld [vmem:[#allocation49_spill] sm:$0xff] }
 0x40b   : > { %2660 = vmatmul.f32.gmra.mxu2 %v5703_v33  ;;  %2725 = vmatmul.f32.gmra.mxu3 %v5705_v37  ;;  %v2399_v37 = vmul.f32 %v1887_v10, %v1627_v41  ;;  %v1955_v43 = vadd.f32 %v7381_v24, %v5827_v48  ;;  %v7386_v24 = vld [vmem:[#allocation29_spill] sm:$0xff] }
 0x40c   : > { %v1633_v1 = vadd.f32 %v7386_v24, %v5834_v8  ;;  %v7393_v24 = vld [vmem:[#allocation31_spill] sm:$0xff] }
 0x40e   : > { %v6037_v27 = vpop.f32.mrf.mxu2  ;;  %v6039_v13 = vpop.f32.mrf.mxu3 }
 0x40f   : > { %7380 = vst [vmem:[#allocation10_spill] sm:$0xff] %v6039_v13  ;;  %v6041_v42 = vpop.f32.mrf.mxu0  ;;  %v6043_v33 = vpop.f32.mrf.mxu1  ;;  %v1695_v13 = vadd.f32 %v7383_v46, %v5837_v9  ;;  %v7387_v46 = vld [vmem:[#allocation30_spill] sm:$0xff] }
 0x411   : > { %v2404_v41 = vmul.f32 %v1955_v43, %v1695_v13 }
 0x412   : > { %2533 = vmatmul.f32.gmra.mxu0 %v2399_v37  ;;  %2598 = vmatmul.f32.gmra.mxu1 %v2400_v45  ;;  %v7385_v37 = vld [vmem:[#allocation50_spill] sm:$0xff] }
 0x413   : > { %2663 = vmatmul.f32.gmra.mxu2 %v5733_v19  ;;  %2728 = vmatmul.f32.gmra.mxu3 %v5735_v14  ;;  %v2403_v14 = vmul.f32 %v1890_v25, %v1630_v23  ;;  %v1958_v45 = vadd.f32 %v7385_v37, %v5827_v48 }
 0x416   : > { %v6055_v10 = vpop.f32.mrf.mxu2  ;;  %v6057_v61 = vpop.f32.mrf.mxu3 }
 0x417   : > { %7384 = vst [vmem:[#allocation41_spill] sm:$0xff] %v6057_v61  ;;  %v6059_v4 = vpop.f32.mrf.mxu0  ;;  %v6061_v19 = vpop.f32.mrf.mxu1  ;;  %v1698_v61 = vadd.f32 %v7387_v46, %v5837_v9  ;;  %v1636_v46 = vadd.f32 %v7393_v24, %v5834_v8  ;;  %v7402_v24 = vld [vmem:[#allocation54_spill] sm:$0xff] }
 0x419   : > { %v2408_v23 = vmul.f32 %v1958_v45, %v1698_v61 }
 0x41a   : > { %2536 = vmatmul.f32.gmra.mxu0 %v2403_v14  ;;  %2601 = vmatmul.f32.gmra.mxu1 %v2404_v41  ;;  %v1896_v14 = vadd.f32 %v7391_v0, %v5824_v38  ;;  %v7392_v41 = vld [vmem:[#allocation52_spill] sm:$0xff]  ;;  %v7401_v0 = vld [vmem:[#allocation53_spill] sm:$0xff] }
 0x41b   : > { %2666 = vmatmul.f32.gmra.mxu2 %v5763_v15  ;;  %2731 = vmatmul.f32.gmra.mxu3 %v5765_v26  ;;  %v2407_v26 = vmul.f32 %v1893_v6, %v1633_v1  ;;  %v1961_v37 = vadd.f32 %v7392_v41, %v5827_v48  ;;  %v1899_v41 = vadd.f32 %v7401_v0, %v5824_v38 }
 0x41e   : > { %v6073_v25 = vpop.f32.mrf.mxu2  ;;  %v6075_v13 = vpop.f32.mrf.mxu3 }
 0x41f   : > { %7388 = vst [vmem:[#allocation11_spill] sm:$0xff] %v6075_v13  ;;  %v6077_v43 = vpop.f32.mrf.mxu0  ;;  %v6079_v15 = vpop.f32.mrf.mxu1  ;;  %v7394_v13 = vld [vmem:[#allocation32_spill] sm:$0xff] }
 0x420   : > { %7389 = vst [vmem:[#allocation12_spill] sm:$0xff] %v6077_v43  ;;  %v1701_v50 = vadd.f32 %v7394_v13, %v5837_v9  ;;  %v7400_v13 = vld [vmem:[#allocation56_spill] sm:$0xff] }
 0x421   : > { %7390 = vst [vmem:[#allocation42_spill] sm:$0xff] %v6079_v15 }
 0x422   : > { %2539 = vmatmul.f32.gmra.mxu0 %v2407_v26  ;;  %2604 = vmatmul.f32.gmra.mxu1 %v2408_v23  ;;  %v2412_v1 = vmul.f32 %v1961_v37, %v1701_v50  ;;  %v2850_v26 = vld [vmem:[%s7270_s9 + $0x38] sm:$0xff]  ;;  %v7399_v23 = vld [vmem:[#allocation55_spill] sm:$0xff]  ;;  %v2992_v50 = vld [vmem:[%s7271_s10 + $0xe0] sm:$0xff] }
 0x423   : > { %2669 = vmatmul.f32.gmra.mxu2 %v5787_v44  ;;  %2734 = vmatmul.f32.gmra.mxu3 %v5789_v49  ;;  %v2411_v49 = vmul.f32 %v1896_v14, %v1636_v46  ;;  %v7403_v14 = vld [vmem:[#allocation33_spill] sm:$0xff]  ;;  %v7404_v46 = vld [vmem:[#allocation34_spill] sm:$0xff] }
 0x424   : > { %2907 = vmatpush.msrb.mxu0 %v2850_v26  ;;  %3004 = vmatpush.msrb.mxu1 %v2992_v50  ;;  %v1639_v37 = vadd.f32 %v7403_v14, %v5834_v8  ;;  %v7410_v50 = vld [vmem:[#allocation60_spill] sm:$0xff]  ;;  %v7411_v14 = vld [vmem:[#allocation57_spill] sm:$0xff] }
 0x425   : > { %v1902_v59 = vadd.f32 %v7411_v14, %v5824_v38  ;;  %v2849_v38 = vld [vmem:[%s7270_s9 + $0x30] sm:$0xff] }
 0x426   : > { %v6091_v6 = vpop.f32.mrf.mxu2  ;;  %v6093_v61 = vpop.f32.mrf.mxu3  ;;  %v2415_v0 = vmul.f32 %v1899_v41, %v1639_v37  ;;  %2908 = vmatpush.msrb.mxu0 %v2849_v38 }
 0x427   : > { %7395 = vst [vmem:[#allocation13_spill] sm:$0xff] %v6091_v6  ;;  %v6095_v45 = vpop.f32.mrf.mxu0  ;;  %v6097_v44 = vpop.f32.mrf.mxu1 }
 0x428   : > { %7396 = vst [vmem:[#allocation14_spill] sm:$0xff] %v6093_v61  ;;  %v1964_v61 = vadd.f32 %v7402_v24, %v5827_v48 }
 0x429   : > { %7397 = vst [vmem:[#allocation43_spill] sm:$0xff] %v6095_v45 }
 0x42a   : > { %7398 = vst [vmem:[#allocation15_spill] sm:$0xff] %v6097_v44  ;;  %2542 = vmatmul.f32.gmra.mxu0 %v2411_v49  ;;  %2607 = vmatmul.f32.gmra.mxu1 %v2412_v1  ;;  %v1704_v49 = vadd.f32 %v7404_v46, %v5837_v9  ;;  %v7412_v46 = vld [vmem:[#allocation58_spill] sm:$0xff] }
 0x42b   : > { %2672 = vmatmul.f32.gmra.mxu2 %v7399_v23  ;;  %2737 = vmatmul.f32.gmra.mxu3 %v7400_v13  ;;  %v1967_v29 = vadd.f32 %v7412_v46, %v5827_v48  ;;  %v2988_v48 = vld [vmem:[%s7271_s10 + $0xc0] sm:$0xff] }
 0x42c   : > { %v2416_v24 = vmul.f32 %v1964_v61, %v1704_v49  ;;  %3005 = vmatpush.msrb.mxu1 %v2988_v48  ;;  %v2984_v46 = vld [vmem:[%s7271_s10 + $0xa0] sm:$0xff] }
 0x42e   : > { %v6115_v1 = vpop.f32.mrf.mxu2  ;;  %v6117_v26 = vpop.f32.mrf.mxu3  ;;  %3006 = vmatpush.msrb.mxu1 %v2984_v46  ;;  %v2980_v46 = vld [vmem:[%s7271_s10 + $0x80] sm:$0xff] }
 0x42f   : > { %7405 = vst [vmem:[#allocation16_spill] sm:$0xff] %v6115_v1  ;;  %v6119_v23 = vpop.f32.mrf.mxu0  ;;  %v6121_v13 = vpop.f32.mrf.mxu1 }
 0x430   : > { %7406 = vst [vmem:[#allocation44_spill] sm:$0xff] %v6117_v26  ;;  %v7413_v26 = vld [vmem:[#allocation35_spill] sm:$0xff]  ;;  %3007 = vmatpush.msrb.mxu1 %v2980_v46  ;;  %v2976_v46 = vld [vmem:[%s7271_s10 + $0x60] sm:$0xff] }
 0x431   : > { %7407 = vst [vmem:[#allocation17_spill] sm:$0xff] %v6119_v23  ;;  %v1642_v21 = vadd.f32 %v7413_v26, %v5834_v8  ;;  %v7414_v23 = vld [vmem:[#allocation36_spill] sm:$0xff] }
 0x432   : > { %7408 = vst [vmem:[#allocation18_spill] sm:$0xff] %v6121_v13  ;;  %2545 = vmatmul.f32.gmra.mxu0 %v2415_v0  ;;  %2610 = vmatmul.f32.gmra.mxu1 %v2416_v24  ;;  %v1707_v13 = vadd.f32 %v7414_v23, %v5837_v9 }
 0x433   : > { %2675 = vmatmul.f32.gmra.mxu2 %v7409_v54  ;;  %2740 = vmatmul.f32.gmra.mxu3 %v7410_v50  ;;  %v2419_v49 = vmul.f32 %v1902_v59, %v1642_v21 }
 0x434   : > { %v2420_v0 = vmul.f32 %v1967_v29, %v1707_v13  ;;  %3008 = vmatpush.msrb.mxu1 %v2976_v46  ;;  %v2972_v46 = vld [vmem:[%s7271_s10 + $0x40] sm:$0xff] }
 0x436   : > { %v6133_v41 = vpop.f32.mrf.mxu2  ;;  %v6135_v61 = vpop.f32.mrf.mxu3  ;;  %3009 = vmatpush.msrb.mxu1 %v2972_v46  ;;  %v2968_v46 = vld [vmem:[%s7271_s10 + $0x20] sm:$0xff] }
 0x437   : > { %7415 = vst [vmem:[#allocation45_spill] sm:$0xff] %v6133_v41  ;;  %v6137_v37 = vpop.f32.mrf.mxu0  ;;  %v6139_v54 = vpop.f32.mrf.mxu1 }
 0x438   : > { %7416 = vst [vmem:[#allocation19_spill] sm:$0xff] %v6135_v61  ;;  %3010 = vmatpush.msrb.mxu1 %v2968_v46  ;;  %v2993_v46 = vld [vmem:[%s7271_s10 + $0xe8] sm:$0xff] }
 0x439   : > { %7417 = vst [vmem:[#allocation20_spill] sm:$0xff] %v6137_v37  ;;  %3069 = vmatpush.msrb.mxu2 %v2993_v46 }
 0x43a   : > { %7418 = vst [vmem:[#allocation46_spill] sm:$0xff] %v6139_v54  ;;  %2548 = vmatmul.f32.gmra.mxu0 %v2419_v49  ;;  %2613 = vmatmul.f32.gmra.mxu1 %v2420_v0 }
 0x43b   : > { %2678 = vmatmul.f32.gmra.mxu2 %v5861_v31  ;;  %2743 = vmatmul.f32.gmra.mxu3 %v5863_v56  ;;  %v2848_v31 = vld [vmem:[%s7270_s9 + $0x28] sm:$0xff] }
 0x43c   : > { %2909 = vmatpush.msrb.mxu0 %v2848_v31 }
 0x43e   : > { %v6149_v8 = vpop.f32.mrf.mxu2  ;;  %v6151_v9 = vpop.f32.mrf.mxu3 }
 0x43f   : > { %7419 = vst [vmem:[#allocation21_spill] sm:$0xff] %v6149_v8  ;;  %v2504_v21 = vpop.f32.mrf.mxu0  ;;  %v2569_v29 = vpop.f32.mrf.mxu1 }
 0x440   : > { %7420 = vst [vmem:[#allocation22_spill] sm:$0xff] %v6151_v9  ;;  %v2570_v59 = vadd.f32 %v2569_v29, %v2504_v21 }
 0x446   : > { %v2634_v26 = vpop.f32.mrf.mxu2  ;;  %v2699_v23 = vpop.f32.mrf.mxu3 }
 0x447   : > { %v2635_v13 = vadd.f32 %v2634_v26, %v2570_v59  ;;  %v2507_v24 = vpop.f32.mrf.mxu0  ;;  %v2572_v50 = vpop.f32.mrf.mxu1 }
 0x448   : > { %v2573_v49 = vadd.f32 %v2572_v50, %v2507_v24  ;;  %v2847_v24 = vld [vmem:[%s7270_s9 + $0x20] sm:$0xff] }
 0x449   : > { %v6156_v56 = vadd.f32 %v2699_v23, %v2635_v13  ;;  %2910 = vmatpush.msrb.mxu0 %v2847_v24 }
 0x44b   : > { %v2747_v14 = vsel %vm543_vm0, %v6156_v56, -inf }
 0x44c   : > { %2748 = vmax.xlane.f32.xlu0 %v2747_v14 }
 0x44e   : > { %v2637_v0 = vpop.f32.mrf.mxu2  ;;  %v2702_v38 = vpop.f32.mrf.mxu3 }
 0x44f   : > { %v2638_v48 = vadd.f32 %v2637_v0, %v2573_v49  ;;  %v2510_v21 = vpop.f32.mrf.mxu0  ;;  %v2575_v29 = vpop.f32.mrf.mxu1 }
 0x450   : > { %v2576_v23 = vadd.f32 %v2575_v29, %v2510_v21 }
 0x451   : > { %v6163_v59 = vadd.f32 %v2702_v38, %v2638_v48 }
 0x453   : > { %v2750_v26 = vsel %vm543_vm0, %v6163_v59, -inf }
 0x454   : > { %2751 = vmax.xlane.f32.xlu0 %v2750_v26 }
 0x456   : > { %v2640_v13 = vpop.f32.mrf.mxu2  ;;  %v2705_v31 = vpop.f32.mrf.mxu3 }
 0x457   : > { %v2641_v14 = vadd.f32 %v2640_v13, %v2576_v23  ;;  %v2513_v9 = vpop.f32.mrf.mxu0  ;;  %v2578_v61 = vpop.f32.mrf.mxu1 }
 0x458   : > { %v2579_v49 = vadd.f32 %v2578_v61, %v2513_v9  ;;  %v2846_v61 = vld [vmem:[%s7270_s9 + $0x18] sm:$0xff] }
 0x459   : > { %v6167_v8 = vadd.f32 %v2705_v31, %v2641_v14  ;;  %2911 = vmatpush.msrb.mxu0 %v2846_v61 }
 0x45b   : > { %v2753_v50 = vsel %vm543_vm0, %v6167_v8, -inf }
 0x45c   : > { %2754 = vmax.xlane.f32.xlu1 %v2753_v50 }
 0x45e   : > { %v2643_v0 = vpop.f32.mrf.mxu2  ;;  %v2708_v38 = vpop.f32.mrf.mxu3 }
 0x45f   : > { %v2644_v48 = vadd.f32 %v2643_v0, %v2579_v49  ;;  %v2516_v21 = vpop.f32.mrf.mxu0  ;;  %v2581_v29 = vpop.f32.mrf.mxu1 }
 0x460   : > { %v2582_v13 = vadd.f32 %v2581_v29, %v2516_v21 }
 0x461   : > { %v6177_v26 = vadd.f32 %v2708_v38, %v2644_v48 }
 0x463   : > { %v2756_v23 = vsel %vm543_vm0, %v6177_v26, -inf }
 0x464   : > { %2757 = vmax.xlane.f32.xlu1 %v2756_v23 }
 0x466   : > { %v2646_v31 = vpop.f32.mrf.mxu2  ;;  %v2711_v14 = vpop.f32.mrf.mxu3 }
 0x467   : > { %v2647_v24 = vadd.f32 %v2646_v31, %v2582_v13  ;;  %v2519_v50 = vpop.f32.mrf.mxu0  ;;  %v2584_v54 = vpop.f32.mrf.mxu1 }
 0x468   : > { %v2585_v49 = vadd.f32 %v2584_v54, %v2519_v50  ;;  %v2845_v54 = vld [vmem:[%s7270_s9 + $0x10] sm:$0xff] }
 0x469   : > { %v6181_v37 = vadd.f32 %v2711_v14, %v2647_v24  ;;  %2912 = vmatpush.msrb.mxu0 %v2845_v54 }
 0x46b   : > { %v2759_v9 = vsel %vm543_vm0, %v6181_v37, -inf }
 0x46c   : > { %2760 = vmax.xlane.f32.xlu2 %v2759_v9 }
 0x46e   : > { %v2649_v0 = vpop.f32.mrf.mxu2  ;;  %v2714_v38 = vpop.f32.mrf.mxu3 }
 0x46f   : > { %v2650_v48 = vadd.f32 %v2649_v0, %v2585_v49  ;;  %v2522_v21 = vpop.f32.mrf.mxu0  ;;  %v2587_v29 = vpop.f32.mrf.mxu1 }
 0x470   : > { %v2588_v31 = vadd.f32 %v2587_v29, %v2522_v21 }
 0x471   : > { %v6191_v23 = vadd.f32 %v2714_v38, %v2650_v48 }
 0x473   : > { %v2762_v13 = vsel %vm543_vm0, %v6191_v23, -inf }
 0x474   : > { %2763 = vmax.xlane.f32.xlu2 %v2762_v13 }
 0x476   : > { %v2652_v14 = vpop.f32.mrf.mxu2  ;;  %v2717_v24 = vpop.f32.mrf.mxu3 }
 0x477   : > { %v2653_v61 = vadd.f32 %v2652_v14, %v2588_v31  ;;  %v2525_v9 = vpop.f32.mrf.mxu0  ;;  %v2590_v41 = vpop.f32.mrf.mxu1 }
 0x478   : > { %v2591_v49 = vadd.f32 %v2590_v41, %v2525_v9  ;;  %v2844_v41 = vld [vmem:[%s7270_s9 + $0x8] sm:$0xff] }
 0x479   : > { %v6195_v1 = vadd.f32 %v2717_v24, %v2653_v61  ;;  %2913 = vmatpush.msrb.mxu0 %v2844_v41 }
 0x47b   : > { %v2765_v50 = vsel %vm543_vm0, %v6195_v1, -inf }
 0x47c   : > { %2766 = vmax.xlane.f32.xlu0 %v2765_v50 }
 0x47e   : > { %v2655_v0 = vpop.f32.mrf.mxu2  ;;  %v2720_v38 = vpop.f32.mrf.mxu3 }
 0x47f   : > { %v2656_v48 = vadd.f32 %v2655_v0, %v2591_v49  ;;  %v2528_v21 = vpop.f32.mrf.mxu0  ;;  %v2593_v29 = vpop.f32.mrf.mxu1 }
 0x480   : > { %v2594_v14 = vadd.f32 %v2593_v29, %v2528_v21 }
 0x481   : > { %v6205_v13 = vadd.f32 %v2720_v38, %v2656_v48 }
 0x483   : > { %v2768_v31 = vsel %vm543_vm0, %v6205_v13, -inf }
 0x484   : > { %2769 = vmax.xlane.f32.xlu1 %v2768_v31 }
 0x486   : > { %v2658_v24 = vpop.f32.mrf.mxu2  ;;  %v2723_v61 = vpop.f32.mrf.mxu3 }
 0x487   : > { %v2659_v54 = vadd.f32 %v2658_v24, %v2594_v14  ;;  %v2531_v50 = vpop.f32.mrf.mxu0  ;;  %v2596_v44 = vpop.f32.mrf.mxu1 }
 0x488   : > { %v2597_v49 = vadd.f32 %v2596_v44, %v2531_v50  ;;  %v2994_v44 = vld [vmem:[%s7271_s10 + $0xf0] sm:$0xff]  ;;  %v2843_v50 = vld [vmem:[%s7270_s9] sm:$0xff] }
 0x489   : > { %v6209_v45 = vadd.f32 %v2723_v61, %v2659_v54  ;;  %3134 = vmatpush.msra.mxu3 %v2994_v44  ;;  %2914 = vmatpush.msrb.mxu0 %v2843_v50  ;;  %v2981_v44 = vld [vmem:[%s7271_s10 + $0x88] sm:$0xff]  ;;  %v2982_v50 = vld [vmem:[%s7271_s10 + $0x90] sm:$0xff] }
 0x48b   : > { %v2771_v9 = vsel %vm543_vm0, %v6209_v45, -inf }
 0x48c   : > { %2772 = vmax.xlane.f32.xlu2 %v2771_v9 }
 0x48e   : > { %v2661_v0 = vpop.f32.mrf.mxu2  ;;  %v2726_v38 = vpop.f32.mrf.mxu3 }
 0x48f   : > { %v2662_v48 = vadd.f32 %v2661_v0, %v2597_v49  ;;  %v2534_v21 = vpop.f32.mrf.mxu0  ;;  %v2599_v29 = vpop.f32.mrf.mxu1  ;;  %v2964_v0 = vld [vmem:[%s7271_s10] sm:$0xff] }
 0x490   : > { %v2600_v24 = vadd.f32 %v2599_v29, %v2534_v21  ;;  %3011 = vmatpush.msrb.mxu1 %v2964_v0  ;;  %v2990_v21 = vld [vmem:[%s7271_s10 + $0xd0] sm:$0xff] }
 0x491   : > { %v6219_v31 = vadd.f32 %v2726_v38, %v2662_v48  ;;  %v2989_v48 = vld [vmem:[%s7271_s10 + $0xc8] sm:$0xff]  ;;  %3135 = vmatpush.msra.mxu3 %v2990_v21  ;;  %v2978_v0 = vld [vmem:[%s7271_s10 + $0x70] sm:$0xff] }
 0x492   : > { %3070 = vmatpush.msrb.mxu2 %v2989_v48  ;;  %v2974_v48 = vld [vmem:[%s7271_s10 + $0x50] sm:$0xff] }
 0x493   : > { %v2774_v14 = vsel %vm543_vm0, %v6219_v31, -inf }
 0x494   : > { %2775 = vmax.xlane.f32.xlu0 %v2774_v14 }
 0x496   : > { %v2664_v61 = vpop.f32.mrf.mxu2  ;;  %v2729_v54 = vpop.f32.mrf.mxu3 }
 0x497   : > { %v2665_v41 = vadd.f32 %v2664_v61, %v2600_v24  ;;  %v2537_v9 = vpop.f32.mrf.mxu0  ;;  %v2602_v6 = vpop.f32.mrf.mxu1 }
 0x498   : > { %v2603_v38 = vadd.f32 %v2602_v6, %v2537_v9  ;;  %v2985_v6 = vld [vmem:[%s7271_s10 + $0xa8] sm:$0xff] }
 0x499   : > { %v6223_v15 = vadd.f32 %v2729_v54, %v2665_v41  ;;  %v2986_v41 = vld [vmem:[%s7271_s10 + $0xb0] sm:$0xff]  ;;  %3071 = vmatpush.msrb.mxu2 %v2985_v6 }
 0x49a   : > { %3136 = vmatpush.msra.mxu3 %v2986_v41 }
 0x49b   : > { %v2777_v49 = vsel %vm543_vm0, %v6223_v15, -inf  ;;  %3072 = vmatpush.msrb.mxu2 %v2981_v44  ;;  %v2969_v44 = vld [vmem:[%s7271_s10 + $0x28] sm:$0xff] }
 0x49c   : > { %2778 = vmax.xlane.f32.xlu1 %v2777_v49  ;;  %3137 = vmatpush.msra.mxu3 %v2982_v50  ;;  %v2977_v49 = vld [vmem:[%s7271_s10 + $0x68] sm:$0xff]  ;;  %v2970_v50 = vld [vmem:[%s7271_s10 + $0x30] sm:$0xff] }
 0x49d   : > { %3073 = vmatpush.msrb.mxu2 %v2977_v49 }
 0x49e   : > { %v2667_v29 = vpop.f32.mrf.mxu2  ;;  %v2732_v14 = vpop.f32.mrf.mxu3  ;;  %3138 = vmatpush.msra.mxu3 %v2978_v0  ;;  %v2995_v0 = vld [vmem:[%s7271_s10 + $0xf8] sm:$0xff] }
 0x49f   : > { %v2668_v24 = vadd.f32 %v2667_v29, %v2603_v38  ;;  %v2540_v61 = vpop.f32.mrf.mxu0  ;;  %v2605_v54 = vpop.f32.mrf.mxu1  ;;  %v2973_v38 = vld [vmem:[%s7271_s10 + $0x48] sm:$0xff]  ;;  %3199 = vmatpush.msra.mxu0 %v2995_v0 }
 0x4a0   : > { %v2606_v21 = vadd.f32 %v2605_v54, %v2540_v61  ;;  %3074 = vmatpush.msrb.mxu2 %v2973_v38  ;;  %3139 = vmatpush.msra.mxu3 %v2974_v48  ;;  %v2965_v61 = vld [vmem:[%s7271_s10 + $0x8] sm:$0xff]  ;;  %v2966_v54 = vld [vmem:[%s7271_s10 + $0x10] sm:$0xff]  ;;  %v3335_v38 = vld [vmem:[%s7272_s11 + $0x78] sm:$0xff] }
 0x4a1   : > { %v6251_v9 = vadd.f32 %v2732_v14, %v2668_v24  ;;  %3384 = vmatpush.msra.mxu1 %v3335_v38 }
 0x4a2   : > { %3075 = vmatpush.msrb.mxu2 %v2969_v44  ;;  %3140 = vmatpush.msra.mxu3 %v2970_v50 }
 0x4a3   : > { %v2780_v46 = vsel %vm543_vm0, %v6251_v9, -inf }
 0x4a4   : > { %2781 = vmax.xlane.f32.xlu2 %v2780_v46  ;;  %3076 = vmatpush.msrb.mxu2 %v2965_v61 }
 0x4a5   : > { %3141 = vmatpush.msra.mxu3 %v2966_v54  ;;  %v3334_v54 = vld [vmem:[%s7272_s11 + $0x70] sm:$0xff] }
 0x4a6   : > { %v2670_v29 = vpop.f32.mrf.mxu2  ;;  %v2735_v14 = vpop.f32.mrf.mxu3  ;;  %3385 = vmatpush.msra.mxu1 %v3334_v54 }
 0x4a7   : > { %v2671_v24 = vadd.f32 %v2670_v29, %v2606_v21  ;;  %v2543_v6 = vpop.f32.mrf.mxu0  ;;  %v2608_v41 = vpop.f32.mrf.mxu1 }
 0x4a8   : > { %v2609_v48 = vadd.f32 %v2608_v41, %v2543_v6 }
 0x4a9   : > { %v6279_v46 = vadd.f32 %v2735_v14, %v2671_v24 }
 0x4ab   : > { %v2783_v49 = vsel %vm543_vm0, %v6279_v46, -inf }
 0x4ac   : > { %2784 = vmax.xlane.f32.xlu0 %v2783_v49 }
 0x4ae   : > { %v2673_v21 = vpop.f32.mrf.mxu2  ;;  %v2738_v29 = vpop.f32.mrf.mxu3 }
 0x4af   : > { %v2674_v14 = vadd.f32 %v2673_v21, %v2609_v48  ;;  %v2546_v24 = vpop.f32.mrf.mxu0  ;;  %v2611_v44 = vpop.f32.mrf.mxu1 }
 0x4b0   : > { %v2612_v49 = vadd.f32 %v2611_v44, %v2546_v24  ;;  %v3333_v24 = vld [vmem:[%s7272_s11 + $0x68] sm:$0xff] }
 0x4b1   : > { %v6295_v50 = vadd.f32 %v2738_v29, %v2674_v14  ;;  %v2991_v14 = vld [vmem:[%s7271_s10 + $0xd8] sm:$0xff]  ;;  %3386 = vmatpush.msra.mxu1 %v3333_v24 }
 0x4b2   : > { %3200 = vmatpush.msra.mxu0 %v2991_v14 }
 0x4b3   : > { %v2786_v61 = vsel %vm543_vm0, %v6295_v50, -inf }
 0x4b4   : > { %2787 = vmax.xlane.f32.xlu1 %v2786_v61 }
 0x4b6   : > { %v2676_v6 = vpop.f32.mrf.mxu2  ;;  %v2741_v41 = vpop.f32.mrf.mxu3 }
 0x4b7   : > { %v2677_v0 = vadd.f32 %v2676_v6, %v2612_v49  ;;  %v2549_v48 = vpop.f32.mrf.mxu0  ;;  %v2614_v21 = vpop.f32.mrf.mxu1 }
 0x4b8   : > { %v2615_v44 = vadd.f32 %v2614_v21, %v2549_v48  ;;  %v3332_v48 = vld [vmem:[%s7272_s11 + $0x60] sm:$0xff] }
 0x4b9   : > { %v6302_v38 = vadd.f32 %v2741_v41, %v2677_v0  ;;  %3387 = vmatpush.msra.mxu1 %v3332_v48 }
 0x4bb   : > { %v2789_v29 = vsel %vm543_vm0, %v6302_v38, -inf }
 0x4bc   : > { %2790 = vmax.xlane.f32.xlu2 %v2789_v29 }
 0x4be   : > { %v2679_v61 = vpop.f32.mrf.mxu2  ;;  %v2744_v6 = vpop.f32.mrf.mxu3 }
 0x4bf   : > { %v2680_v54 = vadd.f32 %v2679_v61, %v2615_v44  ;;  %v2749_v49 = vpop.xlane.xlu0 %2748 }
 0x4c0   : > { %v2795_v41 = vsub.f32 %v6156_v56, %v2749_v49  ;;  %v3331_v56 = vld [vmem:[%s7272_s11 + $0x58] sm:$0xff] }
 0x4c1   : > { %v6313_v0 = vadd.f32 %v2744_v6, %v2680_v54  ;;  %3388 = vmatpush.msra.mxu1 %v3331_v56 }
 0x4c2   : > { %v2811_v29 = vmul.f32 1.442695, %v2795_v41 }
 0x4c3   : > { %v2792_v43 = vsel %vm543_vm0, %v6313_v0, -inf }
 0x4c4   : > { %4403 = vpow2.f32 %v2811_v29  ;;  %2793 = vmax.xlane.f32.xlu0 %v2792_v43  ;;  %v2987_v43 = vld [vmem:[%s7271_s10 + $0xb8] sm:$0xff] }
 0x4c5   : > { %3201 = vmatpush.msra.mxu0 %v2987_v43 }
 0x4c7   : > { %v2752_v21 = vpop.xlane.xlu0 %2751 }
 0x4c8   : > { %v2796_v14 = vsub.f32 %v6163_v59, %v2752_v21  ;;  %v3329_v21 = vld [vmem:[%s7272_s11 + $0x48] sm:$0xff] }
 0x4ca   : > { %v6321_v24 = vpop.eup %4403  ;;  %v2813_v44 = vmul.f32 1.442695, %v2796_v14 }
 0x4cb   : > { %4247 = vmatmul.msk.f32.vlgmr.msrb.gmra.mxu0 %vm543_vm0, %v6321_v24  ;;  %4263 = vmatmul.msk.f32.vlgmr.msrb.gmra.mxu1 %vm543_vm0, %v6321_v24 }
 0x4cc   : > { %4405 = vpow2.f32 %v2813_v44  ;;  %4279 = vmatmul.msk.f32.vlgmr.msrb.gmra.mxu2 %vm543_vm0, %v6321_v24  ;;  %4295 = vmatmul.msk.f32.vlgmr.msra.gmra.mxu3 %vm543_vm0, %v6321_v24 }
 0x4cf   : > { %v2755_v59 = vpop.xlane.xlu1 %2754 }
 0x4d0   : > { %v2797_v61 = vsub.f32 %v6167_v8, %v2755_v59  ;;  %v3330_v8 = vld [vmem:[%s7272_s11 + $0x50] sm:$0xff] }
 0x4d1   : > { %3389 = vmatpush.msra.mxu1 %v3330_v8 }
 0x4d2   : > { %v6338_v54 = vpop.eup %4405  ;;  %v2815_v49 = vmul.f32 1.442695, %v2797_v61 }
 0x4d3   : > { %4248 = vmatmul.msk.f32.gmra.mxu0 %vm543_vm0, %v6338_v54  ;;  %4264 = vmatmul.msk.f32.gmra.mxu1 %vm543_vm0, %v6338_v54 }
 0x4d4   : > { %4407 = vpow2.f32 %v2815_v49  ;;  %4280 = vmatmul.msk.f32.gmra.mxu2 %vm543_vm0, %v6338_v54  ;;  %4296 = vmatmul.msk.f32.gmra.mxu3 %vm543_vm0, %v6338_v54 }
 0x4d5   : > { %3390 = vmatpush.msra.mxu1 %v3329_v21 }
 0x4d7   : > { %v2758_v6 = vpop.xlane.xlu1 %2757 }
 0x4d8   : > { %v2798_v41 = vsub.f32 %v6177_v26, %v2758_v6  ;;  %v2983_v26 = vld [vmem:[%s7271_s10 + $0x98] sm:$0xff] }
 0x4d9   : > { %3202 = vmatpush.msra.mxu0 %v2983_v26  ;;  %v3327_v6 = vld [vmem:[%s7272_s11 + $0x38] sm:$0xff] }
 0x4da   : > { %v6352_v29 = vpop.eup %4407  ;;  %v2817_v48 = vmul.f32 1.442695, %v2798_v41 }
 0x4db   : > { %4249 = vmatmul.msk.f32.gmra.mxu0 %vm543_vm0, %v6352_v29  ;;  %4265 = vmatmul.msk.f32.gmra.mxu1 %vm543_vm0, %v6352_v29 }
 0x4dc   : > { %4409 = vpow2.f32 %v2817_v48  ;;  %4281 = vmatmul.msk.f32.gmra.mxu2 %vm543_vm0, %v6352_v29  ;;  %4297 = vmatmul.msk.f32.gmra.mxu3 %vm543_vm0, %v6352_v29 }
 0x4df   : > { %v2761_v14 = vpop.xlane.xlu2 %2760 }
 0x4e0   : > { %v2799_v44 = vsub.f32 %v6181_v37, %v2761_v14  ;;  %v3328_v37 = vld [vmem:[%s7272_s11 + $0x40] sm:$0xff] }
 0x4e1   : > { %3391 = vmatpush.msra.mxu1 %v3328_v37 }
 0x4e2   : > { %v6369_v43 = vpop.eup %4409  ;;  %v2819_v56 = vmul.f32 1.442695, %v2799_v44 }
 0x4e3   : > { %4250 = vmatmul.msk.f32.gmra.mxu0 %vm543_vm0, %v6369_v43  ;;  %4266 = vmatmul.msk.f32.gmra.mxu1 %vm543_vm0, %v6369_v43 }
 0x4e4   : > { %4411 = vpow2.f32 %v2819_v56  ;;  %4282 = vmatmul.msk.f32.gmra.mxu2 %vm543_vm0, %v6369_v43  ;;  %4298 = vmatmul.msk.f32.gmra.mxu3 %vm543_vm0, %v6369_v43 }
 0x4e5   : > { %3392 = vmatpush.msra.mxu1 %v3327_v6 }
 0x4e7   : > { %v2764_v59 = vpop.xlane.xlu2 %2763 }
 0x4e8   : > { %v2800_v61 = vsub.f32 %v6191_v23, %v2764_v59  ;;  %v2979_v23 = vld [vmem:[%s7271_s10 + $0x78] sm:$0xff]  ;;  %v3325_v59 = vld [vmem:[%s7272_s11 + $0x28] sm:$0xff] }
 0x4e9   : > { %3203 = vmatpush.msra.mxu0 %v2979_v23 }
 0x4ea   : > { %v6383_v49 = vpop.eup %4411  ;;  %v2821_v8 = vmul.f32 1.442695, %v2800_v61 }
 0x4eb   : > { %4251 = vmatmul.msk.f32.gmra.mxu0 %vm543_vm0, %v6383_v49  ;;  %4267 = vmatmul.msk.f32.gmra.mxu1 %vm543_vm0, %v6383_v49 }
 0x4ec   : > { %4413 = vpow2.f32 %v2821_v8  ;;  %4283 = vmatmul.msk.f32.gmra.mxu2 %vm543_vm0, %v6383_v49  ;;  %4299 = vmatmul.msk.f32.gmra.mxu3 %vm543_vm0, %v6383_v49 }
 0x4ef   : > { %v2767_v41 = vpop.xlane.xlu0 %2766 }
 0x4f0   : > { %v2801_v48 = vsub.f32 %v6195_v1, %v2767_v41  ;;  %v3326_v1 = vld [vmem:[%s7272_s11 + $0x30] sm:$0xff] }
 0x4f1   : > { %3393 = vmatpush.msra.mxu1 %v3326_v1 }
 0x4f2   : > { %v6400_v26 = vpop.eup %4413  ;;  %v2823_v21 = vmul.f32 1.442695, %v2801_v48 }
 0x4f3   : > { %4252 = vmatmul.msk.f32.gmra.mxu0 %vm543_vm0, %v6400_v26  ;;  %4268 = vmatmul.msk.f32.gmra.mxu1 %vm543_vm0, %v6400_v26 }
 0x4f4   : > { %4415 = vpow2.f32 %v2823_v21  ;;  %4284 = vmatmul.msk.f32.gmra.mxu2 %vm543_vm0, %v6400_v26  ;;  %4300 = vmatmul.msk.f32.gmra.mxu3 %vm543_vm0, %v6400_v26 }
 0x4f5   : > { %3394 = vmatpush.msra.mxu1 %v3325_v59 }
 0x4f7   : > { %v2770_v14 = vpop.xlane.xlu1 %2769 }
 0x4f8   : > { %v2802_v44 = vsub.f32 %v6205_v13, %v2770_v14  ;;  %v2975_v13 = vld [vmem:[%s7271_s10 + $0x58] sm:$0xff] }
 0x4f9   : > { %3204 = vmatpush.msra.mxu0 %v2975_v13  ;;  %v3323_v14 = vld [vmem:[%s7272_s11 + $0x18] sm:$0xff] }
 0x4fa   : > { %v6414_v56 = vpop.eup %4415  ;;  %v2825_v37 = vmul.f32 1.442695, %v2802_v44 }
 0x4fb   : > { %4253 = vmatmul.msk.f32.gmra.mxu0 %vm543_vm0, %v6414_v56  ;;  %4269 = vmatmul.msk.f32.gmra.mxu1 %vm543_vm0, %v6414_v56 }
 0x4fc   : > { %4417 = vpow2.f32 %v2825_v37  ;;  %4285 = vmatmul.msk.f32.gmra.mxu2 %vm543_vm0, %v6414_v56  ;;  %4301 = vmatmul.msk.f32.gmra.mxu3 %vm543_vm0, %v6414_v56 }
 0x4ff   : > { %v2773_v61 = vpop.xlane.xlu2 %2772 }
 0x500   : > { %v2803_v8 = vsub.f32 %v6209_v45, %v2773_v61  ;;  %v3324_v45 = vld [vmem:[%s7272_s11 + $0x20] sm:$0xff]  ;;  %v3351_v61 = vld [vmem:[%s7272_s11 + $0xf8] sm:$0xff] }
 0x501   : > { %3395 = vmatpush.msra.mxu1 %v3324_v45  ;;  %v3322_v45 = vld [vmem:[%s7272_s11 + $0x10] sm:$0xff]  ;;  %3449 = vmatpush.msra.mxu2 %v3351_v61  ;;  %v3363_v61 = vld [vmem:[%s7272_s11 + $0x158] sm:$0xff] }
 0x502   : > { %v6431_v23 = vpop.eup %4417  ;;  %v2827_v6 = vmul.f32 1.442695, %v2803_v8  ;;  %v3367_v8 = vld [vmem:[%s7272_s11 + $0x178] sm:$0xff] }
 0x503   : > { %4254 = vmatmul.msk.f32.gmra.mxu0 %vm543_vm0, %v6431_v23  ;;  %4270 = vmatmul.msk.f32.gmra.mxu1 %vm543_vm0, %v6431_v23 }
 0x504   : > { %4419 = vpow2.f32 %v2827_v6  ;;  %4286 = vmatmul.msk.f32.gmra.mxu2 %vm543_vm0, %v6431_v23  ;;  %4302 = vmatmul.msk.f32.gmra.mxu3 %vm543_vm0, %v6431_v23  ;;  %v3366_v6 = vld [vmem:[%s7272_s11 + $0x170] sm:$0xff] }
 0x505   : > { %3396 = vmatpush.msra.mxu1 %v3323_v14  ;;  %3514 = vmatpush.msrb.mxu3 %v3367_v8  ;;  %v2967_v8 = vld [vmem:[%s7271_s10 + $0x18] sm:$0xff] }
 0x507   : > { %v2776_v41 = vpop.xlane.xlu0 %2775  ;;  %3397 = vmatpush.msra.mxu1 %v3322_v45  ;;  %3515 = vmatpush.msrb.mxu3 %v3366_v6  ;;  %v3346_v6 = vld [vmem:[%s7272_s11 + $0xd0] sm:$0xff] }
 0x508   : > { %v2804_v48 = vsub.f32 %v6219_v31, %v2776_v41  ;;  %v2971_v31 = vld [vmem:[%s7271_s10 + $0x38] sm:$0xff]  ;;  %v3349_v41 = vld [vmem:[%s7272_s11 + $0xe8] sm:$0xff]  ;;  %v3362_v45 = vld [vmem:[%s7272_s11 + $0x150] sm:$0xff] }
 0x509   : > { %3205 = vmatpush.msra.mxu0 %v2971_v31 }
 0x50a   : > { %v6445_v21 = vpop.eup %4419  ;;  %v2829_v1 = vmul.f32 1.442695, %v2804_v48  ;;  %v3365_v48 = vld [vmem:[%s7272_s11 + $0x168] sm:$0xff] }
 0x50b   : > { %4255 = vmatmul.msk.f32.gmra.mxu0 %vm543_vm0, %v6445_v21  ;;  %4271 = vmatmul.msk.f32.gmra.mxu1 %vm543_vm0, %v6445_v21 }
 0x50c   : > { %4421 = vpow2.f32 %v2829_v1  ;;  %4287 = vmatmul.msk.f32.gmra.mxu2 %vm543_vm0, %v6445_v21  ;;  %4303 = vmatmul.msk.f32.gmra.mxu3 %vm543_vm0, %v6445_v21 }
 0x50d   : > { %3516 = vmatpush.msrb.mxu3 %v3365_v48  ;;  %3206 = vmatpush.msra.mxu0 %v2967_v8  ;;  %v3359_v8 = vld [vmem:[%s7272_s11 + $0x138] sm:$0xff] }
 0x50f   : > { %v2779_v44 = vpop.xlane.xlu1 %2778 }
 0x510   : > { %v2805_v37 = vsub.f32 %v6223_v15, %v2779_v44  ;;  %v3350_v15 = vld [vmem:[%s7272_s11 + $0xf0] sm:$0xff] }
 0x511   : > { %3450 = vmatpush.msra.mxu2 %v3350_v15  ;;  %v3321_v15 = vld [vmem:[%s7272_s11 + $0x8] sm:$0xff] }
 0x512   : > { %v6462_v13 = vpop.eup %4421  ;;  %v2831_v59 = vmul.f32 1.442695, %v2805_v37  ;;  %v3348_v37 = vld [vmem:[%s7272_s11 + $0xe0] sm:$0xff]  ;;  %3398 = vmatpush.msra.mxu1 %v3321_v15 }
 0x513   : > { %4256 = vmatmul.msk.f32.gmra.mxu0 %vm543_vm0, %v6462_v13  ;;  %4272 = vmatmul.msk.f32.gmra.mxu1 %vm543_vm0, %v6462_v13 }
 0x514   : > { %4423 = vpow2.f32 %v2831_v59  ;;  %4288 = vmatmul.msk.f32.gmra.mxu2 %vm543_vm0, %v6462_v13  ;;  %4304 = vmatmul.msk.f32.gmra.mxu3 %vm543_vm0, %v6462_v13  ;;  %v3364_v59 = vld [vmem:[%s7272_s11 + $0x160] sm:$0xff] }
 0x515   : > { %3451 = vmatpush.msra.mxu2 %v3349_v41  ;;  %3517 = vmatpush.msrb.mxu3 %v3364_v59  ;;  %v3360_v59 = vld [vmem:[%s7272_s11 + $0x140] sm:$0xff] }
 0x517   : > { %v2782_v1 = vpop.xlane.xlu2 %2781  ;;  %3452 = vmatpush.msra.mxu2 %v3348_v37  ;;  %3518 = vmatpush.msrb.mxu3 %v3363_v61  ;;  %v3361_v37 = vld [vmem:[%s7272_s11 + $0x148] sm:$0xff]  ;;  %v3343_v61 = vld [vmem:[%s7272_s11 + $0xb8] sm:$0xff] }
 0x518   : > { %v2806_v31 = vsub.f32 %v6251_v9, %v2782_v1  ;;  %v3347_v9 = vld [vmem:[%s7272_s11 + $0xd8] sm:$0xff] }
 0x519   : > { %3453 = vmatpush.msra.mxu2 %v3347_v9  ;;  %3519 = vmatpush.msrb.mxu3 %v3362_v45  ;;  %v3320_v9 = vld [vmem:[%s7272_s11] sm:$0xff] }
 0x51a   : > { %v6494_v14 = vpop.eup %4423  ;;  %v2833_v44 = vmul.f32 1.442695, %v2806_v31  ;;  %3399 = vmatpush.msra.mxu1 %v3320_v9 }
 0x51b   : > { %4257 = vmatmul.msk.f32.gmra.mxu0 %vm543_vm0, %v6494_v14  ;;  %4273 = vmatmul.msk.f32.gmra.mxu1 %vm543_vm0, %v6494_v14 }
 0x51c   : > { %4425 = vpow2.f32 %v2833_v44  ;;  %4289 = vmatmul.msk.f32.gmra.mxu2 %vm543_vm0, %v6494_v14  ;;  %4305 = vmatmul.msk.f32.gmra.mxu3 %vm543_vm0, %v6494_v14  ;;  %v3345_v44 = vld [vmem:[%s7272_s11 + $0xc8] sm:$0xff] }
 0x51d   : > { %3454 = vmatpush.msra.mxu2 %v3346_v6  ;;  %3520 = vmatpush.msrb.mxu3 %v3361_v37  ;;  %v3340_v37 = vld [vmem:[%s7272_s11 + $0xa0] sm:$0xff] }
 0x51f   : > { %v2785_v41 = vpop.xlane.xlu0 %2784  ;;  %3455 = vmatpush.msra.mxu2 %v3345_v44  ;;  %3521 = vmatpush.msrb.mxu3 %v3360_v59  ;;  %v3357_v44 = vld [vmem:[%s7272_s11 + $0x128] sm:$0xff] }
 0x520   : > { %v2807_v48 = vsub.f32 %v6279_v46, %v2785_v41  ;;  %v3344_v46 = vld [vmem:[%s7272_s11 + $0xc0] sm:$0xff] }
 0x521   : > { %3456 = vmatpush.msra.mxu2 %v3344_v46  ;;  %3522 = vmatpush.msrb.mxu3 %v3359_v8  ;;  %v3356_v46 = vld [vmem:[%s7272_s11 + $0x120] sm:$0xff] }
 0x522   : > { %v6529_v1 = vpop.eup %4425  ;;  %v2835_v31 = vmul.f32 1.442695, %v2807_v48  ;;  %v3342_v48 = vld [vmem:[%s7272_s11 + $0xb0] sm:$0xff] }
 0x523   : > { %4258 = vmatmul.msk.f32.gmra.mxu0 %vm543_vm0, %v6529_v1  ;;  %4274 = vmatmul.msk.f32.gmra.mxu1 %vm543_vm0, %v6529_v1 }
 0x524   : > { %4427 = vpow2.f32 %v2835_v31  ;;  %4290 = vmatmul.msk.f32.gmra.mxu2 %vm543_vm0, %v6529_v1  ;;  %4306 = vmatmul.msk.f32.gmra.mxu3 %vm543_vm0, %v6529_v1  ;;  %v3358_v31 = vld [vmem:[%s7272_s11 + $0x130] sm:$0xff] }
 0x525   : > { %3457 = vmatpush.msra.mxu2 %v3343_v61  ;;  %3523 = vmatpush.msrb.mxu3 %v3358_v31  ;;  %v3885_v31 = vld [vmem:[%s7273_s12 + $0x8] sm:$0xff] }
 0x526   : > { %3949 = vmatpush.msrb.mxu1 %v3885_v31 }
 0x527   : > { %v2788_v15 = vpop.xlane.xlu1 %2787  ;;  %3458 = vmatpush.msra.mxu2 %v3342_v48  ;;  %3524 = vmatpush.msrb.mxu3 %v3357_v44  ;;  %v3354_v48 = vld [vmem:[%s7272_s11 + $0x110] sm:$0xff]  ;;  %v3353_v44 = vld [vmem:[%s7272_s11 + $0x108] sm:$0xff] }
 0x528   : > { %v2808_v6 = vsub.f32 %v6295_v50, %v2788_v15  ;;  %v3341_v50 = vld [vmem:[%s7272_s11 + $0xa8] sm:$0xff]  ;;  %v3339_v15 = vld [vmem:[%s7272_s11 + $0x98] sm:$0xff] }
 0x529   : > { %3459 = vmatpush.msra.mxu2 %v3341_v50  ;;  %3525 = vmatpush.msrb.mxu3 %v3356_v46  ;;  %v3337_v50 = vld [vmem:[%s7272_s11 + $0x88] sm:$0xff] }
 0x52a   : > { %v6561_v45 = vpop.eup %4427  ;;  %v2837_v41 = vmul.f32 1.442695, %v2808_v6  ;;  %v3355_v6 = vld [vmem:[%s7272_s11 + $0x118] sm:$0xff] }
 0x52b   : > { %4259 = vmatmul.msk.f32.gmra.mxu0 %vm543_vm0, %v6561_v45  ;;  %4275 = vmatmul.msk.f32.gmra.mxu1 %vm543_vm0, %v6561_v45 }
 0x52c   : > { %4429 = vpow2.f32 %v2837_v41  ;;  %4291 = vmatmul.msk.f32.gmra.mxu2 %vm543_vm0, %v6561_v45  ;;  %4307 = vmatmul.msk.f32.gmra.mxu3 %vm543_vm0, %v6561_v45  ;;  %v3383_v41 = vld [vmem:[%s7272_s11 + $0x1f8] sm:$0xff] }
 0x52d   : > { %3460 = vmatpush.msra.mxu2 %v3340_v37  ;;  %3526 = vmatpush.msrb.mxu3 %v3355_v6  ;;  %v6647_v6 = vld [vmem:[%s7268_s7 + $0x8] sm:$0xf] }
 0x52e   : > { %3579 = vmatpush.msrb.mxu0 %v3383_v41  ;;  %7423 = vst [vmem:[#allocation24_spill] sm:$0xff] %v6647_v6  ;;  %v3381_v41 = vld [vmem:[%s7272_s11 + $0x1e8] sm:$0xff] }
 0x52f   : > { %v2791_v59 = vpop.xlane.xlu2 %2790  ;;  %3461 = vmatpush.msra.mxu2 %v3339_v15  ;;  %3527 = vmatpush.msrb.mxu3 %v3354_v48  ;;  %v3352_v15 = vld [vmem:[%s7272_s11 + $0x100] sm:$0xff]  ;;  %v6655_v48 = vperm.slane %v6647_v6, 0 }
 0x530   : > { %v2809_v9 = vsub.f32 %v6302_v38, %v2791_v59  ;;  %v3338_v38 = vld [vmem:[%s7272_s11 + $0x90] sm:$0xff] }
 0x531   : > { %3462 = vmatpush.msra.mxu2 %v3338_v38  ;;  %3528 = vmatpush.msrb.mxu3 %v3353_v44 }
 0x532   : > { %v6590_v61 = vpop.eup %4429  ;;  %v2839_v8 = vmul.f32 1.442695, %v2809_v9 }
 0x533   : > { %7421 = vst [vmem:[#allocation47_spill] sm:$0xff] %v6590_v61  ;;  %4260 = vmatmul.msk.f32.gmra.mxu0 %vm543_vm0, %v6590_v61  ;;  %4276 = vmatmul.msk.f32.gmra.mxu1 %vm543_vm0, %v6590_v61 }
 0x534   : > { %4431 = vpow2.f32 %v2839_v8  ;;  %4292 = vmatmul.msk.f32.gmra.mxu2 %vm543_vm0, %v6590_v61  ;;  %4308 = vmatmul.msk.f32.gmra.mxu3 %vm543_vm0, %v6590_v61  ;;  %v3336_v8 = vld [vmem:[%s7272_s11 + $0x80] sm:$0xff] }
 0x535   : > { %3463 = vmatpush.msra.mxu2 %v3337_v50  ;;  %3529 = vmatpush.msrb.mxu3 %v3352_v15 }
 0x537   : > { %v2794_v37 = vpop.xlane.xlu0 %2793  ;;  %3464 = vmatpush.msra.mxu2 %v3336_v8  ;;  %4345 = vmatpush.msra.mxu3 %v3885_v31  ;;  %v2117_v31 = vadd.f32 %v5857_v17, %v6655_v48  ;;  %v3380_v8 = vld [vmem:[%s7272_s11 + $0x1e0] sm:$0xff] }
 0x538   : > { %v2810_v46 = vsub.f32 %v6313_v0, %v2794_v37  ;;  %v3382_v0 = vld [vmem:[%s7272_s11 + $0x1f0] sm:$0xff] }
 0x539   : > { %3580 = vmatpush.msrb.mxu0 %v3382_v0  ;;  %v2120_v0 = vadd.f32 %v5879_v51, %v6655_v48 }
 0x53a   : > { %v6625_v59 = vpop.eup %4431  ;;  %v2841_v9 = vmul.f32 1.442695, %v2810_v46  ;;  %v6670_v46 = vperm.slane %v6647_v6, 1 }
 0x53b   : > { %7422 = vst [vmem:[#allocation23_spill] sm:$0xff] %v6625_v59  ;;  %4261 = vmatmul.msk.f32.gmra.mxu0 %vm543_vm0, %v6625_v59  ;;  %4277 = vmatmul.msk.f32.gmra.mxu1 %vm543_vm0, %v6625_v59 }
 0x53c   : > { %4433 = vpow2.f32 %v2841_v9  ;;  %4293 = vmatmul.msk.f32.gmra.mxu2 %vm543_vm0, %v6625_v59  ;;  %4309 = vmatmul.msk.f32.gmra.mxu3 %vm543_vm0, %v6625_v59  ;;  %v6673_v9 = vperm.slane %v6647_v6, 2  ;;  %v2182_v17 = vadd.f32 %v5859_v11, %v6670_v46  ;;  %v3379_v11 = vld [vmem:[%s7272_s11 + $0x1d8] sm:$0xff] }
 0x53d   : > { %3581 = vmatpush.msrb.mxu0 %v3381_v41 }
 0x53e   : > { %v2247_v15 = vadd.f32 %v5875_v52, %v6673_v9  ;;  %v2185_v52 = vadd.f32 %v5881_v28, %v6670_v46  ;;  %v2250_v51 = vadd.f32 %v5893_v39, %v6673_v9  ;;  %v3378_v28 = vld [vmem:[%s7272_s11 + $0x1d0] sm:$0xff]  ;;  %v2188_v39 = vadd.f32 %v5899_v57, %v6670_v46  ;;  %v3377_v57 = vld [vmem:[%s7272_s11 + $0x1c8] sm:$0xff] }
 0x53f   : > { %3582 = vmatpush.msrb.mxu0 %v3380_v8 }
 0x541   : > { %3583 = vmatpush.msrb.mxu0 %v3379_v11 }
 0x542   : > { %v6649_v38 = vpop.eup %4433 }
 0x543   : > { %7424 = vst [vmem:[#allocation48_spill] sm:$0xff] %v6649_v38  ;;  %4262 = vmatmul.msk.f32.gmra.mxu0 %vm543_vm0, %v6649_v38  ;;  %4278 = vmatmul.msk.f32.gmra.mxu1 %vm543_vm0, %v6649_v38 }
 0x544   : > { %4294 = vmatmul.msk.f32.gmra.mxu2 %vm543_vm0, %v6649_v38  ;;  %4310 = vmatmul.msk.f32.gmra.mxu3 %vm543_vm0, %v6649_v38 }
 0x545   : > { %3584 = vmatpush.msrb.mxu0 %v3378_v28 }
 0x547   : > { %3585 = vmatpush.msrb.mxu0 %v3377_v57 }
 0x548   : > { %v6667_v50 = vpop.f32.mrf.mxu0  ;;  %v3013_v44 = vpop.f32.mrf.mxu1 }
 0x549   : > { %v3256_v37 = vmul.f32 %v3013_v44, %v2117_v31  ;;  %4435 = vrcp.f32 %v6667_v50  ;;  %vm3649_vm9 = vweird.f32 %v6667_v50 }
 0x54b   : > { %4311 = vmatmul.msk.f32.vlgmr.msra.gmra.mxu0 %vm543_vm0, %v6321_v24  ;;  %3400 = vmatmul.f32.vlgmr.msra.gmra.mxu1 %v3256_v37  ;;  %v2123_v24 = vadd.f32 %v5897_v60, %v6655_v48  ;;  %v2253_v60 = vadd.f32 %v5911_v22, %v6673_v9  ;;  %v2191_v22 = vadd.f32 %v5917_v12, %v6670_v46  ;;  %v3376_v12 = vld [vmem:[%s7272_s11 + $0x1c0] sm:$0xff] }
 0x54c   : > { %3586 = vmatpush.msrb.mxu0 %v3376_v12 }
 0x54f   : > { %v3078_v41 = vpop.f32.mrf.mxu2  ;;  %v3143_v31 = vpop.f32.mrf.mxu3 }
 0x550   : > { %v3257_v44 = vmul.f32 %v3078_v41, %v2182_v17  ;;  %v3258_v38 = vmul.f32 %v3143_v31, %v2247_v15  ;;  %v6686_v6 = vpop.f32.mrf.mxu0  ;;  %v3016_v59 = vpop.f32.mrf.mxu1 }
 0x551   : > { %v3260_v61 = vmul.f32 %v3016_v59, %v2120_v0  ;;  %4437 = vrcp.f32 %v6686_v6  ;;  %vm3664_vm14 = vweird.f32 %v6686_v6 }
 0x552   : > { %3465 = vmatmul.f32.vlgmr.msra.gmra.mxu2 %v3257_v44  ;;  %3530 = vmatmul.f32.vlgmr.msrb.gmra.mxu3 %v3258_v38 }
 0x553   : > { %4312 = vmatmul.msk.f32.gmra.mxu0 %vm543_vm0, %v6338_v54  ;;  %3403 = vmatmul.f32.gmra.mxu1 %v3260_v61  ;;  %v2126_v54 = vadd.f32 %v5915_v2, %v6655_v48  ;;  %v2256_v2 = vadd.f32 %v5929_v58, %v6673_v9  ;;  %v2194_v58 = vadd.f32 %v5935_v53, %v6670_v46  ;;  %v3375_v53 = vld [vmem:[%s7272_s11 + $0x1b8] sm:$0xff] }
 0x554   : > { %3587 = vmatpush.msrb.mxu0 %v3375_v53 }
 0x557   : > { %v3081_v59 = vpop.f32.mrf.mxu2  ;;  %v3146_v38 = vpop.f32.mrf.mxu3 }
 0x558   : > { %v3261_v37 = vmul.f32 %v3081_v59, %v2185_v52  ;;  %v3262_v8 = vmul.f32 %v3146_v38, %v2250_v51  ;;  %v6699_v17 = vpop.f32.mrf.mxu0  ;;  %v3019_v15 = vpop.f32.mrf.mxu1 }
 0x559   : > { %v3264_v0 = vmul.f32 %v3019_v15, %v2123_v24  ;;  %4439 = vrcp.f32 %v6699_v17  ;;  %vm3679_vm7 = vweird.f32 %v6699_v17 }
 0x55a   : > { %3468 = vmatmul.f32.gmra.mxu2 %v3261_v37  ;;  %3533 = vmatmul.f32.gmra.mxu3 %v3262_v8 }
 0x55b   : > { %4313 = vmatmul.msk.f32.gmra.mxu0 %vm543_vm0, %v6352_v29  ;;  %3406 = vmatmul.f32.gmra.mxu1 %v3264_v0  ;;  %v2129_v29 = vadd.f32 %v5933_v55, %v6655_v48  ;;  %v2259_v55 = vadd.f32 %v5947_v63, %v6673_v9  ;;  %v3884_v63 = vld [vmem:[%s7273_s12] sm:$0xff] }
 0x55c   : > { %3950 = vmatpush.msrb.mxu1 %v3884_v63  ;;  %4346 = vmatpush.msra.mxu3 %v3884_v63 }
 0x55f   : > { %v3084_v61 = vpop.f32.mrf.mxu2  ;;  %v3149_v41 = vpop.f32.mrf.mxu3 }
 0x560   : > { %v3265_v31 = vmul.f32 %v3084_v61, %v2188_v39  ;;  %v3266_v44 = vmul.f32 %v3149_v41, %v2253_v60  ;;  %v6712_v11 = vpop.f32.mrf.mxu0  ;;  %v3022_v52 = vpop.f32.mrf.mxu1 }
 0x561   : > { %v3268_v51 = vmul.f32 %v3022_v52, %v2126_v54 }
 0x562   : > { %3471 = vmatmul.f32.gmra.mxu2 %v3265_v31  ;;  %3536 = vmatmul.f32.gmra.mxu3 %v3266_v44  ;;  %v2135_v44 = vadd.f32 %v5969_v5, %v6655_v48  ;;  %v2265_v5 = vadd.f32 %v5983_v62, %v6673_v9  ;;  %v2203_v62 = vadd.f32 %v5989_v20, %v6670_v46  ;;  %v3372_v20 = vld [vmem:[%s7272_s11 + $0x1a0] sm:$0xff] }
 0x563   : > { %4314 = vmatmul.msk.f32.gmra.mxu0 %vm543_vm0, %v6369_v43  ;;  %3409 = vmatmul.f32.gmra.mxu1 %v3268_v51  ;;  %v2132_v43 = vadd.f32 %v5951_v32, %v6655_v48  ;;  %v2197_v32 = vadd.f32 %v5953_v30, %v6670_v46  ;;  %v3374_v30 = vld [vmem:[%s7272_s11 + $0x1b0] sm:$0xff] }
 0x564   : > { %3588 = vmatpush.msrb.mxu0 %v3374_v30 }
 0x567   : > { %v3087_v24 = vpop.f32.mrf.mxu2  ;;  %v3152_v59 = vpop.f32.mrf.mxu3 }
 0x568   : > { %v3269_v38 = vmul.f32 %v3087_v24, %v2191_v22  ;;  %v3270_v37 = vmul.f32 %v3152_v59, %v2256_v2  ;;  %v6725_v8 = vpop.f32.mrf.mxu0  ;;  %v3025_v15 = vpop.f32.mrf.mxu1  ;;  %v2138_v24 = vadd.f32 %v5987_v3, %v6655_v48  ;;  %v2268_v3 = vadd.f32 %v6001_v36, %v6673_v9 }
 0x569   : > { %v3272_v0 = vmul.f32 %v3025_v15, %v2129_v29  ;;  %v2206_v36 = vadd.f32 %v6007_v40, %v6670_v46  ;;  %v3371_v40 = vld [vmem:[%s7272_s11 + $0x198] sm:$0xff] }
 0x56a   : > { %3474 = vmatmul.f32.gmra.mxu2 %v3269_v38  ;;  %3539 = vmatmul.f32.gmra.mxu3 %v3270_v37 }
 0x56b   : > { %4315 = vmatmul.msk.f32.gmra.mxu0 %vm543_vm0, %v6383_v49  ;;  %3412 = vmatmul.f32.gmra.mxu1 %v3272_v0  ;;  %v2262_v49 = vadd.f32 %v5965_v7, %v6673_v9  ;;  %v2200_v7 = vadd.f32 %v5971_v47, %v6670_v46  ;;  %v3373_v47 = vld [vmem:[%s7272_s11 + $0x1a8] sm:$0xff] }
 0x56c   : > { %3589 = vmatpush.msrb.mxu0 %v3373_v47 }
 0x56e   : > { %3590 = vmatpush.msrb.mxu0 %v3372_v20  ;;  %v7428_v20 = vld [vmem:[#allocation43_spill] sm:$0xff] }
 0x56f   : > { %v3090_v28 = vpop.f32.mrf.mxu2  ;;  %v3155_v39 = vpop.f32.mrf.mxu3 }
 0x570   : > { %v3273_v60 = vmul.f32 %v3090_v28, %v2194_v58  ;;  %v3274_v54 = vmul.f32 %v3155_v39, %v2259_v55  ;;  %v6738_v61 = vpop.f32.mrf.mxu0  ;;  %v3028_v41 = vpop.f32.mrf.mxu1  ;;  %3591 = vmatpush.msrb.mxu0 %v3371_v40  ;;  %v7430_v40 = vld [vmem:[#allocation15_spill] sm:$0xff] }
 0x571   : > { %v3276_v31 = vmul.f32 %v3028_v41, %v2132_v43 }
 0x572   : > { %3477 = vmatmul.f32.gmra.mxu2 %v3273_v60  ;;  %3542 = vmatmul.f32.gmra.mxu3 %v3274_v54 }
 0x573   : > { %4316 = vmatmul.msk.f32.gmra.mxu0 %vm543_vm0, %v6400_v26  ;;  %3415 = vmatmul.f32.gmra.mxu1 %v3276_v31 }
 0x577   : > { %v3093_v52 = vpop.f32.mrf.mxu2  ;;  %v3158_v51 = vpop.f32.mrf.mxu3 }
 0x578   : > { %v3277_v57 = vmul.f32 %v3093_v52, %v2197_v32  ;;  %v3278_v22 = vmul.f32 %v3158_v51, %v2262_v49  ;;  %v6754_v2 = vpop.f32.mrf.mxu0  ;;  %v3031_v26 = vpop.f32.mrf.mxu1 }
 0x579   : > { %v3280_v29 = vmul.f32 %v3031_v26, %v2135_v44 }
 0x57a   : > { %3480 = vmatmul.f32.gmra.mxu2 %v3277_v57  ;;  %3545 = vmatmul.f32.gmra.mxu3 %v3278_v22 }
 0x57b   : > { %4317 = vmatmul.msk.f32.gmra.mxu0 %vm543_vm0, %v6414_v56  ;;  %3418 = vmatmul.f32.gmra.mxu1 %v3280_v29  ;;  %v2141_v56 = vadd.f32 %v6005_v18, %v6655_v48  ;;  %v2271_v18 = vadd.f32 %v6019_v35, %v6673_v9  ;;  %v2209_v35 = vadd.f32 %v6025_v34, %v6670_v46  ;;  %v3370_v34 = vld [vmem:[%s7272_s11 + $0x190] sm:$0xff] }
 0x57c   : > { %3592 = vmatpush.msrb.mxu0 %v3370_v34 }
 0x57f   : > { %v3096_v59 = vpop.f32.mrf.mxu2  ;;  %v3161_v38 = vpop.f32.mrf.mxu3 }
 0x580   : > { %v3281_v37 = vmul.f32 %v3096_v59, %v2200_v7  ;;  %v3282_v15 = vmul.f32 %v3161_v38, %v2265_v5  ;;  %v6767_v0 = vpop.f32.mrf.mxu0  ;;  %v3034_v12 = vpop.f32.mrf.mxu1 }
 0x581   : > { %v3284_v58 = vmul.f32 %v3034_v12, %v2138_v24 }
 0x582   : > { %3483 = vmatmul.f32.gmra.mxu2 %v3281_v37  ;;  %3548 = vmatmul.f32.gmra.mxu3 %v3282_v15 }
 0x583   : > { %4318 = vmatmul.msk.f32.gmra.mxu0 %vm543_vm0, %v6431_v23  ;;  %3421 = vmatmul.f32.gmra.mxu1 %v3284_v58  ;;  %v2144_v23 = vadd.f32 %v6023_v16, %v6655_v48  ;;  %v2274_v16 = vadd.f32 %v6037_v27, %v6673_v9  ;;  %v2212_v27 = vadd.f32 %v6043_v33, %v6670_v46  ;;  %v3369_v33 = vld [vmem:[%s7272_s11 + $0x188] sm:$0xff] }
 0x584   : > { %3593 = vmatpush.msrb.mxu0 %v3369_v33  ;;  %v7435_v33 = vld [vmem:[#allocation45_spill] sm:$0xff] }
 0x587   : > { %v3099_v55 = vpop.f32.mrf.mxu2  ;;  %v3164_v43 = vpop.f32.mrf.mxu3 }
 0x588   : > { %v3285_v28 = vmul.f32 %v3099_v55, %v2203_v62  ;;  %v3286_v39 = vmul.f32 %v3164_v43, %v2268_v3  ;;  %v6780_v60 = vpop.f32.mrf.mxu0  ;;  %v3037_v54 = vpop.f32.mrf.mxu1 }
 0x589   : > { %v3288_v41 = vmul.f32 %v3037_v54, %v2141_v56  ;;  %v7427_v54 = vld [vmem:[#allocation13_spill] sm:$0xff] }
 0x58a   : > { %3486 = vmatmul.f32.gmra.mxu2 %v3285_v28  ;;  %3551 = vmatmul.f32.gmra.mxu3 %v3286_v39 }
 0x58b   : > { %4319 = vmatmul.msk.f32.gmra.mxu0 %vm543_vm0, %v6445_v21  ;;  %3424 = vmatmul.f32.gmra.mxu1 %v3288_v41  ;;  %v2147_v21 = vadd.f32 %v6041_v42, %v6655_v48  ;;  %v2277_v42 = vadd.f32 %v6055_v10, %v6673_v9  ;;  %v2215_v10 = vadd.f32 %v6061_v19, %v6670_v46  ;;  %v3368_v19 = vld [vmem:[%s7272_s11 + $0x180] sm:$0xff] }
 0x58c   : > { %3594 = vmatpush.msrb.mxu0 %v3368_v19  ;;  %v2283_v41 = vadd.f32 %v7427_v54, %v6673_v9  ;;  %v3655_v54 = vand.u32 2147483648, %v6667_v50 }
 0x58f   : > { %v3102_v31 = vpop.f32.mrf.mxu2  ;;  %v3167_v53 = vpop.f32.mrf.mxu3 }
 0x590   : > { %v3289_v63 = vmul.f32 %v3102_v31, %v2206_v36  ;;  %v3290_v32 = vmul.f32 %v3167_v53, %v2271_v18  ;;  %v6793_v49 = vpop.f32.mrf.mxu0  ;;  %v3040_v44 = vpop.f32.mrf.mxu1  ;;  %v2156_v36 = vadd.f32 %v7428_v20, %v6655_v48  ;;  %v7438_v20 = vld [vmem:[#allocation48_spill] sm:$0xff] }
 0x591   : > { %v3292_v52 = vmul.f32 %v3040_v44, %v2144_v23  ;;  %v7429_v44 = vld [vmem:[#allocation47_spill] sm:$0xff] }
 0x592   : > { %3489 = vmatmul.f32.gmra.mxu2 %v3289_v63  ;;  %3554 = vmatmul.f32.gmra.mxu3 %v3290_v32 }
 0x593   : > { %4320 = vmatmul.msk.f32.gmra.mxu0 %vm543_vm0, %v6462_v13  ;;  %3427 = vmatmul.f32.gmra.mxu1 %v3292_v52  ;;  %v2150_v13 = vadd.f32 %v6059_v4, %v6655_v48  ;;  %v2280_v4 = vadd.f32 %v6073_v25, %v6673_v9  ;;  %v4031_v25 = vld [vmem:[%s7274_s13 + $0x78] sm:$0xff]  ;;  %v6853_v52 = vpop.eup %4435 }
 0x594   : > { %4036 = vmatpush.msrb.mxu2 %v4031_v25  ;;  %v4029_v25 = vld [vmem:[%s7274_s13 + $0x68] sm:$0xff]  ;;  %vm3650_vm4 = vweird.f32 %v6853_v52 }
 0x595   : > { %vm6907_vm10 = vmor %vm3649_vm9, %vm3650_vm4 }
 0x597   : > { %v3105_v51 = vpop.f32.mrf.mxu2  ;;  %v3170_v57 = vpop.f32.mrf.mxu3 }
 0x598   : > { %v3293_v22 = vmul.f32 %v3105_v51, %v2209_v35  ;;  %v3294_v26 = vmul.f32 %v3170_v57, %v2274_v16  ;;  %v6806_v29 = vpop.f32.mrf.mxu0  ;;  %v3043_v30 = vpop.f32.mrf.mxu1  ;;  %v2221_v35 = vadd.f32 %v7430_v40, %v6670_v46  ;;  %v7431_v16 = vld [vmem:[#allocation16_spill] sm:$0xff]  ;;  %v7432_v51 = vld [vmem:[#allocation17_spill] sm:$0xff] }
 0x599   : > { %v3296_v7 = vmul.f32 %v3043_v30, %v2147_v21  ;;  %v2286_v21 = vadd.f32 %v7431_v16, %v6673_v9  ;;  %v2159_v57 = vadd.f32 %v7432_v51, %v6655_v48 }
 0x59a   : > { %3492 = vmatmul.f32.gmra.mxu2 %v3293_v22  ;;  %3557 = vmatmul.f32.gmra.mxu3 %v3294_v26  ;;  %v3645_v22 = vmul.f32 %v6853_v52, %v6667_v50 }
 0x59b   : > { %4321 = vmatmul.msk.f32.gmra.mxu0 %vm543_vm0, %v6494_v14  ;;  %3430 = vmatmul.f32.gmra.mxu1 %v3296_v7  ;;  %v7425_v14 = vld [vmem:[#allocation12_spill] sm:$0xff] }
 0x59c   : > { %v2153_v58 = vadd.f32 %v7425_v14, %v6655_v48 }
 0x59f   : > { %v3108_v5 = vpop.f32.mrf.mxu2  ;;  %v3173_v24 = vpop.f32.mrf.mxu3 }
 0x5a0   : > { %v3297_v59 = vmul.f32 %v3108_v5, %v2212_v27  ;;  %v3298_v38 = vmul.f32 %v3173_v24, %v2277_v42  ;;  %v6819_v37 = vpop.f32.mrf.mxu0  ;;  %v3046_v15 = vpop.f32.mrf.mxu1  ;;  %v3646_v24 = vsub.f32 1.0, %v3645_v22 }
 0x5a1   : > { %v3300_v12 = vmul.f32 %v3046_v15, %v2150_v13  ;;  %v4030_v13 = vld [vmem:[%s7274_s13 + $0x70] sm:$0xff]  ;;  %v7434_v15 = vld [vmem:[#allocation18_spill] sm:$0xff] }
 0x5a2   : > { %3495 = vmatmul.f32.gmra.mxu2 %v3297_v59  ;;  %3560 = vmatmul.f32.gmra.mxu3 %v3298_v38  ;;  %v7433_v59 = vld [vmem:[#allocation23_spill] sm:$0xff]  ;;  %v6871_v38 = vpop.eup %4437 }
 0x5a3   : > { %4322 = vmatmul.msk.f32.gmra.mxu0 %vm543_vm0, %v6529_v1  ;;  %3433 = vmatmul.f32.gmra.mxu1 %v3300_v12  ;;  %v7426_v1 = vld [vmem:[#allocation42_spill] sm:$0xff]  ;;  %v2224_v12 = vadd.f32 %v7434_v15, %v6670_v46  ;;  %vm3665_vm12 = vweird.f32 %v6871_v38 }
 0x5a4   : > { %v2218_v39 = vadd.f32 %v7426_v1, %v6670_v46  ;;  %4037 = vmatpush.msrb.mxu2 %v4030_v13  ;;  %vm6938_vm1 = vmor %vm3664_vm14, %vm3665_vm12  ;;  %vm3709_vm14 = vweird.f32 %v6725_v8 }
 0x5a6   : > { %4038 = vmatpush.msrb.mxu2 %v4029_v25 }
 0x5a7   : > { %v3111_v47 = vpop.f32.mrf.mxu2  ;;  %v3176_v62 = vpop.f32.mrf.mxu3 }
 0x5a8   : > { %v3301_v3 = vmul.f32 %v3111_v47, %v2215_v10  ;;  %v3302_v56 = vmul.f32 %v3176_v62, %v2280_v4  ;;  %v6832_v55 = vpop.f32.mrf.mxu0  ;;  %v3049_v43 = vpop.f32.mrf.mxu1  ;;  %v2289_v10 = vadd.f32 %v7435_v33, %v6673_v9  ;;  %v7436_v4 = vld [vmem:[#allocation20_spill] sm:$0xff]  ;;  %v3660_v47 = vmul.f32 %v6871_v38, %v6686_v6 }
 0x5a9   : > { %v3304_v28 = vmul.f32 %v3049_v43, %v2153_v58  ;;  %v2162_v14 = vadd.f32 %v7436_v4, %v6655_v48  ;;  %v3647_v58 = vmul.f32 %v6853_v52, %v3646_v24  ;;  %v7437_v48 = vld [vmem:[#allocation24_spill] sm:$0xff]  ;;  %v3670_v4 = vand.u32 2147483648, %v6686_v6 }
 0x5aa   : > { %3498 = vmatmul.f32.gmra.mxu2 %v3301_v3  ;;  %3563 = vmatmul.f32.gmra.mxu3 %v3302_v56 }
 0x5ab   : > { %4323 = vmatmul.msk.f32.gmra.mxu0 %vm543_vm0, %v6561_v45  ;;  %3436 = vmatmul.f32.gmra.mxu1 %v3304_v28 }
 0x5af   : > { %v3114_v18 = vpop.f32.mrf.mxu2  ;;  %v3179_v45 = vpop.f32.mrf.mxu3 }
 0x5b0   : > { %v3305_v23 = vmul.f32 %v3114_v18, %v2218_v39  ;;  %v3306_v31 = vmul.f32 %v3179_v45, %v2283_v41  ;;  %v6849_v53 = vpop.f32.mrf.mxu0  ;;  %v3052_v63 = vpop.f32.mrf.mxu1  ;;  %v6890_v39 = vperm.slane %v7437_v48, 3  ;;  %v3661_v41 = vsub.f32 1.0, %v3660_v47 }
 0x5b1   : > { %v3308_v32 = vmul.f32 %v3052_v63, %v2156_v36  ;;  %v3648_v36 = vadd.f32 %v6853_v52, %v3647_v58  ;;  %v6897_v18 = vpop.eup %4439  ;;  %v3653_v45 = vand.u32 2147483647, %v6667_v50  ;;  %v7440_v63 = vld [vmem:[#allocation46_spill] sm:$0xff]  ;;  %v3671_v48 = vor.u32 1.1754944e-38, %v3670_v4 }
 0x5b2   : > { %3501 = vmatmul.f32.gmra.mxu2 %v3305_v23  ;;  %3566 = vmatmul.f32.gmra.mxu3 %v3306_v31  ;;  %v7439_v23 = vld [vmem:[#allocation5_spill] sm:$0xff]  ;;  %v3675_v50 = vmul.f32 %v6897_v18, %v6699_v17  ;;  %v3662_v22 = vmul.f32 %v6871_v38, %v3661_v41  ;;  %v7444_v58 = vld [vmem:[#allocation6_spill] sm:$0xff]  ;;  %vm3680_vm6 = vweird.f32 %v6897_v18 }
 0x5b3   : > { %4324 = vmatmul.msk.f32.gmra.mxu0 %vm543_vm0, %v7429_v44  ;;  %3439 = vmatmul.f32.gmra.mxu1 %v3308_v32  ;;  %v2312_v31 = vadd.f32 %v7439_v23, %v6890_v39  ;;  %v2227_v32 = vadd.f32 %v7440_v63, %v6670_v46  ;;  %v7441_v44 = vld [vmem:[#allocation21_spill] sm:$0xff]  ;;  %v3652_v46 = vsel %vm6907_vm10, %v6853_v52, %v3648_v36  ;;  %vm3654_vm11 = vcmp.eq.f32.partialorder %v3653_v45, 8.507059e+37  ;;  %vm3681_vm8 = vmor %vm3679_vm7, %vm3680_vm6 }
 0x5b4   : > { %v2292_v40 = vadd.f32 %v7441_v44, %v6673_v9  ;;  %v3676_v24 = vsub.f32 1.0, %v3675_v50  ;;  %v3663_v15 = vadd.f32 %v6871_v38, %v3662_v22  ;;  %v2315_v47 = vadd.f32 %v7444_v58, %v6890_v39 }
 0x5b5   : > { %v3683_v63 = vand.u32 2147483647, %v6699_v17  ;;  %vm3694_vm10 = vweird.f32 %v6712_v11  ;;  %v3715_v58 = vand.u32 2147483648, %v6725_v8 }
 0x5b7   : > { %v3117_v26 = vpop.f32.mrf.mxu2  ;;  %v3182_v30 = vpop.f32.mrf.mxu3  ;;  %vm3684_vm4 = vcmp.eq.f32.partialorder %v3683_v63, 8.507059e+37 }
 0x5b8   : > { %v3309_v7 = vmul.f32 %v3117_v26, %v2221_v35  ;;  %v3310_v34 = vmul.f32 %v3182_v30, %v2286_v21  ;;  %v6864_v27 = vpop.f32.mrf.mxu0  ;;  %v3055_v42 = vpop.f32.mrf.mxu1  ;;  %v3656_v21 = vor.u32 1.1754944e-38, %v3655_v54  ;;  %v4027_v54 = vld [vmem:[%s7274_s13 + $0x58] sm:$0xff] }
 0x5b9   : > { %v3312_v5 = vmul.f32 %v3055_v42, %v2159_v57  ;;  %v4028_v42 = vld [vmem:[%s7274_s13 + $0x60] sm:$0xff] }
 0x5ba   : > { %3504 = vmatmul.f32.gmra.mxu2 %v3309_v7  ;;  %3569 = vmatmul.f32.gmra.mxu3 %v3310_v34  ;;  %v3657_v52 = vsel %vm3654_vm11, %v3656_v21, %v3652_v46 }
 0x5bb   : > { %4325 = vmatmul.msk.f32.gmra.mxu0 %vm543_vm0, %v7433_v59  ;;  %3442 = vmatmul.f32.gmra.mxu1 %v3312_v5 }
 0x5bc   : > { %4039 = vmatpush.msrb.mxu2 %v4028_v42 }
 0x5be   : > { %4040 = vmatpush.msrb.mxu2 %v4027_v54 }
 0x5bf   : > { %v3120_v62 = vpop.f32.mrf.mxu2  ;;  %v3185_v3 = vpop.f32.mrf.mxu3 }
 0x5c0   : > { %v3313_v56 = vmul.f32 %v3120_v62, %v2224_v12  ;;  %v3314_v43 = vmul.f32 %v3185_v3, %v2289_v10  ;;  %v6883_v28 = vpop.f32.mrf.mxu0  ;;  %v3058_v19 = vpop.f32.mrf.mxu1 }
 0x5c1   : > { %4441 = vrcp.f32 %v6883_v28  ;;  %v3316_v1 = vmul.f32 %v3058_v19, %v2162_v14  ;;  %v3880_v59 = vand.u32 2147483648, %v6883_v28  ;;  %v3878_v10 = vand.u32 2147483647, %v6883_v28 }
 0x5c2   : > { %3507 = vmatmul.f32.gmra.mxu2 %v3313_v56  ;;  %3572 = vmatmul.f32.gmra.mxu3 %v3314_v43  ;;  %4443 = vrcp.f32 %v6712_v11  ;;  %v3668_v14 = vand.u32 2147483647, %v6686_v6  ;;  %vm3874_vm15 = vweird.f32 %v6883_v28  ;;  %v3667_v6 = vsel %vm6938_vm1, %v6871_v38, %v3663_v15 }
 0x5c3   : > { %4326 = vmatmul.msk.f32.gmra.mxu0 %vm543_vm0, %v7438_v20  ;;  %3445 = vmatmul.f32.gmra.mxu1 %v3316_v1  ;;  %vm3886_vm0 = vcmask 130048   ;;  %4445 = vrcp.f32 %v6725_v8  ;;  %v3881_v43 = vor.u32 1.1754944e-38, %v3880_v59  ;;  %v3677_v19 = vmul.f32 %v6897_v18, %v3676_v24 }
 0x5c4   : > { %vm3879_vm3 = vcmp.eq.f32.partialorder %v3878_v10, 8.507059e+37  ;;  %vm3669_vm5 = vcmp.eq.f32.partialorder %v3668_v14, 8.507059e+37  ;;  %4447 = vrcp.f32 %v6738_v61 }
 0x5c5   : > { %v3672_v36 = vsel %vm3669_vm5, %v3671_v48, %v3667_v6  ;;  %v3678_v45 = vadd.f32 %v6897_v18, %v3677_v19  ;;  %4449 = vrcp.f32 %v6754_v2 }
 0x5c6   : > { %4451 = vrcp.f32 %v6767_v0 }
 0x5c7   : > { %v4442_v16 = vpop.eup %4441  ;;  %v3123_v51 = vpop.f32.mrf.mxu2  ;;  %v3682_v35 = vsel %vm3681_vm8, %v6897_v18, %v3678_v45  ;;  %v3728_v45 = vand.u32 2147483647, %v6738_v61  ;;  %4453 = vrcp.f32 %v6780_v60  ;;  %vm3739_vm8 = vweird.f32 %v6754_v2 }
 0x5c8   : > { %v3188_v57 = vpop.f32.mrf.mxu3  ;;  %v3870_v9 = vmul.f32 %v4442_v16, %v6883_v28  ;;  %v3317_v26 = vmul.f32 %v3123_v51, %v2227_v32  ;;  %v3208_v7 = vpop.f32.mrf.mxu0  ;;  %vm3875_vm13 = vweird.f32 %v4442_v16  ;;  %v7447_v32 = vld [vmem:[#allocation37_spill] sm:$0xff]  ;;  %4455 = vrcp.f32 %v6793_v49 }
 0x5c9   : > { %v3318_v30 = vmul.f32 %v3188_v57, %v2292_v40  ;;  %v6919_v34 = vpop.f32.mrf.mxu1  ;;  %v3259_v13 = vmul.f32 %v3208_v7, %v2312_v31  ;;  %v6928_v12 = vpop.eup %4443  ;;  %vm3876_vm2 = vmor %vm3874_vm15, %vm3875_vm13  ;;  %v3685_v31 = vand.u32 2147483648, %v6699_v17  ;;  %v2318_v44 = vadd.f32 %v7447_v32, %v6890_v39  ;;  %v4026_v17 = vld [vmem:[%s7274_s13 + $0x50] sm:$0xff]  ;;  %v7448_v7 = vld [vmem:[#allocation38_spill] sm:$0xff] }
 0x5ca   : > { %v3871_v5 = vsub.f32 1.0, %v3870_v9  ;;  %3510 = vmatmul.f32.gmra.mxu2 %v3317_v26  ;;  %v3690_v56 = vmul.f32 %v6928_v12, %v6712_v11  ;;  %v6957_v23 = vpop.eup %4445  ;;  %vm3695_vm9 = vweird.f32 %v6928_v12  ;;  %v3700_v26 = vand.u32 2147483648, %v6712_v11 }
 0x5cb   : > { %3575 = vmatmul.f32.gmra.mxu3 %v3318_v30  ;;  %3595 = vmatmul.f32.vlgmr.msrb.gmra.mxu0 %v3259_v13  ;;  %v3705_v40 = vmul.f32 %v6957_v23, %v6725_v8  ;;  %v3686_v51 = vor.u32 1.1754944e-38, %v3685_v31  ;;  %v6977_v9 = vpop.eup %4447  ;;  %v3698_v30 = vand.u32 2147483647, %v6712_v11  ;;  %vm3696_vm11 = vmor %vm3694_vm10, %vm3695_vm9  ;;  %v2321_v42 = vadd.f32 %v7448_v7, %v6890_v39  ;;  %v4025_v11 = vld [vmem:[%s7274_s13 + $0x48] sm:$0xff] }
 0x5cc   : > { %4327 = vmatmul.msk.f32.vlgmr.msrb.gmra.mxu1 %vm3886_vm0, %v3657_v52  ;;  %v3872_v33 = vmul.f32 %v4442_v16, %v3871_v5  ;;  %v3691_v38 = vsub.f32 1.0, %v3690_v56  ;;  %4041 = vmatpush.msrb.mxu2 %v4026_v17  ;;  %v3720_v13 = vmul.f32 %v6977_v9, %v6738_v61  ;;  %v3701_v15 = vor.u32 1.1754944e-38, %v3700_v26  ;;  %v6997_v14 = vpop.eup %4449 }
 0x5cd   : > { %v3687_v46 = vsel %vm3684_vm4, %v3686_v51, %v3682_v35  ;;  %v3706_v22 = vsub.f32 1.0, %v3705_v40  ;;  %vm3699_vm12 = vcmp.eq.f32.partialorder %v3698_v30, 8.507059e+37  ;;  %vm3710_vm13 = vweird.f32 %v6957_v23 }
 0x5ce   : > { %v3873_v62 = vadd.f32 %v4442_v16, %v3872_v33  ;;  %4042 = vmatpush.msrb.mxu2 %v4025_v11  ;;  %v3721_v4 = vsub.f32 1.0, %v3720_v13  ;;  %vm3711_vm15 = vmor %vm3709_vm14, %vm3710_vm13  ;;  %v3735_v56 = vmul.f32 %v6997_v14, %v6754_v2  ;;  %vm3729_vm6 = vcmp.eq.f32.partialorder %v3728_v45, 8.507059e+37 }
 0x5cf   : > { %v3707_v52 = vmul.f32 %v6957_v23, %v3706_v22  ;;  %vm3740_vm7 = vweird.f32 %v6997_v14  ;;  %v3745_v22 = vand.u32 2147483648, %v6754_v2  ;;  %4457 = vrcp.f32 %v6806_v29 }
 0x5d0   : > { %v3211_v25 = vpop.f32.mrf.mxu0  ;;  %v3877_v28 = vsel %vm3876_vm2, %v4442_v16, %v3873_v62  ;;  %v3692_v16 = vmul.f32 %v6928_v12, %v3691_v38  ;;  %v7449_v62 = vld [vmem:[#allocation39_spill] sm:$0xff]  ;;  %v3722_v6 = vmul.f32 %v6977_v9, %v3721_v4  ;;  %vm3725_vm2 = vweird.f32 %v6977_v9  ;;  %vm3741_vm4 = vmor %vm3739_vm8, %vm3740_vm7 }
 0x5d1   : > { %v6948_v1 = vpop.f32.mrf.mxu1  ;;  %v3263_v41 = vmul.f32 %v3211_v25, %v2315_v47  ;;  %v3882_v20 = vsel %vm3879_vm3, %v3881_v43, %v3877_v28  ;;  %v3713_v47 = vand.u32 2147483647, %v6725_v8  ;;  %v2324_v3 = vadd.f32 %v7449_v62, %v6890_v39  ;;  %v4024_v8 = vld [vmem:[%s7274_s13 + $0x40] sm:$0xff] }
 0x5d2   : > { %v3693_v18 = vadd.f32 %v6928_v12, %v3692_v16  ;;  %v3716_v28 = vor.u32 1.1754944e-38, %v3715_v58  ;;  %4043 = vmatpush.msrb.mxu2 %v4024_v8  ;;  %v3730_v38 = vand.u32 2147483648, %v6738_v61  ;;  %vm3724_vm3 = vweird.f32 %v6738_v61  ;;  %v4023_v61 = vld [vmem:[%s7274_s13 + $0x38] sm:$0xff] }
 0x5d3   : > { %4342 = vmatmul.msk.f32.vlgmr.msra.gmra.mxu3 %vm3886_vm0, %v3882_v20  ;;  %3598 = vmatmul.f32.gmra.mxu0 %v3263_v41  ;;  %vm3714_vm1 = vcmp.eq.f32.partialorder %v3713_v47, 8.507059e+37  ;;  %v3736_v41 = vsub.f32 1.0, %v3735_v56  ;;  %v3723_v20 = vadd.f32 %v6977_v9, %v3722_v6  ;;  %vm3726_vm5 = vmor %vm3724_vm3, %vm3725_vm2  ;;  %v3760_v4 = vand.u32 2147483648, %v6767_v0 }
 0x5d4   : > { %4328 = vmatmul.msk.f32.gmra.mxu1 %vm3886_vm0, %v3672_v36  ;;  %v3697_v5 = vsel %vm3696_vm11, %v6928_v12, %v3693_v18  ;;  %v3708_v12 = vadd.f32 %v6957_v23, %v3707_v52  ;;  %v7017_v36 = vpop.eup %4451  ;;  %v3731_v16 = vor.u32 1.1754944e-38, %v3730_v38  ;;  %4044 = vmatpush.msrb.mxu2 %v4023_v61  ;;  %v3743_v18 = vand.u32 2147483647, %v6754_v2  ;;  %v4022_v2 = vld [vmem:[%s7274_s13 + $0x30] sm:$0xff] }
 0x5d5   : > { %v3702_v10 = vsel %vm3699_vm12, %v3701_v15, %v3697_v5  ;;  %v3750_v63 = vmul.f32 %v7017_v36, %v6767_v0  ;;  %v3727_v32 = vsel %vm3726_vm5, %v6977_v9, %v3723_v20  ;;  %v7451_v9 = vld [vmem:[#allocation8_spill] sm:$0xff]  ;;  %v3746_v52 = vor.u32 1.1754944e-38, %v3745_v22 }
 0x5d6   : > { %v3712_v43 = vsel %vm3711_vm15, %v6957_v23, %v3708_v12  ;;  %v7450_v23 = vld [vmem:[#allocation7_spill] sm:$0xff]  ;;  %v3732_v51 = vsel %vm3729_vm6, %v3731_v16, %v3727_v32  ;;  %v2330_v26 = vadd.f32 %v7451_v9, %v6890_v39  ;;  %vm3744_vm9 = vcmp.eq.f32.partialorder %v3743_v18, 8.507059e+37  ;;  %4045 = vmatpush.msrb.mxu2 %v4022_v2 }
 0x5d7   : > { %v3717_v54 = vsel %vm3714_vm1, %v3716_v28, %v3712_v43  ;;  %v2327_v31 = vadd.f32 %v7450_v23, %v6890_v39  ;;  %v3751_v17 = vsub.f32 1.0, %v3750_v63  ;;  %vm3755_vm10 = vweird.f32 %v7017_v36 }
 0x5d8   : > { %v3214_v21 = vpop.f32.mrf.mxu0  ;;  %vm3754_vm11 = vweird.f32 %v6767_v0  ;;  %v3758_v12 = vand.u32 2147483647, %v6767_v0  ;;  %v3761_v6 = vor.u32 1.1754944e-38, %v3760_v4  ;;  %v4021_v0 = vld [vmem:[%s7274_s13 + $0x28] sm:$0xff]  ;;  %vm3769_vm15 = vweird.f32 %v6780_v60 }
 0x5d9   : > { %v6969_v50 = vpop.f32.mrf.mxu1  ;;  %v3267_v57 = vmul.f32 %v3214_v21, %v2318_v44  ;;  %v3737_v44 = vmul.f32 %v6997_v14, %v3736_v41  ;;  %vm3756_vm12 = vmor %vm3754_vm11, %vm3755_vm10  ;;  %4046 = vmatpush.msrb.mxu2 %v4021_v0  ;;  %v3775_v41 = vand.u32 2147483648, %v6780_v60  ;;  %v3773_v20 = vand.u32 2147483647, %v6780_v60 }
 0x5da   : > { %vm3759_vm13 = vcmp.eq.f32.partialorder %v3758_v12, 8.507059e+37  ;;  %4459 = vrcp.f32 %v6819_v37  ;;  %vm3784_vm5 = vweird.f32 %v6793_v49 }
 0x5db   : > { %3601 = vmatmul.f32.gmra.mxu0 %v3267_v57  ;;  %v3738_v57 = vadd.f32 %v6997_v14, %v3737_v44  ;;  %v3776_v44 = vor.u32 1.1754944e-38, %v3775_v41  ;;  %vm3774_vm2 = vcmp.eq.f32.partialorder %v3773_v20, 8.507059e+37  ;;  %4461 = vrcp.f32 %v6832_v55 }
 0x5dc   : > { %4329 = vmatmul.msk.f32.gmra.mxu1 %vm3886_vm0, %v3687_v46  ;;  %v7037_v46 = vpop.eup %4453  ;;  %4463 = vrcp.f32 %v6849_v53 }
 0x5dd   : > { %v3765_v30 = vmul.f32 %v7037_v46, %v6780_v60  ;;  %v3742_v7 = vsel %vm3741_vm4, %v6997_v14, %v3738_v57  ;;  %v7452_v14 = vld [vmem:[#allocation40_spill] sm:$0xff]  ;;  %vm3770_vm14 = vweird.f32 %v7037_v46  ;;  %v4020_v60 = vld [vmem:[%s7274_s13 + $0x20] sm:$0xff]  ;;  %v3788_v57 = vand.u32 2147483647, %v6793_v49 }
 0x5de   : > { %v3747_v15 = vsel %vm3744_vm9, %v3746_v52, %v3742_v7  ;;  %v2333_v58 = vadd.f32 %v7452_v14, %v6890_v39  ;;  %vm3771_vm1 = vmor %vm3769_vm15, %vm3770_vm14  ;;  %4047 = vmatpush.msrb.mxu2 %v4020_v60  ;;  %vm3799_vm4 = vweird.f32 %v6806_v29  ;;  %4465 = vrcp.f32 %v6864_v27 }
 0x5df   : > { %v3766_v11 = vsub.f32 1.0, %v3765_v30  ;;  %vm3789_vm7 = vcmp.eq.f32.partialorder %v3788_v57, 8.507059e+37  ;;  %v7457_v57 = vld [vmem:[#allocation14_spill] sm:$0xff] }
 0x5e0   : > { %v3217_v24 = vpop.f32.mrf.mxu0 }
 0x5e1   : > { %v6989_v59 = vpop.f32.mrf.mxu1  ;;  %v3271_v33 = vmul.f32 %v3217_v24, %v2321_v42  ;;  %v3752_v42 = vmul.f32 %v7017_v36, %v3751_v17  ;;  %v3790_v17 = vand.u32 2147483648, %v6793_v49 }
 0x5e3   : > { %3604 = vmatmul.f32.gmra.mxu0 %v3271_v33  ;;  %v3753_v33 = vadd.f32 %v7017_v36, %v3752_v42  ;;  %v3791_v42 = vor.u32 1.1754944e-38, %v3790_v17  ;;  %v3833_v17 = vand.u32 2147483647, %v6832_v55 }
 0x5e4   : > { %4330 = vmatmul.msk.f32.gmra.mxu1 %vm3886_vm0, %v3702_v10  ;;  %v7057_v10 = vpop.eup %4455 }
 0x5e5   : > { %v3780_v47 = vmul.f32 %v7057_v10, %v6793_v49  ;;  %v3757_v62 = vsel %vm3756_vm12, %v7017_v36, %v3753_v33  ;;  %v7453_v36 = vld [vmem:[#allocation9_spill] sm:$0xff]  ;;  %vm3785_vm3 = vweird.f32 %v7057_v10  ;;  %v4019_v49 = vld [vmem:[%s7274_s13 + $0x18] sm:$0xff]  ;;  %v3803_v33 = vand.u32 2147483647, %v6806_v29 }
 0x5e6   : > { %v3762_v28 = vsel %vm3759_vm13, %v3761_v6, %v3757_v62  ;;  %v2336_v38 = vadd.f32 %v7453_v36, %v6890_v39  ;;  %vm3786_vm6 = vmor %vm3784_vm5, %vm3785_vm3  ;;  %4048 = vmatpush.msrb.mxu2 %v4019_v49  ;;  %vm3814_vm12 = vweird.f32 %v6819_v37  ;;  %v4016_v49 = vld [vmem:[%s7274_s13] sm:$0xff]  ;;  %vm3834_vm3 = vcmp.eq.f32.partialorder %v3833_v17, 8.507059e+37 }
 0x5e7   : > { %v3781_v8 = vsub.f32 1.0, %v3780_v47  ;;  %vm3804_vm10 = vcmp.eq.f32.partialorder %v3803_v33, 8.507059e+37  ;;  %v3848_v33 = vand.u32 2147483647, %v6849_v53 }
 0x5e8   : > { %v3220_v19 = vpop.f32.mrf.mxu0 }
 0x5e9   : > { %v7009_v25 = vpop.f32.mrf.mxu1  ;;  %v3275_v48 = vmul.f32 %v3220_v19, %v2324_v3  ;;  %v3767_v3 = vmul.f32 %v7037_v46, %v3766_v11  ;;  %v3805_v11 = vand.u32 2147483648, %v6806_v29 }
 0x5eb   : > { %3607 = vmatmul.f32.gmra.mxu0 %v3275_v48  ;;  %v3768_v48 = vadd.f32 %v7037_v46, %v3767_v3  ;;  %v3806_v3 = vor.u32 1.1754944e-38, %v3805_v11  ;;  %v3850_v11 = vand.u32 2147483648, %v6849_v53 }
 0x5ec   : > { %4331 = vmatmul.msk.f32.gmra.mxu1 %vm3886_vm0, %v3717_v54  ;;  %v7077_v54 = vpop.eup %4457 }
 0x5ed   : > { %v3795_v45 = vmul.f32 %v7077_v54, %v6806_v29  ;;  %v3772_v23 = vsel %vm3771_vm1, %v7037_v46, %v3768_v48  ;;  %v7454_v46 = vld [vmem:[#allocation10_spill] sm:$0xff]  ;;  %vm3800_vm8 = vweird.f32 %v7077_v54  ;;  %v4018_v29 = vld [vmem:[%s7274_s13 + $0x10] sm:$0xff]  ;;  %v3818_v48 = vand.u32 2147483647, %v6819_v37 }
 0x5ee   : > { %v3777_v16 = vsel %vm3774_vm2, %v3776_v44, %v3772_v23  ;;  %v2339_v22 = vadd.f32 %v7454_v46, %v6890_v39  ;;  %vm3801_vm9 = vmor %vm3799_vm4, %vm3800_vm8  ;;  %4049 = vmatpush.msrb.mxu2 %v4018_v29  ;;  %v7156_v44 = vpop.f32.mrf.mxu3  ;;  %vm3829_vm1 = vweird.f32 %v6832_v55  ;;  %v2348_v46 = vadd.f32 %v7457_v57, %v6890_v39 }
 0x5ef   : > { %v3796_v61 = vsub.f32 1.0, %v3795_v45  ;;  %vm3819_vm14 = vcmp.eq.f32.partialorder %v3818_v48, 8.507059e+37  ;;  %vm3849_vm8 = vcmp.eq.f32.partialorder %v3848_v33, 8.507059e+37 }
 0x5f0   : > { %v3223_v40 = vpop.f32.mrf.mxu0 }
 0x5f1   : > { %v7029_v35 = vpop.f32.mrf.mxu1  ;;  %v3279_v21 = vmul.f32 %v3223_v40, %v2327_v31  ;;  %v3782_v31 = vmul.f32 %v7057_v10, %v3781_v8  ;;  %v3820_v8 = vand.u32 2147483648, %v6819_v37 }
 0x5f3   : > { %3610 = vmatmul.f32.gmra.mxu0 %v3279_v21  ;;  %v3783_v21 = vadd.f32 %v7057_v10, %v3782_v31  ;;  %v3821_v31 = vor.u32 1.1754944e-38, %v3820_v8  ;;  %v7459_v8 = vld [vmem:[#allocation19_spill] sm:$0xff] }
 0x5f4   : > { %4332 = vmatmul.msk.f32.gmra.mxu1 %vm3886_vm0, %v3732_v51  ;;  %v7097_v51 = vpop.eup %4459  ;;  %v2354_v48 = vadd.f32 %v7459_v8, %v6890_v39 }
 0x5f5   : > { %v3810_v18 = vmul.f32 %v7097_v51, %v6819_v37  ;;  %v3787_v9 = vsel %vm3786_vm6, %v7057_v10, %v3783_v21  ;;  %v7455_v10 = vld [vmem:[#allocation41_spill] sm:$0xff]  ;;  %vm3815_vm11 = vweird.f32 %v7097_v51  ;;  %v4017_v37 = vld [vmem:[%s7274_s13 + $0x8] sm:$0xff]  ;;  %vm3844_vm6 = vweird.f32 %v6849_v53 }
 0x5f6   : > { %v3792_v52 = vsel %vm3789_vm7, %v3791_v42, %v3787_v9  ;;  %v2342_v4 = vadd.f32 %v7455_v10, %v6890_v39  ;;  %vm3816_vm13 = vmor %vm3814_vm12, %vm3815_vm11  ;;  %4050 = vmatpush.msrb.mxu2 %v4017_v37  ;;  %v7458_v10 = vld [vmem:[#allocation44_spill] sm:$0xff] }
 0x5f7   : > { %v3811_v2 = vsub.f32 1.0, %v3810_v18 }
 0x5f8   : > { %v3226_v13 = vpop.f32.mrf.mxu0  ;;  %4051 = vmatpush.msrb.mxu2 %v4016_v49 }
 0x5f9   : > { %v7049_v5 = vpop.f32.mrf.mxu1  ;;  %v3283_v24 = vmul.f32 %v3226_v13, %v2330_v26  ;;  %v3797_v26 = vmul.f32 %v7077_v54, %v3796_v61 }
 0x5fb   : > { %3613 = vmatmul.f32.gmra.mxu0 %v3283_v24  ;;  %v3798_v24 = vadd.f32 %v7077_v54, %v3797_v26 }
 0x5fc   : > { %4333 = vmatmul.msk.f32.gmra.mxu1 %vm3886_vm0, %v3747_v15  ;;  %v7117_v15 = vpop.eup %4461 }
 0x5fd   : > { %v3825_v12 = vmul.f32 %v7117_v15, %v6832_v55  ;;  %v3802_v14 = vsel %vm3801_vm9, %v7077_v54, %v3798_v24  ;;  %v7456_v54 = vld [vmem:[#allocation11_spill] sm:$0xff]  ;;  %vm3830_vm15 = vweird.f32 %v7117_v15  ;;  %v3534_v24 = vpop.f32.mrf.mxu3  ;;  %vm3859_vm9 = vweird.f32 %v6864_v27 }
 0x5fe   : > { %v3807_v6 = vsel %vm3804_vm10, %v3806_v3, %v3802_v14  ;;  %v2345_v41 = vadd.f32 %v7456_v54, %v6890_v39  ;;  %vm3831_vm2 = vmor %vm3829_vm1, %vm3830_vm15  ;;  %v3851_v3 = vor.u32 1.1754944e-38, %v3850_v11 }
 0x5ff   : > { %v3826_v0 = vsub.f32 1.0, %v3825_v12 }
 0x600   : > { %v3229_v56 = vpop.f32.mrf.mxu0 }
 0x601   : > { %v7069_v43 = vpop.f32.mrf.mxu1  ;;  %v3287_v19 = vmul.f32 %v3229_v56, %v2333_v58  ;;  %v3812_v58 = vmul.f32 %v7097_v51, %v3811_v2 }
 0x603   : > { %3616 = vmatmul.f32.gmra.mxu0 %v3287_v19  ;;  %v3813_v19 = vadd.f32 %v7097_v51, %v3812_v58 }
 0x604   : > { %4334 = vmatmul.msk.f32.gmra.mxu1 %vm3886_vm0, %v3762_v28  ;;  %v7137_v28 = vpop.eup %4463 }
 0x605   : > { %v3840_v20 = vmul.f32 %v7137_v28, %v6849_v53  ;;  %v3817_v36 = vsel %vm3816_vm13, %v7097_v51, %v3813_v19  ;;  %v4466_v21 = vpop.eup %4465  ;;  %v3835_v51 = vand.u32 2147483648, %v6832_v55  ;;  %vm3845_vm5 = vweird.f32 %v7137_v28  ;;  %v3537_v19 = vpop.f32.mrf.mxu3 }
 0x606   : > { %vm3846_vm7 = vmor %vm3844_vm6, %vm3845_vm5  ;;  %vm3860_vm4 = vweird.f32 %v4466_v21  ;;  %v3865_v53 = vand.u32 2147483648, %v6864_v27 }
 0x607   : > { %v3836_v42 = vor.u32 1.1754944e-38, %v3835_v51  ;;  %vm3861_vm10 = vmor %vm3859_vm9, %vm3860_vm4 }
 0x608   : > { %v3232_v63 = vpop.f32.mrf.mxu0 }
 0x609   : > { %v7089_v32 = vpop.f32.mrf.mxu1  ;;  %v3291_v40 = vmul.f32 %v3232_v63, %v2336_v38  ;;  %v3827_v38 = vmul.f32 %v7117_v15, %v3826_v0  ;;  %v7154_v63 = vpop.f32.mrf.mxu2 }
 0x60b   : > { %3619 = vmatmul.f32.gmra.mxu0 %v3291_v40  ;;  %v3822_v40 = vsel %vm3819_vm14, %v3821_v31, %v3817_v36  ;;  %v3828_v61 = vadd.f32 %v7117_v15, %v3827_v38  ;;  %v3866_v36 = vor.u32 1.1754944e-38, %v3865_v53  ;;  %v7460_v31 = vld [vmem:[#allocation22_spill] sm:$0xff] }
 0x60c   : > { %4335 = vmatmul.msk.f32.gmra.mxu1 %vm3886_vm0, %v3777_v16  ;;  %v3841_v16 = vsub.f32 1.0, %v3840_v20  ;;  %v2357_v37 = vadd.f32 %v7460_v31, %v6890_v39 }
 0x60d   : > { %v3832_v18 = vsel %vm3831_vm2, %v7117_v15, %v3828_v61 }
 0x60e   : > { %v3842_v9 = vmul.f32 %v7137_v28, %v3841_v16  ;;  %v3837_v55 = vsel %vm3834_vm3, %v3836_v42, %v3832_v18 }
 0x610   : > { %v3235_v30 = vpop.f32.mrf.mxu0  ;;  %v3843_v15 = vadd.f32 %v7137_v28, %v3842_v9 }
 0x611   : > { %v7109_v7 = vpop.f32.mrf.mxu1  ;;  %v3295_v13 = vmul.f32 %v3235_v30, %v2339_v22  ;;  %v3855_v22 = vmul.f32 %v4466_v21, %v6864_v27  ;;  %v3469_v2 = vpop.f32.mrf.mxu2 }
 0x612   : > { %v3847_v12 = vsel %vm3846_vm7, %v7137_v28, %v3843_v15  ;;  %v3863_v28 = vand.u32 2147483647, %v6864_v27  ;;  %v3540_v27 = vpop.f32.mrf.mxu3  ;;  %v3470_v9 = vadd.f32 %v3469_v2, %v6948_v1 }
 0x613   : > { %3622 = vmatmul.f32.gmra.mxu0 %v3295_v13 }
 0x614   : > { %4336 = vmatmul.msk.f32.gmra.mxu1 %vm3886_vm0, %v3792_v52  ;;  %v3856_v52 = vsub.f32 1.0, %v3855_v22  ;;  %vm3864_vm11 = vcmp.eq.f32.partialorder %v3863_v28, 8.507059e+37 }
 0x616   : > { %v3857_v14 = vmul.f32 %v4466_v21, %v3856_v52 }
 0x618   : > { %v3238_v47 = vpop.f32.mrf.mxu0 }
 0x619   : > { %v7129_v62 = vpop.f32.mrf.mxu1  ;;  %v3299_v56 = vmul.f32 %v3238_v47, %v2342_v4  ;;  %v2351_v4 = vadd.f32 %v7458_v10, %v6890_v39  ;;  %v3472_v0 = vpop.f32.mrf.mxu2 }
 0x61a   : > { %v3543_v22 = vpop.f32.mrf.mxu3 }
 0x61b   : > { %3625 = vmatmul.f32.gmra.mxu0 %v3299_v56  ;;  %v3852_v56 = vsel %vm3849_vm8, %v3851_v3, %v3847_v12 }
 0x61c   : > { %4337 = vmatmul.msk.f32.gmra.mxu1 %vm3886_vm0, %v3807_v6  ;;  %v3858_v6 = vadd.f32 %v4466_v21, %v3857_v14 }
 0x61e   : > { %v3862_v54 = vsel %vm3861_vm10, %v4466_v21, %v3858_v6  ;;  %v3467_v21 = vadd.f32 %v7154_v63, %v6919_v34 }
 0x620   : > { %v3241_v45 = vpop.f32.mrf.mxu0  ;;  %v3532_v51 = vadd.f32 %v7156_v44, %v3467_v21 }
 0x621   : > { %v7149_v23 = vpop.f32.mrf.mxu1  ;;  %v3303_v60 = vmul.f32 %v3241_v45, %v2345_v41  ;;  %v3867_v45 = vsel %vm3864_vm11, %v3866_v36, %v3862_v54 }
 0x622   : > { %v3546_v34 = vpop.f32.mrf.mxu3 }
 0x623   : > { %3628 = vmatmul.f32.gmra.mxu0 %v3303_v60  ;;  %v3475_v60 = vpop.f32.mrf.mxu2 }
 0x624   : > { %4338 = vmatmul.msk.f32.gmra.mxu1 %vm3886_vm0, %v3822_v40  ;;  %v3476_v10 = vadd.f32 %v3475_v60, %v6989_v59 }
 0x628   : > { %v3244_v26 = vpop.f32.mrf.mxu0 }
 0x629   : > { %v7169_v30 = vpop.f32.mrf.mxu1  ;;  %v3307_v13 = vmul.f32 %v3244_v26, %v2348_v46  ;;  %v3535_v26 = vadd.f32 %v3534_v24, %v3470_v9  ;;  %v3541_v24 = vadd.f32 %v3540_v27, %v3476_v10 }
 0x62a   : > { %v3549_v2 = vpop.f32.mrf.mxu3 }
 0x62b   : > { %3631 = vmatmul.f32.gmra.mxu0 %v3307_v13  ;;  %v3478_v46 = vpop.f32.mrf.mxu2 }
 0x62c   : > { %4339 = vmatmul.msk.f32.gmra.mxu1 %vm3886_vm0, %v3837_v55  ;;  %v3473_v55 = vadd.f32 %v3472_v0, %v6969_v50  ;;  %v3479_v50 = vadd.f32 %v3478_v46, %v7009_v25 }
 0x62e   : > { %v3538_v44 = vadd.f32 %v3537_v19, %v3473_v55 }
 0x630   : > { %v3247_v58 = vpop.f32.mrf.mxu0 }
 0x631   : > { %v7183_v47 = vpop.f32.mrf.mxu1  ;;  %v3311_v29 = vmul.f32 %v3247_v58, %v2351_v4 }
 0x632   : > { %v3552_v6 = vpop.f32.mrf.mxu3 }
 0x633   : > { %3634 = vmatmul.f32.gmra.mxu0 %v3311_v29  ;;  %v3481_v52 = vpop.f32.mrf.mxu2  ;;  %v3544_v29 = vadd.f32 %v3543_v22, %v3479_v50 }
 0x634   : > { %4340 = vmatmul.msk.f32.gmra.mxu1 %vm3886_vm0, %v3852_v56  ;;  %v3482_v59 = vadd.f32 %v3481_v52, %v7029_v35 }
 0x636   : > { %v3547_v8 = vadd.f32 %v3546_v34, %v3482_v59 }
 0x638   : > { %v3250_v41 = vpop.f32.mrf.mxu0 }
 0x639   : > { %v7191_v20 = vpop.f32.mrf.mxu1  ;;  %v3315_v38 = vmul.f32 %v3250_v41, %v2354_v48 }
 0x63a   : > { %v3555_v36 = vpop.f32.mrf.mxu3 }
 0x63b   : > { %3637 = vmatmul.f32.gmra.mxu0 %v3315_v38  ;;  %v3484_v1 = vpop.f32.mrf.mxu2 }
 0x63c   : > { %4341 = vmatmul.msk.f32.gmra.mxu1 %vm3886_vm0, %v3867_v45  ;;  %v3485_v25 = vadd.f32 %v3484_v1, %v7049_v5  ;;  %vm4101_vm0 = vcmask 261120  }
 0x63e   : > { %v3550_v31 = vadd.f32 %v3549_v2, %v3485_v25 }
 0x640   : > { %v3253_v40 = vpop.f32.mrf.mxu0 }
 0x641   : > { %v7196_v16 = vpop.f32.mrf.mxu1  ;;  %v3319_v61 = vmul.f32 %v3253_v40, %v2357_v37 }
 0x642   : > { %v3558_v35 = vpop.f32.mrf.mxu3 }
 0x643   : > { %3640 = vmatmul.f32.gmra.mxu0 %v3319_v61  ;;  %v3487_v56 = vpop.f32.mrf.mxu2 }
 0x644   : > { %v3488_v40 = vadd.f32 %v3487_v56, %v7069_v43 }
 0x648   : > { %v3596_v17 = vpop.f32.mrf.mxu0 }
 0x649   : > { %v3952_v57 = vpop.f32.mrf.mxu1  ;;  %v3597_v18 = vadd.f32 %v3596_v17, %v3532_v51  ;;  %v3553_v51 = vadd.f32 %v3552_v6, %v3488_v40 }
 0x64a   : > { %v3561_v9 = vpop.f32.mrf.mxu3 }
 0x64b   : > { %v4000_v39 = vmul.f32 %v3952_v57, %v3597_v18  ;;  %v3490_v41 = vpop.f32.mrf.mxu2 }
 0x64c   : > { %v3491_v22 = vadd.f32 %v3490_v41, %v7089_v32 }
 0x64d   : > { %4052 = vmatmul.f32.vlgmr.msrb.gmra.mxu2 %v4000_v39 }
 0x64e   : > { %v3556_v39 = vadd.f32 %v3555_v36, %v3491_v22 }
 0x650   : > { %v3599_v42 = vpop.f32.mrf.mxu0 }
 0x651   : > { %v3955_v49 = vpop.f32.mrf.mxu1  ;;  %v3600_v13 = vadd.f32 %v3599_v42, %v3535_v26 }
 0x652   : > { %v3564_v34 = vpop.f32.mrf.mxu3 }
 0x653   : > { %v4001_v63 = vmul.f32 %v3955_v49, %v3600_v13  ;;  %v3493_v61 = vpop.f32.mrf.mxu2 }
 0x654   : > { %v3494_v43 = vadd.f32 %v3493_v61, %v7109_v7 }
 0x655   : > { %4055 = vmatmul.f32.gmra.mxu2 %v4001_v63 }
 0x656   : > { %v3559_v55 = vadd.f32 %v3558_v35, %v3494_v43 }
 0x658   : > { %v3602_v15 = vpop.f32.mrf.mxu0 }
 0x659   : > { %v3958_v11 = vpop.f32.mrf.mxu1  ;;  %v3603_v33 = vadd.f32 %v3602_v15, %v3538_v44 }
 0x65b   : > { %v4002_v4 = vmul.f32 %v3958_v11, %v3603_v33  ;;  %v3496_v5 = vpop.f32.mrf.mxu2 }
 0x65c   : > { %v3497_v32 = vadd.f32 %v3496_v5, %v7129_v62 }
 0x65d   : > { %4058 = vmatmul.f32.gmra.mxu2 %v4002_v4 }
 0x65e   : > { %v3562_v33 = vadd.f32 %v3561_v9, %v3497_v32 }
 0x660   : > { %v3605_v12 = vpop.f32.mrf.mxu0 }
 0x661   : > { %v3961_v14 = vpop.f32.mrf.mxu1  ;;  %v3606_v58 = vadd.f32 %v3605_v12, %v3541_v24  ;;  %v3567_v24 = vpop.f32.mrf.mxu3 }
 0x663   : > { %v4003_v3 = vmul.f32 %v3961_v14, %v3606_v58  ;;  %v3499_v52 = vpop.f32.mrf.mxu2 }
 0x664   : > { %v3500_v7 = vadd.f32 %v3499_v52, %v7149_v23 }
 0x665   : > { %4061 = vmatmul.f32.gmra.mxu2 %v4003_v3 }
 0x666   : > { %v3565_v14 = vadd.f32 %v3564_v34, %v3500_v7 }
 0x668   : > { %v3608_v53 = vpop.f32.mrf.mxu0 }
 0x669   : > { %v3964_v0 = vpop.f32.mrf.mxu1  ;;  %v3609_v19 = vadd.f32 %v3608_v53, %v3544_v29  ;;  %v3570_v6 = vpop.f32.mrf.mxu3 }
 0x66b   : > { %v4004_v28 = vmul.f32 %v3964_v0, %v3609_v19  ;;  %v3502_v1 = vpop.f32.mrf.mxu2 }
 0x66c   : > { %v3503_v29 = vadd.f32 %v3502_v1, %v7169_v30 }
 0x66d   : > { %4064 = vmatmul.f32.gmra.mxu2 %v4004_v28 }
 0x66e   : > { %v3568_v53 = vadd.f32 %v3567_v24, %v3503_v29 }
 0x670   : > { %v3611_v48 = vpop.f32.mrf.mxu0 }
 0x671   : > { %v3967_v54 = vpop.f32.mrf.mxu1  ;;  %v3612_v38 = vadd.f32 %v3611_v48, %v3547_v8  ;;  %v3573_v48 = vpop.f32.mrf.mxu3 }
 0x673   : > { %v4005_v45 = vmul.f32 %v3967_v54, %v3612_v38  ;;  %v3505_v56 = vpop.f32.mrf.mxu2 }
 0x674   : > { %v3506_v28 = vadd.f32 %v3505_v56, %v7183_v47 }
 0x675   : > { %4067 = vmatmul.f32.gmra.mxu2 %v4005_v45 }
 0x676   : > { %v3571_v54 = vadd.f32 %v3570_v6, %v3506_v28 }
 0x678   : > { %v3614_v37 = vpop.f32.mrf.mxu0 }
 0x679   : > { %v3970_v60 = vpop.f32.mrf.mxu1  ;;  %v3615_v27 = vadd.f32 %v3614_v37, %v3550_v31  ;;  %v3576_v37 = vpop.f32.mrf.mxu3 }
 0x67b   : > { %v4006_v21 = vmul.f32 %v3970_v60, %v3615_v27  ;;  %v3508_v23 = vpop.f32.mrf.mxu2 }
 0x67c   : > { %v3509_v30 = vadd.f32 %v3508_v23, %v7191_v20  ;;  %v4370_v20 = vld [vmem:[%s7275_s14] ss:$0 sm:$0xff] }
 0x67d   : > { %4070 = vmatmul.f32.gmra.mxu2 %v4006_v21 }
 0x67e   : > { %v3574_v45 = vadd.f32 %v3573_v48, %v3509_v30 }
 0x680   : > { %v3617_v17 = vpop.f32.mrf.mxu0 }
 0x681   : > { %v3973_v57 = vpop.f32.mrf.mxu1  ;;  %v3618_v46 = vadd.f32 %v3617_v17, %v3553_v51  ;;  %v3997_v17 = vpop.f32.mrf.mxu3 }
 0x683   : > { %v4007_v18 = vmul.f32 %v3973_v57, %v3618_v46  ;;  %v3511_v31 = vpop.f32.mrf.mxu2 }
 0x684   : > { %v3512_v47 = vadd.f32 %v3511_v31, %v7196_v16 }
 0x685   : > { %4073 = vmatmul.f32.gmra.mxu2 %v4007_v18 }
 0x686   : > { %v3577_v35 = vadd.f32 %v3576_v37, %v3512_v47 }
 0x688   : > { %v3620_v26 = vpop.f32.mrf.mxu0 }
 0x689   : > { %v3976_v42 = vpop.f32.mrf.mxu1  ;;  %v3621_v49 = vadd.f32 %v3620_v26, %v3556_v39 }
 0x68b   : > { %v4008_v13 = vmul.f32 %v3976_v42, %v3621_v49 }
 0x68d   : > { %4076 = vmatmul.f32.gmra.mxu2 %v4008_v13 }
 0x690   : > { %v3623_v63 = vpop.f32.mrf.mxu0 }
 0x691   : > { %v3979_v44 = vpop.f32.mrf.mxu1  ;;  %v3624_v15 = vadd.f32 %v3623_v63, %v3559_v55 }
 0x693   : > { %v4009_v11 = vmul.f32 %v3979_v44, %v3624_v15 }
 0x695   : > { %4079 = vmatmul.f32.gmra.mxu2 %v4009_v11 }
 0x698   : > { %v3626_v10 = vpop.f32.mrf.mxu0 }
 0x699   : > { %v3982_v4 = vpop.f32.mrf.mxu1  ;;  %v3627_v2 = vadd.f32 %v3626_v10, %v3562_v33 }
 0x69b   : > { %v4010_v12 = vmul.f32 %v3982_v4, %v3627_v2 }
 0x69d   : > { %4082 = vmatmul.f32.gmra.mxu2 %v4010_v12 }
 0x6a0   : > { %v3629_v58 = vpop.f32.mrf.mxu0 }
 0x6a1   : > { %v3985_v50 = vpop.f32.mrf.mxu1  ;;  %v3630_v3 = vadd.f32 %v3629_v58, %v3565_v14 }
 0x6a3   : > { %v4011_v62 = vmul.f32 %v3985_v50, %v3630_v3 }
 0x6a5   : > { %4085 = vmatmul.f32.gmra.mxu2 %v4011_v62 }
 0x6a8   : > { %v3632_v0 = vpop.f32.mrf.mxu0 }
 0x6a9   : > { %v3988_v19 = vpop.f32.mrf.mxu1  ;;  %v3633_v59 = vadd.f32 %v3632_v0, %v3568_v53 }
 0x6ab   : > { %v4012_v8 = vmul.f32 %v3988_v19, %v3633_v59 }
 0x6ad   : > { %4088 = vmatmul.f32.gmra.mxu2 %v4012_v8 }
 0x6b0   : > { %v3635_v41 = vpop.f32.mrf.mxu0 }
 0x6b1   : > { %v3991_v36 = vpop.f32.mrf.mxu1  ;;  %v3636_v38 = vadd.f32 %v3635_v41, %v3571_v54 }
 0x6b3   : > { %v4013_v25 = vmul.f32 %v3991_v36, %v3636_v38 }
 0x6b5   : > { %4091 = vmatmul.f32.gmra.mxu2 %v4013_v25 }
 0x6b8   : > { %v3638_v60 = vpop.f32.mrf.mxu0 }
 0x6b9   : > { %v3639_v27 = vadd.f32 %v3638_v60, %v3574_v45  ;;  %v3994_v40 = vpop.f32.mrf.mxu1 }
 0x6bb   : > { %v4014_v61 = vmul.f32 %v3994_v40, %v3639_v27 }
 0x6bd   : > { %4094 = vmatmul.f32.gmra.mxu2 %v4014_v61 }
 0x6c0   : > { %v3641_v21 = vpop.f32.mrf.mxu0 }
 0x6c1   : > { %v3642_v51 = vadd.f32 %v3641_v21, %v3577_v35 }
 0x6c3   : > { %v4015_v57 = vmul.f32 %v3997_v17, %v3642_v51 }
 0x6c5   : > { %4097 = vmatmul.f32.gmra.mxu2 %v4015_v57 }
 0x6d0   : > { %v4053_v16 = vpop.f32.mrf.mxu2 }
 0x6d1   : > { %v4054_v46 = vadd.f32 %v4370_v20, %v4053_v16 }
 0x6d3   : > { %4102 = vst.msk [vmem:[%s7224_s17] sm:$0xff] %vm4101_vm0, %v4054_v46 }
 0x6d8   : > { %v4056_v22 = vpop.f32.mrf.mxu2 }
 0x6d9   : > { %v4057_v18 = vadd.f32 %v4370_v20, %v4056_v22 }
 0x6db   : > { %4103 = vst.msk [vmem:[%s7224_s17 + $0x8] sm:$0xff] %vm4101_vm0, %v4057_v18 }
 0x6e0   : > { %v4059_v5 = vpop.f32.mrf.mxu2 }
 0x6e1   : > { %v4060_v9 = vadd.f32 %v4370_v20, %v4059_v5 }
 0x6e3   : > { %4104 = vst.msk [vmem:[%s7224_s17 + $0x10] sm:$0xff] %vm4101_vm0, %v4060_v9 }
 0x6e8   : > { %v4062_v39 = vpop.f32.mrf.mxu2 }
 0x6e9   : > { %v4063_v26 = vadd.f32 %v4370_v20, %v4062_v39 }
 0x6eb   : > { %4105 = vst.msk [vmem:[%s7224_s17 + $0x18] sm:$0xff] %vm4101_vm0, %v4063_v26 }
 0x6f0   : > { %v4065_v42 = vpop.f32.mrf.mxu2 }
 0x6f1   : > { %v4066_v49 = vadd.f32 %v4370_v20, %v4065_v42 }
 0x6f3   : > { %4106 = vst.msk [vmem:[%s7224_s17 + $0x20] sm:$0xff] %vm4101_vm0, %v4066_v49 }
 0x6f8   : > { %v4068_v43 = vpop.f32.mrf.mxu2 }
 0x6f9   : > { %v4069_v13 = vadd.f32 %v4370_v20, %v4068_v43 }
 0x6fb   : > { %4107 = vst.msk [vmem:[%s7224_s17 + $0x28] sm:$0xff] %vm4101_vm0, %v4069_v13 }
 0x700   : > { %v4071_v55 = vpop.f32.mrf.mxu2 }
 0x701   : > { %v4072_v52 = vadd.f32 %v4370_v20, %v4071_v55 }
 0x703   : > { %4108 = vst.msk [vmem:[%s7224_s17 + $0x30] sm:$0xff] %vm4101_vm0, %v4072_v52 }
 0x708   : > { %v4074_v34 = vpop.f32.mrf.mxu2 }
 0x709   : > { %v4075_v63 = vadd.f32 %v4370_v20, %v4074_v34 }
 0x70b   : > { %4109 = vst.msk [vmem:[%s7224_s17 + $0x38] sm:$0xff] %vm4101_vm0, %v4075_v63 }
 0x710   : > { %v4077_v44 = vpop.f32.mrf.mxu2 }
 0x711   : > { %v4078_v15 = vadd.f32 %v4370_v20, %v4077_v44 }
 0x713   : > { %4110 = vst.msk [vmem:[%s7224_s17 + $0x40] sm:$0xff] %vm4101_vm0, %v4078_v15 }
 0x718   : > { %v4080_v32 = vpop.f32.mrf.mxu2 }
 0x719   : > { %v4081_v11 = vadd.f32 %v4370_v20, %v4080_v32 }
 0x71b   : > { %4111 = vst.msk [vmem:[%s7224_s17 + $0x48] sm:$0xff] %vm4101_vm0, %v4081_v11 }
 0x720   : > { %v4083_v33 = vpop.f32.mrf.mxu2 }
 0x721   : > { %v4084_v10 = vadd.f32 %v4370_v20, %v4083_v33 }
 0x723   : > { %4112 = vst.msk [vmem:[%s7224_s17 + $0x50] sm:$0xff] %vm4101_vm0, %v4084_v10 }
 0x728   : > { %v4086_v4 = vpop.f32.mrf.mxu2 }
 0x729   : > { %v4087_v1 = vadd.f32 %v4370_v20, %v4086_v4 }
 0x72b   : > { %4113 = vst.msk [vmem:[%s7224_s17 + $0x58] sm:$0xff] %vm4101_vm0, %v4087_v1 }
 0x730   : > { %v4089_v2 = vpop.f32.mrf.mxu2 }
 0x731   : > { %v4090_v24 = vadd.f32 %v4370_v20, %v4089_v2 }
 0x733   : > { %4114 = vst.msk [vmem:[%s7224_s17 + $0x60] sm:$0xff] %vm4101_vm0, %v4090_v24 }
 0x738   : > { %v4092_v7 = vpop.f32.mrf.mxu2 }
 0x739   : > { %v4093_v12 = vadd.f32 %v4370_v20, %v4092_v7 }
 0x73b   : > { %4115 = vst.msk [vmem:[%s7224_s17 + $0x68] sm:$0xff] %vm4101_vm0, %v4093_v12 }
 0x740   : > { %v4095_v14 = vpop.f32.mrf.mxu2 }
 0x741   : > { %v4096_v58 = vadd.f32 %v4370_v20, %v4095_v14 }
 0x743   : > { %4116 = vst.msk [vmem:[%s7224_s17 + $0x70] sm:$0xff] %vm4101_vm0, %v4096_v58 }
 0x748   : > { %v4098_v50 = vpop.f32.mrf.mxu2 }
 0x749   : > { %v4099_v3 = vadd.f32 %v4370_v20, %v4098_v50 }
 0x74b   : > { %4117 = vst.msk [vmem:[%s7224_s17 + $0x78] sm:$0xff] %vm4101_vm0, %v4099_v3 }
 0x74c PF: > { %s26_s18 = sadd.s32 1, %s4507_s18  }
 0x74d   : > { %p23_p7 = scmp.ge.s32.totalorder %s26_s18, 4  }
 0x74f   :  { %25 = sbr.rel (!%p23_p7) target bundleno = 1 (0x1), region = 115 }
 0x754   :  { %4140 = vsyncpa [#allocation3], 1 }
 0x755   :  { %4142 = vsyncpa [#allocation3 + $0x1], 1 }

</bundles_post_ra>
